<compile_context>
chip_gen: v7x
topology: tpu7x:2x2x1
jax: 0.10.0
libtpu: 0.0.40
codegen_flags: <defaults>
</compile_context>

<pallas_src>
import functools
import math

import jax
import jax.numpy as jnp
from jax.experimental import pallas as pl
from jax.experimental.pallas import tpu as pltpu

EPS = 1e-5


def _round_up(x, m):
    return (x + m - 1) // m * m


def _conv_rows(x_refs, w_ref, k, w_out, c_in):
    """Conv tile as a sum of k*k shifted 2-D MXU matmuls.

    x_refs[kh]: (TR, W + k - 1, Cin) bf16 row-shifted view of the padded input.
    w_ref:      (k*k, Cin, Cout_pad)  bf16 packed weights (tap-major).
    Returns (TR * W, Cout_pad) float32.
    """
    acc = None
    for kh in range(k):
        xk = x_refs[kh][...]                                 # (TR, Wp, Cin)
        for kw in range(k):
            xs = xk[:, kw:kw + w_out, :].reshape(-1, c_in)   # (TR*W, Cin)
            wt = w_ref[kh * k + kw]                          # (Cin, Cout_pad)
            t = jnp.dot(xs, wt, preferred_element_type=jnp.float32)
            acc = t if acc is None else acc + t
    return acc


def _make_stats_kernel(k, w_out, c_in):
    """Phase 1: accumulate per-channel sum and sum-of-squares of (conv + bias)."""
    def kernel(*refs):
        x_refs = refs[:k]
        w_ref, b_ref, stats_ref = refs[k], refs[k + 1], refs[k + 2]

        conv = _conv_rows(x_refs, w_ref, k, w_out, c_in)     # (TR*W, Cpad) f32
        conv = conv + b_ref[...]                             # + conv bias (1, Cpad)

        @pl.when(pl.program_id(0) == 0)
        def _init():
            stats_ref[...] = jnp.zeros_like(stats_ref)

        s = jnp.sum(conv, axis=0, keepdims=True)             # (1, Cpad)
        ss = jnp.sum(conv * conv, axis=0, keepdims=True)     # (1, Cpad)
        stats_ref[...] += jnp.concatenate([s, ss], axis=0)   # rows: [sum, sumsq]

    return kernel


def _make_norm_kernel(k, w_out, c_in):
    """Phase 2: recompute conv tile, apply folded BN scale/shift + ReLU."""
    def kernel(*refs):
        x_refs = refs[:k]
        w_ref, p_ref, out_ref = refs[k], refs[k + 1], refs[k + 2]

        conv = _conv_rows(x_refs, w_ref, k, w_out, c_in)     # (TR*W, Cpad) f32
        p = p_ref[...]                                       # (3, Cpad): bias/scale/shift
        bias, scale, shift = p[0:1, :], p[1:2, :], p[2:3, :]
        out_ref[...] = jnp.maximum((conv + bias) * scale + shift, 0.0)

    return kernel


def _pick_row_tile(nh, w_out, wp, c_in, c_pad, k, max_out_rows=2048,
                   vmem_budget=24 * 1024 * 1024):
    """Largest divisor of N*H whose tile fits the VMEM budget (headroom for v7x 64 MiB)."""
    best = None
    for tr in range(1, nh + 1):
        if nh % tr:
            continue
        out_rows = tr * w_out
        if out_rows % 8 and tr != nh:            # keep output block sublane-aligned
            continue
        vmem = (k * 2 * tr * wp * c_in * 2       # double-buffered bf16 input views
                + 3 * out_rows * c_pad * 4)      # f32 acc + double-buffered f32 out
        if out_rows <= max_out_rows and vmem <= vmem_budget:
            best = tr
    return best if best is not None else nh      # correctness fallback: single tile


@functools.partial(jax.jit, static_argnames=("kernel_size", "max_out_rows"))
def unet_encoder_block(x_nchw, weight, bias, gamma, beta, *, kernel_size=3,
                       max_out_rows=2048):
    """x_nchw: (N, Cin, H, W); weight: (Cout, Cin, k, k) PyTorch conv layout."""
    n, c_in, h, w_out = x_nchw.shape
    c_out = weight.shape[0]
    k = kernel_size
    assert k % 2 == 1, "odd kernel_size assumed (reflect-padded 'same' conv)"
    p = int(math.ceil((k - 1) / 2))
    assert weight.shape == (c_out, c_in, k, k)

    nh = n * h
    wp = w_out + 2 * p                            # padded width = W + k - 1
    c_pad = _round_up(c_out, 128)                 # lane-dense output channels
    m_total = n * h * w_out                       # rows of conceptual (M, Cout) activation

    # --- thin plain-JAX glue (layout only): NCHW->NHWC, reflect pad, bf16 cast ---
    x_nhwc = jnp.transpose(x_nchw, (0, 2, 3, 1)).astype(jnp.bfloat16)
    xp = jnp.pad(x_nhwc, ((0, 0), (p, p), (p, p), (0, 0)), mode="reflect")
    # k row-shifted views (one per kernel row): halo handled without im2col
    views = [xp[:, kh:kh + h, :, :].reshape(nh, wp, c_in) for kh in range(k)]

    # PyTorch (Cout, Cin, kh, kw) -> (kh*k+kw, Cin, Cout_pad), bf16 for the MXU
    w_packed = jnp.transpose(weight, (2, 3, 1, 0)).reshape(k * k, c_in, c_out)
    w_packed = jnp.pad(w_packed, ((0, 0), (0, 0), (0, c_pad - c_out))).astype(jnp.bfloat16)

    bias_pad = jnp.pad(bias.astype(jnp.float32), (0, c_pad - c_out)).reshape(1, c_pad)
    gamma_pad = jnp.pad(gamma.astype(jnp.float32), (0, c_pad - c_out))
    beta_pad = jnp.pad(beta.astype(jnp.float32), (0, c_pad - c_out))

    tr = _pick_row_tile(nh, w_out, wp, c_in, c_pad, k, max_out_rows)
    num_tiles = nh // tr

    x_spec = pl.BlockSpec((tr, wp, c_in), lambda i: (i, 0, 0))
    w_spec = pl.BlockSpec((k * k, c_in, c_pad), lambda i: (0, 0, 0))

    flops = 2 * m_total * (k * k * c_in) * c_pad
    in_bytes = k * nh * wp * c_in * 2 + k * k * c_in * c_pad * 2
    vmem_limit = 48 * 1024 * 1024                 # explicit; safe on v5e/v6e/v7x

    # ---- phase 1: per-channel sum / sum-of-squares over the whole batch ----
    stats = pl.pallas_call(
        _make_stats_kernel(k, w_out, c_in),
        out_shape=jax.ShapeDtypeStruct((2, c_pad), jnp.float32),
        grid=(num_tiles,),
        in_specs=[x_spec] * k + [w_spec, pl.BlockSpec((1, c_pad), lambda i: (0, 0))],
        out_specs=pl.BlockSpec((2, c_pad), lambda i: (0, 0)),   # resident accumulator
        compiler_params=pltpu.CompilerParams(
            dimension_semantics=("arbitrary",),
            vmem_limit_bytes=vmem_limit),
        cost_estimate=pl.CostEstimate(flops=flops, transcendentals=0,
                                      bytes_accessed=in_bytes + 2 * c_pad * 4),
    )(*views, w_packed, bias_pad)

    # --- fold BatchNorm (train mode, biased var) into per-channel scale/shift ---
    mean = stats[0] / m_total
    var = jnp.maximum(stats[1] / m_total - mean * mean, 0.0)   # clamp E[x^2]-E[x]^2
    scale = gamma_pad * jax.lax.rsqrt(var + EPS)
    shift = beta_pad - mean * scale
    params = jnp.stack([bias_pad[0], scale, shift], axis=0)    # (3, c_pad) f32

    # ---- phase 2: recompute conv tile, scale/shift + ReLU, lane-dense output ----
    out2d = pl.pallas_call(
        _make_norm_kernel(k, w_out, c_in),
        out_shape=jax.ShapeDtypeStruct((m_total, c_pad), jnp.float32),
        grid=(num_tiles,),
        in_specs=[x_spec] * k + [w_spec, pl.BlockSpec((3, c_pad), lambda i: (0, 0))],
        out_specs=pl.BlockSpec((tr * w_out, c_pad), lambda i: (i, 0)),
        compiler_params=pltpu.CompilerParams(
            dimension_semantics=("parallel",),     # shard row tiles across v7x's 2 TCs
            vmem_limit_bytes=vmem_limit),
        cost_estimate=pl.CostEstimate(flops=flops, transcendentals=0,
                                      bytes_accessed=in_bytes + m_total * c_pad * 4),
    )(*views, w_packed, params)

    out = out2d.reshape(n, h, w_out, c_pad)[..., :c_out]
    return jnp.transpose(out, (0, 3, 1, 2))        # back to NCHW like the PyTorch module


if __name__ == "__main__":
    key = jax.random.PRNGKey(0)
    k1, k2, k3, k4, k5 = jax.random.split(key, 5)

    N, Cin, Cout, H, W = 2, 4, 8, 16, 16
    x = jax.random.normal(k1, (N, Cin, H, W), jnp.float32)
    weight = 0.1 * jax.random.normal(k2, (Cout, Cin, 3, 3), jnp.float32)
    bias = 0.1 * jax.random.normal(k3, (Cout,), jnp.float32)
    gamma = 1.0 + 0.1 * jax.random.normal(k4, (Cout,), jnp.float32)
    beta = 0.1 * jax.random.normal(k5, (Cout,), jnp.float32)

    # max_out_rows=128 -> 4 row tiles at this size: exercises the tiled two-phase BN.
    out = unet_encoder_block(x, weight, bias, gamma, beta,
                             kernel_size=3, max_out_rows=128)
    out = jax.block_until_ready(out)
    assert out.shape == (N, Cout, H, W)

    # pure-JAX reference mirroring the PyTorch forward (f32 everywhere)
    x_nhwc = jnp.transpose(x, (0, 2, 3, 1))
    xp = jnp.pad(x_nhwc, ((0, 0), (1, 1), (1, 1), (0, 0)), mode="reflect")
    conv = jax.lax.conv_general_dilated(
        xp, jnp.transpose(weight, (2, 3, 1, 0)), (1, 1), "VALID",
        dimension_numbers=("NHWC", "HWIO", "NHWC")) + bias
    mean = conv.mean(axis=(0, 1, 2), keepdims=True)
    var = ((conv - mean) ** 2).mean(axis=(0, 1, 2), keepdims=True)
    ref = jnp.maximum((conv - mean) * jax.lax.rsqrt(var + EPS) * gamma + beta, 0.0)
    ref = jnp.transpose(ref, (0, 3, 1, 2))

    assert jnp.allclose(out, ref, rtol=3e-2, atol=3e-2), "mismatch vs reference"
    print("KERNEL_OK")
</pallas_src>

<mosaic_0001>
module attributes {stable_mosaic.version = 11 : i64} {
  func.func @kernel(%arg0: i32, %arg1: memref<8x18x4xbf16, #tpu.memory_space<vmem>>, %arg2: memref<8x18x4xbf16, #tpu.memory_space<vmem>>, %arg3: memref<8x18x4xbf16, #tpu.memory_space<vmem>>, %arg4: memref<9x4x128xbf16, #tpu.memory_space<vmem>>, %arg5: memref<1x128xf32, #tpu.memory_space<vmem>>, %arg6: memref<2x128xf32, #tpu.memory_space<vmem>>) attributes {dimension_semantics = [#tpu.dimension_semantics<arbitrary>], iteration_bounds = array<i64: 4>, scalar_prefetch = 0 : i64, scratch_operands = 0 : i64, tpu.core_type = #tpu.core_type<tc>, window_params = [{transform_indices = @transform_0, window_bounds = array<i64: 8, 18, 4>}, {transform_indices = @transform_1, window_bounds = array<i64: 8, 18, 4>}, {transform_indices = @transform_2, window_bounds = array<i64: 8, 18, 4>}, {pipeline_mode = #tpu.pipeline_mode<synchronous>, transform_indices = @transform_3, window_bounds = array<i64: 9, 4, 128>}, {pipeline_mode = #tpu.pipeline_mode<synchronous>, transform_indices = @transform_4, window_bounds = array<i64: 1, 128>}, {pipeline_mode = #tpu.pipeline_mode<synchronous>, transform_indices = @transform_5, window_bounds = array<i64: 2, 128>}]} {
    %c0 = arith.constant 0 : index
    %c0_0 = arith.constant 0 : index
    %c0_1 = arith.constant 0 : index
    %0 = vector.load %arg1[%c0, %c0_0, %c0_1] : memref<8x18x4xbf16, #tpu.memory_space<vmem>>, vector<8x18x4xbf16>
    %1 = vector.extract_strided_slice %0 {offsets = [0, 0, 0], sizes = [8, 16, 4], strides = [1, 1, 1]} : vector<8x18x4xbf16> to vector<8x16x4xbf16>
    %2 = vector.shape_cast %1 : vector<8x16x4xbf16> to vector<128x4xbf16>
    %c0_2 = arith.constant 0 : index
    %c0_3 = arith.constant 0 : index
    %c0_4 = arith.constant 0 : index
    %3 = vector.load %arg4[%c0_2, %c0_3, %c0_4] : memref<9x4x128xbf16, #tpu.memory_space<vmem>>, vector<1x4x128xbf16>
    %4 = vector.shape_cast %3 : vector<1x4x128xbf16> to vector<4x128xbf16>
    %cst = arith.constant dense<0.000000e+00> : vector<128x128xf32>
    %5 = tpu.matmul %2, %4, %cst {dimension_numbers = #tpu.dot_dimension_numbers<[1], [0], [0], [1], [0, 0, 1, 1], [], []>} : vector<128x4xbf16>, vector<4x128xbf16>, vector<128x128xf32> -> vector<128x128xf32>
    %6 = vector.extract_strided_slice %0 {offsets = [0, 1, 0], sizes = [8, 16, 4], strides = [1, 1, 1]} : vector<8x18x4xbf16> to vector<8x16x4xbf16>
    %7 = vector.shape_cast %6 : vector<8x16x4xbf16> to vector<128x4xbf16>
    %c1 = arith.constant 1 : index
    %c0_5 = arith.constant 0 : index
    %c0_6 = arith.constant 0 : index
    %8 = vector.load %arg4[%c1, %c0_5, %c0_6] : memref<9x4x128xbf16, #tpu.memory_space<vmem>>, vector<1x4x128xbf16>
    %9 = vector.shape_cast %8 : vector<1x4x128xbf16> to vector<4x128xbf16>
    %cst_7 = arith.constant dense<0.000000e+00> : vector<128x128xf32>
    %10 = tpu.matmul %7, %9, %cst_7 {dimension_numbers = #tpu.dot_dimension_numbers<[1], [0], [0], [1], [0, 0, 1, 1], [], []>} : vector<128x4xbf16>, vector<4x128xbf16>, vector<128x128xf32> -> vector<128x128xf32>
    %11 = arith.addf %5, %10 : vector<128x128xf32>
    %12 = vector.extract_strided_slice %0 {offsets = [0, 2, 0], sizes = [8, 16, 4], strides = [1, 1, 1]} : vector<8x18x4xbf16> to vector<8x16x4xbf16>
    %13 = vector.shape_cast %12 : vector<8x16x4xbf16> to vector<128x4xbf16>
    %c2 = arith.constant 2 : index
    %c0_8 = arith.constant 0 : index
    %c0_9 = arith.constant 0 : index
    %14 = vector.load %arg4[%c2, %c0_8, %c0_9] : memref<9x4x128xbf16, #tpu.memory_space<vmem>>, vector<1x4x128xbf16>
    %15 = vector.shape_cast %14 : vector<1x4x128xbf16> to vector<4x128xbf16>
    %cst_10 = arith.constant dense<0.000000e+00> : vector<128x128xf32>
    %16 = tpu.matmul %13, %15, %cst_10 {dimension_numbers = #tpu.dot_dimension_numbers<[1], [0], [0], [1], [0, 0, 1, 1], [], []>} : vector<128x4xbf16>, vector<4x128xbf16>, vector<128x128xf32> -> vector<128x128xf32>
    %17 = arith.addf %11, %16 : vector<128x128xf32>
    %c0_11 = arith.constant 0 : index
    %c0_12 = arith.constant 0 : index
    %c0_13 = arith.constant 0 : index
    %18 = vector.load %arg2[%c0_11, %c0_12, %c0_13] : memref<8x18x4xbf16, #tpu.memory_space<vmem>>, vector<8x18x4xbf16>
    %19 = vector.extract_strided_slice %18 {offsets = [0, 0, 0], sizes = [8, 16, 4], strides = [1, 1, 1]} : vector<8x18x4xbf16> to vector<8x16x4xbf16>
    %20 = vector.shape_cast %19 : vector<8x16x4xbf16> to vector<128x4xbf16>
    %c3 = arith.constant 3 : index
    %c0_14 = arith.constant 0 : index
    %c0_15 = arith.constant 0 : index
    %21 = vector.load %arg4[%c3, %c0_14, %c0_15] : memref<9x4x128xbf16, #tpu.memory_space<vmem>>, vector<1x4x128xbf16>
    %22 = vector.shape_cast %21 : vector<1x4x128xbf16> to vector<4x128xbf16>
    %cst_16 = arith.constant dense<0.000000e+00> : vector<128x128xf32>
    %23 = tpu.matmul %20, %22, %cst_16 {dimension_numbers = #tpu.dot_dimension_numbers<[1], [0], [0], [1], [0, 0, 1, 1], [], []>} : vector<128x4xbf16>, vector<4x128xbf16>, vector<128x128xf32> -> vector<128x128xf32>
    %24 = arith.addf %17, %23 : vector<128x128xf32>
    %25 = vector.extract_strided_slice %18 {offsets = [0, 1, 0], sizes = [8, 16, 4], strides = [1, 1, 1]} : vector<8x18x4xbf16> to vector<8x16x4xbf16>
    %26 = vector.shape_cast %25 : vector<8x16x4xbf16> to vector<128x4xbf16>
    %c4 = arith.constant 4 : index
    %c0_17 = arith.constant 0 : index
    %c0_18 = arith.constant 0 : index
    %27 = vector.load %arg4[%c4, %c0_17, %c0_18] : memref<9x4x128xbf16, #tpu.memory_space<vmem>>, vector<1x4x128xbf16>
    %28 = vector.shape_cast %27 : vector<1x4x128xbf16> to vector<4x128xbf16>
    %cst_19 = arith.constant dense<0.000000e+00> : vector<128x128xf32>
    %29 = tpu.matmul %26, %28, %cst_19 {dimension_numbers = #tpu.dot_dimension_numbers<[1], [0], [0], [1], [0, 0, 1, 1], [], []>} : vector<128x4xbf16>, vector<4x128xbf16>, vector<128x128xf32> -> vector<128x128xf32>
    %30 = arith.addf %24, %29 : vector<128x128xf32>
    %31 = vector.extract_strided_slice %18 {offsets = [0, 2, 0], sizes = [8, 16, 4], strides = [1, 1, 1]} : vector<8x18x4xbf16> to vector<8x16x4xbf16>
    %32 = vector.shape_cast %31 : vector<8x16x4xbf16> to vector<128x4xbf16>
    %c5 = arith.constant 5 : index
    %c0_20 = arith.constant 0 : index
    %c0_21 = arith.constant 0 : index
    %33 = vector.load %arg4[%c5, %c0_20, %c0_21] : memref<9x4x128xbf16, #tpu.memory_space<vmem>>, vector<1x4x128xbf16>
    %34 = vector.shape_cast %33 : vector<1x4x128xbf16> to vector<4x128xbf16>
    %cst_22 = arith.constant dense<0.000000e+00> : vector<128x128xf32>
    %35 = tpu.matmul %32, %34, %cst_22 {dimension_numbers = #tpu.dot_dimension_numbers<[1], [0], [0], [1], [0, 0, 1, 1], [], []>} : vector<128x4xbf16>, vector<4x128xbf16>, vector<128x128xf32> -> vector<128x128xf32>
    %36 = arith.addf %30, %35 : vector<128x128xf32>
    %c0_23 = arith.constant 0 : index
    %c0_24 = arith.constant 0 : index
    %c0_25 = arith.constant 0 : index
    %37 = vector.load %arg3[%c0_23, %c0_24, %c0_25] : memref<8x18x4xbf16, #tpu.memory_space<vmem>>, vector<8x18x4xbf16>
    %38 = vector.extract_strided_slice %37 {offsets = [0, 0, 0], sizes = [8, 16, 4], strides = [1, 1, 1]} : vector<8x18x4xbf16> to vector<8x16x4xbf16>
    %39 = vector.shape_cast %38 : vector<8x16x4xbf16> to vector<128x4xbf16>
    %c6 = arith.constant 6 : index
    %c0_26 = arith.constant 0 : index
    %c0_27 = arith.constant 0 : index
    %40 = vector.load %arg4[%c6, %c0_26, %c0_27] : memref<9x4x128xbf16, #tpu.memory_space<vmem>>, vector<1x4x128xbf16>
    %41 = vector.shape_cast %40 : vector<1x4x128xbf16> to vector<4x128xbf16>
    %cst_28 = arith.constant dense<0.000000e+00> : vector<128x128xf32>
    %42 = tpu.matmul %39, %41, %cst_28 {dimension_numbers = #tpu.dot_dimension_numbers<[1], [0], [0], [1], [0, 0, 1, 1], [], []>} : vector<128x4xbf16>, vector<4x128xbf16>, vector<128x128xf32> -> vector<128x128xf32>
    %43 = arith.addf %36, %42 : vector<128x128xf32>
    %44 = vector.extract_strided_slice %37 {offsets = [0, 1, 0], sizes = [8, 16, 4], strides = [1, 1, 1]} : vector<8x18x4xbf16> to vector<8x16x4xbf16>
    %45 = vector.shape_cast %44 : vector<8x16x4xbf16> to vector<128x4xbf16>
    %c7 = arith.constant 7 : index
    %c0_29 = arith.constant 0 : index
    %c0_30 = arith.constant 0 : index
    %46 = vector.load %arg4[%c7, %c0_29, %c0_30] : memref<9x4x128xbf16, #tpu.memory_space<vmem>>, vector<1x4x128xbf16>
    %47 = vector.shape_cast %46 : vector<1x4x128xbf16> to vector<4x128xbf16>
    %cst_31 = arith.constant dense<0.000000e+00> : vector<128x128xf32>
    %48 = tpu.matmul %45, %47, %cst_31 {dimension_numbers = #tpu.dot_dimension_numbers<[1], [0], [0], [1], [0, 0, 1, 1], [], []>} : vector<128x4xbf16>, vector<4x128xbf16>, vector<128x128xf32> -> vector<128x128xf32>
    %49 = arith.addf %43, %48 : vector<128x128xf32>
    %50 = vector.extract_strided_slice %37 {offsets = [0, 2, 0], sizes = [8, 16, 4], strides = [1, 1, 1]} : vector<8x18x4xbf16> to vector<8x16x4xbf16>
    %51 = vector.shape_cast %50 : vector<8x16x4xbf16> to vector<128x4xbf16>
    %c8 = arith.constant 8 : index
    %c0_32 = arith.constant 0 : index
    %c0_33 = arith.constant 0 : index
    %52 = vector.load %arg4[%c8, %c0_32, %c0_33] : memref<9x4x128xbf16, #tpu.memory_space<vmem>>, vector<1x4x128xbf16>
    %53 = vector.shape_cast %52 : vector<1x4x128xbf16> to vector<4x128xbf16>
    %cst_34 = arith.constant dense<0.000000e+00> : vector<128x128xf32>
    %54 = tpu.matmul %51, %53, %cst_34 {dimension_numbers = #tpu.dot_dimension_numbers<[1], [0], [0], [1], [0, 0, 1, 1], [], []>} : vector<128x4xbf16>, vector<4x128xbf16>, vector<128x128xf32> -> vector<128x128xf32>
    %55 = arith.addf %49, %54 : vector<128x128xf32>
    %c0_35 = arith.constant 0 : index
    %c0_36 = arith.constant 0 : index
    %56 = vector.load %arg5[%c0_35, %c0_36] : memref<1x128xf32, #tpu.memory_space<vmem>>, vector<1x128xf32>
    %57 = vector.broadcast %56 : vector<1x128xf32> to vector<128x128xf32>
    %58 = arith.addf %55, %57 : vector<128x128xf32>
    %c0_i32 = arith.constant 0 : i32
    %59 = arith.cmpi eq, %arg0, %c0_i32 : i32
    %60 = arith.extui %59 : i1 to i32
    %c0_i32_37 = arith.constant 0 : i32
    %61 = arith.cmpi ne, %60, %c0_i32_37 : i32
    scf.if %61 {
      %cst_44 = arith.constant 0.000000e+00 : f32
      %71 = vector.broadcast %cst_44 : f32 to vector<2x128xf32>
      %c0_45 = arith.constant 0 : index
      %c0_46 = arith.constant 0 : index
      %72 = vector.load %arg6[%c0_45, %c0_46] : memref<2x128xf32, #tpu.memory_space<vmem>>, vector<2x128xf32>
      tpu.vector_store %arg6[%c0_45, %c0_46], %71 {strides = array<i32>} : memref<2x128xf32, #tpu.memory_space<vmem>>, vector<2x128xf32>,
    } else {
    }
    %cst_38 = arith.constant dense<0.000000e+00> : vector<128xf32>
    %62 = vector.multi_reduction <add>, %58, %cst_38 [0] : vector<128x128xf32> to vector<128xf32>
    %63 = vector.shape_cast %62 : vector<128xf32> to vector<1x128xf32>
    %64 = arith.mulf %58, %58 : vector<128x128xf32>
    %cst_39 = arith.constant dense<0.000000e+00> : vector<128xf32>
    %65 = vector.multi_reduction <add>, %64, %cst_39 [0] : vector<128x128xf32> to vector<128xf32>
    %66 = vector.shape_cast %65 : vector<128xf32> to vector<1x128xf32>
    %c0_40 = arith.constant 0 : index
    %c0_41 = arith.constant 0 : index
    %67 = vector.load %arg6[%c0_40, %c0_41] : memref<2x128xf32, #tpu.memory_space<vmem>>, vector<2x128xf32>
    %68 = tpu.concatenate %63, %66 in 0 : vector<1x128xf32>, vector<1x128xf32> -> vector<2x128xf32>
    %69 = arith.addf %67, %68 : vector<2x128xf32>
    %c0_42 = arith.constant 0 : index
    %c0_43 = arith.constant 0 : index
    %70 = vector.load %arg6[%c0_42, %c0_43] : memref<2x128xf32, #tpu.memory_space<vmem>>, vector<2x128xf32>
    tpu.vector_store %arg6[%c0_42, %c0_43], %69 {strides = array<i32>} : memref<2x128xf32, #tpu.memory_space<vmem>>, vector<2x128xf32>,
    return
  }
  func.func @transform_0(%arg0: i32) -> (i32, i32, i32) {
    %c0_i32 = arith.constant 0 : i32
    %c0_i32_0 = arith.constant 0 : i32
    %c0_i32_1 = arith.constant 0 : i32
    return %arg0, %c0_i32, %c0_i32_0 : i32, i32, i32
  }
  func.func @transform_1(%arg0: i32) -> (i32, i32, i32) {
    %c0_i32 = arith.constant 0 : i32
    %c0_i32_0 = arith.constant 0 : i32
    %c0_i32_1 = arith.constant 0 : i32
    return %arg0, %c0_i32, %c0_i32_0 : i32, i32, i32
  }
  func.func @transform_2(%arg0: i32) -> (i32, i32, i32) {
    %c0_i32 = arith.constant 0 : i32
    %c0_i32_0 = arith.constant 0 : i32
    %c0_i32_1 = arith.constant 0 : i32
    return %arg0, %c0_i32, %c0_i32_0 : i32, i32, i32
  }
  func.func @transform_3(%arg0: i32) -> (i32, i32, i32) {
    %c0_i32 = arith.constant 0 : i32
    %c0_i32_0 = arith.constant 0 : i32
    %c0_i32_1 = arith.constant 0 : i32
    %c0_i32_2 = arith.constant 0 : i32
    return %c0_i32, %c0_i32_0, %c0_i32_1 : i32, i32, i32
  }
  func.func @transform_4(%arg0: i32) -> (i32, i32) {
    %c0_i32 = arith.constant 0 : i32
    %c0_i32_0 = arith.constant 0 : i32
    %c0_i32_1 = arith.constant 0 : i32
    return %c0_i32, %c0_i32_0 : i32, i32
  }
  func.func @transform_5(%arg0: i32) -> (i32, i32) {
    %c0_i32 = arith.constant 0 : i32
    %c0_i32_0 = arith.constant 0 : i32
    %c0_i32_1 = arith.constant 0 : i32
    return %c0_i32, %c0_i32_0 : i32, i32
  }
}

module attributes {stable_mosaic.version = 11 : i64} {
  func.func @kernel(%arg0: i32, %arg1: memref<8x18x4xbf16, #tpu.memory_space<vmem>>, %arg2: memref<8x18x4xbf16, #tpu.memory_space<vmem>>, %arg3: memref<8x18x4xbf16, #tpu.memory_space<vmem>>, %arg4: memref<9x4x128xbf16, #tpu.memory_space<vmem>>, %arg5: memref<3x128xf32, #tpu.memory_space<vmem>>, %arg6: memref<128x128xf32, #tpu.memory_space<vmem>>) attributes {dimension_semantics = [#tpu.dimension_semantics<parallel>], iteration_bounds = array<i64: 4>, scalar_prefetch = 0 : i64, scratch_operands = 0 : i64, tpu.core_type = #tpu.core_type<tc>, window_params = [{transform_indices = @transform_0, window_bounds = array<i64: 8, 18, 4>}, {transform_indices = @transform_1, window_bounds = array<i64: 8, 18, 4>}, {transform_indices = @transform_2, window_bounds = array<i64: 8, 18, 4>}, {pipeline_mode = #tpu.pipeline_mode<synchronous>, transform_indices = @transform_3, window_bounds = array<i64: 9, 4, 128>}, {pipeline_mode = #tpu.pipeline_mode<synchronous>, transform_indices = @transform_4, window_bounds = array<i64: 3, 128>}, {transform_indices = @transform_5, window_bounds = array<i64: 128, 128>}]} {
    %c0 = arith.constant 0 : index
    %c0_0 = arith.constant 0 : index
    %c0_1 = arith.constant 0 : index
    %0 = vector.load %arg1[%c0, %c0_0, %c0_1] : memref<8x18x4xbf16, #tpu.memory_space<vmem>>, vector<8x18x4xbf16>
    %1 = vector.extract_strided_slice %0 {offsets = [0, 0, 0], sizes = [8, 16, 4], strides = [1, 1, 1]} : vector<8x18x4xbf16> to vector<8x16x4xbf16>
    %2 = vector.shape_cast %1 : vector<8x16x4xbf16> to vector<128x4xbf16>
    %c0_2 = arith.constant 0 : index
    %c0_3 = arith.constant 0 : index
    %c0_4 = arith.constant 0 : index
    %3 = vector.load %arg4[%c0_2, %c0_3, %c0_4] : memref<9x4x128xbf16, #tpu.memory_space<vmem>>, vector<1x4x128xbf16>
    %4 = vector.shape_cast %3 : vector<1x4x128xbf16> to vector<4x128xbf16>
    %cst = arith.constant dense<0.000000e+00> : vector<128x128xf32>
    %5 = tpu.matmul %2, %4, %cst {dimension_numbers = #tpu.dot_dimension_numbers<[1], [0], [0], [1], [0, 0, 1, 1], [], []>} : vector<128x4xbf16>, vector<4x128xbf16>, vector<128x128xf32> -> vector<128x128xf32>
    %6 = vector.extract_strided_slice %0 {offsets = [0, 1, 0], sizes = [8, 16, 4], strides = [1, 1, 1]} : vector<8x18x4xbf16> to vector<8x16x4xbf16>
    %7 = vector.shape_cast %6 : vector<8x16x4xbf16> to vector<128x4xbf16>
    %c1 = arith.constant 1 : index
    %c0_5 = arith.constant 0 : index
    %c0_6 = arith.constant 0 : index
    %8 = vector.load %arg4[%c1, %c0_5, %c0_6] : memref<9x4x128xbf16, #tpu.memory_space<vmem>>, vector<1x4x128xbf16>
    %9 = vector.shape_cast %8 : vector<1x4x128xbf16> to vector<4x128xbf16>
    %cst_7 = arith.constant dense<0.000000e+00> : vector<128x128xf32>
    %10 = tpu.matmul %7, %9, %cst_7 {dimension_numbers = #tpu.dot_dimension_numbers<[1], [0], [0], [1], [0, 0, 1, 1], [], []>} : vector<128x4xbf16>, vector<4x128xbf16>, vector<128x128xf32> -> vector<128x128xf32>
    %11 = arith.addf %5, %10 : vector<128x128xf32>
    %12 = vector.extract_strided_slice %0 {offsets = [0, 2, 0], sizes = [8, 16, 4], strides = [1, 1, 1]} : vector<8x18x4xbf16> to vector<8x16x4xbf16>
    %13 = vector.shape_cast %12 : vector<8x16x4xbf16> to vector<128x4xbf16>
    %c2 = arith.constant 2 : index
    %c0_8 = arith.constant 0 : index
    %c0_9 = arith.constant 0 : index
    %14 = vector.load %arg4[%c2, %c0_8, %c0_9] : memref<9x4x128xbf16, #tpu.memory_space<vmem>>, vector<1x4x128xbf16>
    %15 = vector.shape_cast %14 : vector<1x4x128xbf16> to vector<4x128xbf16>
    %cst_10 = arith.constant dense<0.000000e+00> : vector<128x128xf32>
    %16 = tpu.matmul %13, %15, %cst_10 {dimension_numbers = #tpu.dot_dimension_numbers<[1], [0], [0], [1], [0, 0, 1, 1], [], []>} : vector<128x4xbf16>, vector<4x128xbf16>, vector<128x128xf32> -> vector<128x128xf32>
    %17 = arith.addf %11, %16 : vector<128x128xf32>
    %c0_11 = arith.constant 0 : index
    %c0_12 = arith.constant 0 : index
    %c0_13 = arith.constant 0 : index
    %18 = vector.load %arg2[%c0_11, %c0_12, %c0_13] : memref<8x18x4xbf16, #tpu.memory_space<vmem>>, vector<8x18x4xbf16>
    %19 = vector.extract_strided_slice %18 {offsets = [0, 0, 0], sizes = [8, 16, 4], strides = [1, 1, 1]} : vector<8x18x4xbf16> to vector<8x16x4xbf16>
    %20 = vector.shape_cast %19 : vector<8x16x4xbf16> to vector<128x4xbf16>
    %c3 = arith.constant 3 : index
    %c0_14 = arith.constant 0 : index
    %c0_15 = arith.constant 0 : index
    %21 = vector.load %arg4[%c3, %c0_14, %c0_15] : memref<9x4x128xbf16, #tpu.memory_space<vmem>>, vector<1x4x128xbf16>
    %22 = vector.shape_cast %21 : vector<1x4x128xbf16> to vector<4x128xbf16>
    %cst_16 = arith.constant dense<0.000000e+00> : vector<128x128xf32>
    %23 = tpu.matmul %20, %22, %cst_16 {dimension_numbers = #tpu.dot_dimension_numbers<[1], [0], [0], [1], [0, 0, 1, 1], [], []>} : vector<128x4xbf16>, vector<4x128xbf16>, vector<128x128xf32> -> vector<128x128xf32>
    %24 = arith.addf %17, %23 : vector<128x128xf32>
    %25 = vector.extract_strided_slice %18 {offsets = [0, 1, 0], sizes = [8, 16, 4], strides = [1, 1, 1]} : vector<8x18x4xbf16> to vector<8x16x4xbf16>
    %26 = vector.shape_cast %25 : vector<8x16x4xbf16> to vector<128x4xbf16>
    %c4 = arith.constant 4 : index
    %c0_17 = arith.constant 0 : index
    %c0_18 = arith.constant 0 : index
    %27 = vector.load %arg4[%c4, %c0_17, %c0_18] : memref<9x4x128xbf16, #tpu.memory_space<vmem>>, vector<1x4x128xbf16>
    %28 = vector.shape_cast %27 : vector<1x4x128xbf16> to vector<4x128xbf16>
    %cst_19 = arith.constant dense<0.000000e+00> : vector<128x128xf32>
    %29 = tpu.matmul %26, %28, %cst_19 {dimension_numbers = #tpu.dot_dimension_numbers<[1], [0], [0], [1], [0, 0, 1, 1], [], []>} : vector<128x4xbf16>, vector<4x128xbf16>, vector<128x128xf32> -> vector<128x128xf32>
    %30 = arith.addf %24, %29 : vector<128x128xf32>
    %31 = vector.extract_strided_slice %18 {offsets = [0, 2, 0], sizes = [8, 16, 4], strides = [1, 1, 1]} : vector<8x18x4xbf16> to vector<8x16x4xbf16>
    %32 = vector.shape_cast %31 : vector<8x16x4xbf16> to vector<128x4xbf16>
    %c5 = arith.constant 5 : index
    %c0_20 = arith.constant 0 : index
    %c0_21 = arith.constant 0 : index
    %33 = vector.load %arg4[%c5, %c0_20, %c0_21] : memref<9x4x128xbf16, #tpu.memory_space<vmem>>, vector<1x4x128xbf16>
    %34 = vector.shape_cast %33 : vector<1x4x128xbf16> to vector<4x128xbf16>
    %cst_22 = arith.constant dense<0.000000e+00> : vector<128x128xf32>
    %35 = tpu.matmul %32, %34, %cst_22 {dimension_numbers = #tpu.dot_dimension_numbers<[1], [0], [0], [1], [0, 0, 1, 1], [], []>} : vector<128x4xbf16>, vector<4x128xbf16>, vector<128x128xf32> -> vector<128x128xf32>
    %36 = arith.addf %30, %35 : vector<128x128xf32>
    %c0_23 = arith.constant 0 : index
    %c0_24 = arith.constant 0 : index
    %c0_25 = arith.constant 0 : index
    %37 = vector.load %arg3[%c0_23, %c0_24, %c0_25] : memref<8x18x4xbf16, #tpu.memory_space<vmem>>, vector<8x18x4xbf16>
    %38 = vector.extract_strided_slice %37 {offsets = [0, 0, 0], sizes = [8, 16, 4], strides = [1, 1, 1]} : vector<8x18x4xbf16> to vector<8x16x4xbf16>
    %39 = vector.shape_cast %38 : vector<8x16x4xbf16> to vector<128x4xbf16>
    %c6 = arith.constant 6 : index
    %c0_26 = arith.constant 0 : index
    %c0_27 = arith.constant 0 : index
    %40 = vector.load %arg4[%c6, %c0_26, %c0_27] : memref<9x4x128xbf16, #tpu.memory_space<vmem>>, vector<1x4x128xbf16>
    %41 = vector.shape_cast %40 : vector<1x4x128xbf16> to vector<4x128xbf16>
    %cst_28 = arith.constant dense<0.000000e+00> : vector<128x128xf32>
    %42 = tpu.matmul %39, %41, %cst_28 {dimension_numbers = #tpu.dot_dimension_numbers<[1], [0], [0], [1], [0, 0, 1, 1], [], []>} : vector<128x4xbf16>, vector<4x128xbf16>, vector<128x128xf32> -> vector<128x128xf32>
    %43 = arith.addf %36, %42 : vector<128x128xf32>
    %44 = vector.extract_strided_slice %37 {offsets = [0, 1, 0], sizes = [8, 16, 4], strides = [1, 1, 1]} : vector<8x18x4xbf16> to vector<8x16x4xbf16>
    %45 = vector.shape_cast %44 : vector<8x16x4xbf16> to vector<128x4xbf16>
    %c7 = arith.constant 7 : index
    %c0_29 = arith.constant 0 : index
    %c0_30 = arith.constant 0 : index
    %46 = vector.load %arg4[%c7, %c0_29, %c0_30] : memref<9x4x128xbf16, #tpu.memory_space<vmem>>, vector<1x4x128xbf16>
    %47 = vector.shape_cast %46 : vector<1x4x128xbf16> to vector<4x128xbf16>
    %cst_31 = arith.constant dense<0.000000e+00> : vector<128x128xf32>
    %48 = tpu.matmul %45, %47, %cst_31 {dimension_numbers = #tpu.dot_dimension_numbers<[1], [0], [0], [1], [0, 0, 1, 1], [], []>} : vector<128x4xbf16>, vector<4x128xbf16>, vector<128x128xf32> -> vector<128x128xf32>
    %49 = arith.addf %43, %48 : vector<128x128xf32>
    %50 = vector.extract_strided_slice %37 {offsets = [0, 2, 0], sizes = [8, 16, 4], strides = [1, 1, 1]} : vector<8x18x4xbf16> to vector<8x16x4xbf16>
    %51 = vector.shape_cast %50 : vector<8x16x4xbf16> to vector<128x4xbf16>
    %c8 = arith.constant 8 : index
    %c0_32 = arith.constant 0 : index
    %c0_33 = arith.constant 0 : index
    %52 = vector.load %arg4[%c8, %c0_32, %c0_33] : memref<9x4x128xbf16, #tpu.memory_space<vmem>>, vector<1x4x128xbf16>
    %53 = vector.shape_cast %52 : vector<1x4x128xbf16> to vector<4x128xbf16>
    %cst_34 = arith.constant dense<0.000000e+00> : vector<128x128xf32>
    %54 = tpu.matmul %51, %53, %cst_34 {dimension_numbers = #tpu.dot_dimension_numbers<[1], [0], [0], [1], [0, 0, 1, 1], [], []>} : vector<128x4xbf16>, vector<4x128xbf16>, vector<128x128xf32> -> vector<128x128xf32>
    %55 = arith.addf %49, %54 : vector<128x128xf32>
    %c0_35 = arith.constant 0 : index
    %c0_36 = arith.constant 0 : index
    %56 = vector.load %arg5[%c0_35, %c0_36] : memref<3x128xf32, #tpu.memory_space<vmem>>, vector<3x128xf32>
    %57 = vector.extract_strided_slice %56 {offsets = [0, 0], sizes = [1, 128], strides = [1, 1]} : vector<3x128xf32> to vector<1x128xf32>
    %58 = vector.extract_strided_slice %56 {offsets = [1, 0], sizes = [1, 128], strides = [1, 1]} : vector<3x128xf32> to vector<1x128xf32>
    %59 = vector.extract_strided_slice %56 {offsets = [2, 0], sizes = [1, 128], strides = [1, 1]} : vector<3x128xf32> to vector<1x128xf32>
    %60 = vector.broadcast %57 : vector<1x128xf32> to vector<128x128xf32>
    %61 = arith.addf %55, %60 : vector<128x128xf32>
    %62 = vector.broadcast %58 : vector<1x128xf32> to vector<128x128xf32>
    %63 = arith.mulf %61, %62 : vector<128x128xf32>
    %64 = vector.broadcast %59 : vector<1x128xf32> to vector<128x128xf32>
    %65 = arith.addf %63, %64 : vector<128x128xf32>
    %cst_37 = arith.constant 0.000000e+00 : f32
    %66 = vector.broadcast %cst_37 : f32 to vector<128x128xf32>
    %67 = arith.maximumf %65, %66 : vector<128x128xf32>
    %c0_38 = arith.constant 0 : index
    %c0_39 = arith.constant 0 : index
    %68 = vector.load %arg6[%c0_38, %c0_39] : memref<128x128xf32, #tpu.memory_space<vmem>>, vector<128x128xf32>
    tpu.vector_store %arg6[%c0_38, %c0_39], %67 {strides = array<i32>} : memref<128x128xf32, #tpu.memory_space<vmem>>, vector<128x128xf32>,
    return
  }
  func.func @transform_0(%arg0: i32) -> (i32, i32, i32) {
    %c0_i32 = arith.constant 0 : i32
    %c0_i32_0 = arith.constant 0 : i32
    %c0_i32_1 = arith.constant 0 : i32
    return %arg0, %c0_i32, %c0_i32_0 : i32, i32, i32
  }
  func.func @transform_1(%arg0: i32) -> (i32, i32, i32) {
    %c0_i32 = arith.constant 0 : i32
    %c0_i32_0 = arith.constant 0 : i32
    %c0_i32_1 = arith.constant 0 : i32
    return %arg0, %c0_i32, %c0_i32_0 : i32, i32, i32
  }
  func.func @transform_2(%arg0: i32) -> (i32, i32, i32) {
    %c0_i32 = arith.constant 0 : i32
    %c0_i32_0 = arith.constant 0 : i32
    %c0_i32_1 = arith.constant 0 : i32
    return %arg0, %c0_i32, %c0_i32_0 : i32, i32, i32
  }
  func.func @transform_3(%arg0: i32) -> (i32, i32, i32) {
    %c0_i32 = arith.constant 0 : i32
    %c0_i32_0 = arith.constant 0 : i32
    %c0_i32_1 = arith.constant 0 : i32
    %c0_i32_2 = arith.constant 0 : i32
    return %c0_i32, %c0_i32_0, %c0_i32_1 : i32, i32, i32
  }
  func.func @transform_4(%arg0: i32) -> (i32, i32) {
    %c0_i32 = arith.constant 0 : i32
    %c0_i32_0 = arith.constant 0 : i32
    %c0_i32_1 = arith.constant 0 : i32
    return %c0_i32, %c0_i32_0 : i32, i32
  }
  func.func @transform_5(%arg0: i32) -> (i32, i32) {
    %c0_i32 = arith.constant 0 : i32
    %c0_i32_0 = arith.constant 0 : i32
    return %arg0, %c0_i32 : i32, i32
  }
}

</mosaic_0001>

<bundles_post_ra>
// kernel: unet_encoder_block.3
= control target key start
LH: loop header
LB: loop body
LE: loop exit
PB: predicated region body
PF: predicated region fallthrough
CT: control target
= control target key end

     0   :  { %s3465_s18 = smov 0   ;;  %s4512_s0 = inlined_call_operand.vmem [shape: bf16[32,18,4], index: 0, kind: input, shape index: {}]   ;;  %s4513_s1 = inlined_call_operand.vmem [shape: bf16[32,18,4], index: 1, kind: input, shape index: {}]   ;;  %s4514_s2 = inlined_call_operand.vmem [shape: bf16[32,18,4], index: 2, kind: input, shape index: {}]   ;;  %s4515_s3 = inlined_call_operand.vmem [shape: bf16[9,4,128], index: 3, kind: input, shape index: {}]   ;;  %s4516_s4 = inlined_call_operand.vmem [shape: f32[3,128], index: 4, kind: input, shape index: {}]   ;;  %s4517_s5 = inlined_call_operand.vmem [shape: f32[512,128], index: 5, kind: output, shape index: {}]  }
   0x1 LB: > { %s2812_s19 = sadd.s32 4294967295, %s3433_s18   ;;  %p2816_p0 = scmp.ge.s32.totalorder %s3433_s18, 1  ;;  %s3433_s18 = sphi %s3465_s18, %s15_s18  }
   0x2   : > { %p213_p1 = scmp.lt.s32.totalorder %s3433_s18, 5 }
   0x4   : > { %p214_p2 = pnand %p2816_p0, %p213_p1 }
   0x6   : > { %217 = sbr.rel (%p214_p2) target bundleno = 422 (0x1a6), region = 40 }
   0xd   : > { %v2825_v0 = vld [vmem:[%s4515_s3 + $0x2] sm:$0x3]  ;;  %vm553_vm0 = vcmask 1041408   ;;  %v2900_v1 = vld [vmem:[%s4515_s3 + $0x8] sm:$0x3]  ;;  %s2817_s24 = sshll.u32 %s2812_s19, 3 }
   0xe   : > { %3376 = vmatprep.subr.msk.bf16.mxu1 %vm553_vm0, %v2825_v0  ;;  %3380 = vmatprep.subr.msk.bf16.mxu0 %vm553_vm0, %v2900_v1  ;;  %v555_v2 = vsel %vm553_vm0, %v2825_v0, 0  ;;  %v3485_v3 = vsel %vm553_vm0, %v2900_v1, 0  ;;  %p255_p3 = scmp.lt.s32.totalorder %s2817_s24, 31  ;;  %v306_v4 = vld [vmem:[%s4515_s3] sm:$0x3]  ;;  %vm528_vm3 = vcmask 31744  }
   0xf   : > { %4542 = vst [vmem:[#allocation2_spill] sm:$0xff] %v3485_v3  ;;  %3085 = vmatpush3.bf16.msra.mxu1 %v555_v2  ;;  %3157 = vmatpush3.bf16.msra.mxu0 %v3485_v3  ;;  %v2925_v5 = vld [vmem:[%s4515_s3 + $0xa] sm:$0x3]  ;;  %vm307_vm1 = vsmask.f32 3328  ;;  %v3534_v17 = vsel %vm553_vm0, %v306_v4, 0 }
  0x10   : > { %s4598_s24 = smov (!%p255_p3, %s2817_s24), 31  ;;  %3377 = vmatprep.subr.msk.bf16.mxu1 %vm553_vm0, %v306_v4  ;;  %3382 = vmatprep.subr.msk.bf16.mxu0 %vm553_vm0, %v2925_v5  ;;  %vm308_vm2 = vsmask.f32 7440  ;;  %v3554_v36 = vsel %vm553_vm0, %v2925_v5, 0  ;;  %v3570_v50 = vld [vmem:[%s4515_s3 + $0xc] sm:$0x3] }
  0x11   : > { %s3496_s29 = smul.u32 12, %s4598_s24  ;;  %vm3549_vm4 = vmor %vm307_vm1, %vm308_vm2  ;;  %v3588_v1 = vsel %vm553_vm0, %v3570_v50, 0  ;;  %vm826_vm5 = vcmask 1042432   ;;  %vm827_vm6 = vcmask 1046532   ;;  %s2823_s28 = sshll.u32 %s2812_s19, 4 }
  0x12   : > { %vm3715_vm7 = vmor %vm826_vm5, %vm827_vm6  ;;  %p276_p4 = scmp.lt.s32.totalorder %s2823_s28, 63 }
  0x13   : > { %s3502_s7 = scalar_lea.vmem %s4512_s0, %s3496_s29  ;;  %s3508_s10 = scalar_lea.vmem %s4513_s1, %s3496_s29 }
  0x14   : > { %v3511_v6 = vld [vmem:[%s3502_s7] sm:$0xf]  ;;  %v3514_v7 = vld [vmem:[%s3502_s7 + $0x4] sm:$0xf]  ;;  %v3517_v8 = vld [vmem:[%s3502_s7 + $0x8] sm:$0x1]  ;;  %s3898_s21 = scalar_lea.vmem %s4514_s2, %s3496_s29 }
  0x15   : > { %v311_v9 = vshrl.u32 %v3511_v6, 16  ;;  %v314_v10 = vshll.u32 %v3511_v6, 16  ;;  %v320_v11 = vshll.u32 %v3514_v7, 16  ;;  %v324_v12 = vshrl.u32 %v3514_v7, 16  ;;  %v3524_v13 = vld [vmem:[%s3508_s10] sm:$0xf] }
  0x16   : > { %v330_v14 = vshll.u32 %v3517_v8, 16  ;;  %v3528_v15 = vld [vmem:[%s3508_s10 + $0x4] sm:$0xf]  ;;  %v3531_v16 = vld [vmem:[%s3508_s10 + $0x8] sm:$0x1]  ;;  %v1258_v23 = vshrl.u32 %v3524_v13, 16 }
  0x17   : > { %v313_v18 = vrot.slane %v311_v9, 4  ;;  %v316_v19 = vrot.slane %v314_v10, 5  ;;  %v322_v20 = vrot.slane %v320_v11, 5  ;;  %v326_v21 = vrot.slane %v324_v12, 4  ;;  %v3542_v30 = vld [vmem:[%s3502_s7 + $0xc] sm:$0xf] }
  0x18   : > { %v332_v22 = vrot.slane %v330_v14, 5  ;;  %v1261_v24 = vshll.u32 %v3524_v13, 16  ;;  %v1267_v25 = vshll.u32 %v3528_v15, 16  ;;  %v1271_v28 = vshrl.u32 %v3528_v15, 16  ;;  %v3545_v31 = vld [vmem:[%s3502_s7 + $0x10] sm:$0xf] }
  0x19   : > { %v317_v26 = vor.u32 %v316_v19, %v313_v18  ;;  %v327_v27 = vor.u32 %v326_v21, %v322_v20  ;;  %v1277_v29 = vshll.u32 %v3531_v16, 16  ;;  %v1260_v33 = vrot.slane %v1258_v23, 4  ;;  %v3557_v42 = vld [vmem:[%s3502_s7 + $0x14] sm:$0x1]  ;;  %v3573_v55 = vld [vmem:[%s3508_s10 + $0xc] sm:$0xf] }
  0x1a   : > { %v1263_v34 = vrot.slane %v1261_v24, 5  ;;  %v1269_v35 = vrot.slane %v1267_v25, 5  ;;  %v1273_v39 = vrot.slane %v1271_v28, 4  ;;  %v335_v43 = vshrl.u32 %v3542_v30, 16  ;;  %v3577_v60 = vld [vmem:[%s3508_s10 + $0x10] sm:$0xf] }
  0x1b   : > { %v318_v37 = vrot.slane %v317_v26, 4  ;;  %v328_v38 = vrot.slane %v327_v27, 4  ;;  %v1279_v40 = vrot.slane %v1277_v29, 5  ;;  %v338_v44 = vshll.u32 %v3542_v30, 16  ;;  %v3584_v0 = vld [vmem:[%s3508_s10 + $0x14] sm:$0x1] }
  0x1c   : > { %v1264_v41 = vor.u32 %v1263_v34, %v1260_v33  ;;  %v344_v45 = vshll.u32 %v3545_v31, 16  ;;  %v1274_v48 = vor.u32 %v1273_v39, %v1269_v35  ;;  %v348_v49 = vshrl.u32 %v3545_v31, 16  ;;  %v3596_v18 = vld [vmem:[%s3502_s7 + $0x18] sm:$0xf]  ;;  %v3601_v23 = vld [vmem:[%s3502_s7 + $0x1c] sm:$0xf] }
  0x1d   : > { %v323_v46 = vsel %vm3549_vm4, %v318_v37, %v322_v20  ;;  %v333_v47 = vsel %vm3549_vm4, %v328_v38, %v332_v22  ;;  %v337_v53 = vrot.slane %v335_v43, 4  ;;  %v340_v54 = vrot.slane %v338_v44, 5  ;;  %v3608_v28 = vld [vmem:[%s3502_s7 + $0x20] sm:$0x1]  ;;  %v3614_v37 = vld [vmem:[%s3508_s10 + $0x18] sm:$0xf] }
  0x1e   : > { %v2826_v51 = vcombine.low %v323_v46, %v333_v47  ;;  %v1265_v52 = vrot.slane %v1264_v41, 4  ;;  %v1275_v56 = vrot.slane %v1274_v48, 4  ;;  %v346_v57 = vrot.slane %v344_v45, 5  ;;  %v3624_v47 = vld [vmem:[%s4515_s3 + $0x4] sm:$0x3]  ;;  %s4600_s28 = smov (!%p276_p4, %s2823_s28), 63 }
  0x1f   : > { %v350_v58 = vrot.slane %v348_v49, 4  ;;  %v354_v59 = vshll.u32 %v3557_v42, 16  ;;  %v1628_v62 = vrot.slane %v3531_v16, 5  ;;  %v341_v63 = vor.u32 %v340_v54, %v337_v53  ;;  %v4133_v3 = vld [vmem:[%s3898_s21 + $0x54] sm:$0xf]  ;;  %s2824_s19 = sshll.u32 %s4600_s28, 3 }
  0x20   : > { %3086 = vmatprep.mubr.msk.bf16.mxu1 %vm528_vm3, %v2826_v51  ;;  %v1270_v61 = vsel %vm3549_vm4, %v1265_v52, %v1269_v35  ;;  %v1280_v2 = vsel %vm3549_vm4, %v1275_v56, %v1279_v40  ;;  %v1282_v9 = vshrl.u32 %v3573_v55, 16  ;;  %v1285_v12 = vshll.u32 %v3573_v55, 16  ;;  %v3628_v52 = vld [vmem:[%s3508_s10 + $0x1c] sm:$0xf]  ;;  %4567 = vst [vmem:[#allocation20_spill] sm:$0xff] %v4133_v3  ;;  %s4451_s8 = scalar_lea.vmem %s4517_s5, %s2824_s19 }
  0x21   : > { %v351_v4 = vor.u32 %v350_v58, %v346_v57  ;;  %v356_v5 = vrot.slane %v354_v59, 5  ;;  %v2901_v10 = vcombine.low %v1270_v61, %v1280_v2  ;;  %v342_v11 = vrot.slane %v341_v63, 4  ;;  %v3633_v59 = vld [vmem:[%s3508_s10 + $0x20] sm:$0x1] }
  0x22   : > { %v1291_v14 = vshll.u32 %v3577_v60, 16  ;;  %v1284_v20 = vrot.slane %v1282_v9, 4  ;;  %v1295_v21 = vshrl.u32 %v3577_v60, 16  ;;  %v1301_v22 = vshll.u32 %v3584_v0, 16 }
  0x23   : > { %v352_v19 = vrot.slane %v351_v4, 4  ;;  %3158 = vmatprep.mubr.msk.bf16.mxu0 %vm528_vm3, %v2901_v10  ;;  %v347_v24 = vsel %vm3549_vm4, %v342_v11, %v346_v57  ;;  %v1287_v25 = vrot.slane %v1285_v12, 5  ;;  %v1632_v27 = vrot.slane %v3577_v60, 5 }
  0x24   : > { %v1293_v26 = vrot.slane %v1291_v14, 5  ;;  %v1297_v33 = vrot.slane %v1295_v21, 4  ;;  %v1303_v34 = vrot.slane %v1301_v22, 5  ;;  %v1635_v35 = vrot.slane %v3584_v0, 5  ;;  %v3649_v21 = vld [vmem:[%s3502_s7 + $0x28] sm:$0xf] }
  0x25   : > { %v357_v29 = vsel %vm3549_vm4, %v352_v19, %v356_v5  ;;  %v1288_v39 = vor.u32 %v1287_v25, %v1284_v20  ;;  %v359_v40 = vshrl.u32 %v3596_v18, 16  ;;  %v362_v41 = vshll.u32 %v3596_v18, 16  ;;  %v3639_v5 = vld [vmem:[%s3502_s7 + $0x24] sm:$0xf] }
  0x26   : > { %v2827_v38 = vcombine.low %v347_v24, %v357_v29  ;;  %v1298_v43 = vor.u32 %v1297_v33, %v1293_v26  ;;  %v368_v44 = vshll.u32 %v3601_v23, 16  ;;  %v372_v45 = vshrl.u32 %v3601_v23, 16 }
  0x27   : > { %v378_v46 = vshll.u32 %v3608_v28, 16  ;;  %v1289_v48 = vrot.slane %v1288_v39, 4  ;;  %v361_v49 = vrot.slane %v359_v40, 4  ;;  %v364_v51 = vrot.slane %v362_v41, 5  ;;  %v3660_v40 = vld [vmem:[%s3508_s10 + $0x24] sm:$0xf] }
  0x28   : > { %3087 = vmatmul.mubr.msk.bf16.vlgmr.msra.gmra.mrb[0].mxu1 %vm528_vm3, %v2827_v38  ;;  %v1306_v53 = vshrl.u32 %v3614_v37, 16  ;;  %v1299_v54 = vrot.slane %v1298_v43, 4  ;;  %v370_v56 = vrot.slane %v368_v44, 5  ;;  %v374_v57 = vrot.slane %v372_v45, 4  ;;  %v3656_v38 = vld [vmem:[%s3502_s7 + $0x2c] sm:$0x1] }
  0x29   : > { %3103 = vmatpush3.bf16.msra.mxu1 %v3534_v17  ;;  %v380_v58 = vrot.slane %v378_v46, 5  ;;  %v1294_v61 = vsel %vm3549_vm4, %v1289_v48, %v1293_v26  ;;  %v365_v63 = vor.u32 %v364_v51, %v361_v49  ;;  %v1309_v4 = vshll.u32 %v3614_v37, 16 }
  0x2a   : > { %v1308_v2 = vrot.slane %v1306_v53, 4  ;;  %3378 = vmatprep.subr.msk.bf16.mxu1 %vm553_vm0, %v3624_v47  ;;  %v1304_v17 = vsel %vm3549_vm4, %v1299_v54, %v1303_v34  ;;  %v375_v9 = vor.u32 %v374_v57, %v370_v56  ;;  %v1315_v10 = vshll.u32 %v3628_v52, 16  ;;  %v3668_v53 = vld [vmem:[%s3508_s10 + $0x28] sm:$0xf] }
  0x2b   : > { %v1319_v11 = vshrl.u32 %v3628_v52, 16  ;;  %v2902_v12 = vcombine.low %v1294_v61, %v1304_v17  ;;  %v366_v14 = vrot.slane %v365_v63, 4  ;;  %v1311_v19 = vrot.slane %v1309_v4, 5  ;;  %4545 = vst [vmem:[#allocation3_spill] sm:$0xff] %v3668_v53  ;;  %v3682_v17 = vld [vmem:[%s3502_s7 + $0x30] sm:$0xf] }
  0x2c   : > { %v1325_v20 = vshll.u32 %v3633_v59, 16  ;;  %v376_v22 = vrot.slane %v375_v9, 4  ;;  %v1317_v24 = vrot.slane %v1315_v10, 5  ;;  %v383_v26 = vshrl.u32 %v3639_v5, 16 }
  0x2d   : > { %v1321_v25 = vrot.slane %v1319_v11, 4  ;;  %3159 = vmatmul.mubr.msk.bf16.vlgmr.msra.gmra.mrb[0].mxu0 %vm528_vm3, %v2902_v12  ;;  %v371_v29 = vsel %vm3549_vm4, %v366_v14, %v370_v56  ;;  %v1312_v33 = vor.u32 %v1311_v19, %v1308_v2  ;;  %v386_v39 = vshll.u32 %v3639_v5, 16  ;;  %v3678_v2 = vld [vmem:[%s3508_s10 + $0x2c] sm:$0x1] }
  0x2e   : > { %v1327_v34 = vrot.slane %v1325_v20, 5  ;;  %3175 = vmatpush3.bf16.msra.mxu0 %v3554_v36  ;;  %v381_v41 = vsel %vm3549_vm4, %v376_v22, %v380_v58  ;;  %v385_v44 = vrot.slane %v383_v26, 4  ;;  %v392_v45 = vshll.u32 %v3649_v21, 16  ;;  %v3688_v22 = vld [vmem:[%s3502_s7 + $0x34] sm:$0xf] }
  0x2f   : > { %v1322_v43 = vor.u32 %v1321_v25, %v1317_v24  ;;  %v2828_v46 = vcombine.low %v371_v29, %v381_v41  ;;  %v1313_v48 = vrot.slane %v1312_v33, 4  ;;  %v388_v49 = vrot.slane %v386_v39, 5  ;;  %3383 = vmatprep.subr.msk.bf16.mxu0 %vm553_vm0, %v3570_v50  ;;  %v3697_v41 = vld [vmem:[%s3502_s7 + $0x38] sm:$0x1] }
  0x30   : > { %v396_v51 = vshrl.u32 %v3649_v21, 16  ;;  %v394_v54 = vrot.slane %v392_v45, 5  ;;  %v402_v56 = vshll.u32 %v3656_v38, 16  ;;  %v1330_v57 = vshrl.u32 %v3660_v40, 16 }
  0x31   : > { %v1323_v36 = vrot.slane %v1322_v43, 4  ;;  %3090 = vmatprep.mubr.msk.bf16.mxu1 %vm528_vm3, %v2828_v46  ;;  %v1318_v58 = vsel %vm3549_vm4, %v1313_v48, %v1317_v24  ;;  %v389_v61 = vor.u32 %v388_v49, %v385_v44  ;;  %v1333_v4 = vshll.u32 %v3660_v40, 16 }
  0x32   : > { %v398_v63 = vrot.slane %v396_v51, 4  ;;  %v404_v9 = vrot.slane %v402_v56, 5  ;;  %v1332_v10 = vrot.slane %v1330_v57, 4  ;;  %v1339_v11 = vshll.u32 %v3668_v53, 16 }
  0x33   : > { %v1328_v50 = vsel %vm3549_vm4, %v1323_v36, %v1327_v34  ;;  %v390_v14 = vrot.slane %v389_v61, 4  ;;  %v1335_v20 = vrot.slane %v1333_v4, 5  ;;  %v1343_v25 = vshrl.u32 %v3668_v53, 16  ;;  %v3709_v4 = vld [vmem:[%s3502_s7 + $0x40] sm:$0xf] }
  0x34   : > { %v2903_v12 = vcombine.low %v1318_v58, %v1328_v50  ;;  %v399_v19 = vor.u32 %v398_v63, %v394_v54  ;;  %v1341_v24 = vrot.slane %v1339_v11, 5  ;;  %v1349_v26 = vshll.u32 %v3678_v2, 16 }
  0x35   : > { %v407_v29 = vshrl.u32 %v3682_v17, 16  ;;  %v395_v33 = vsel %vm3549_vm4, %v390_v14, %v394_v54  ;;  %v1336_v39 = vor.u32 %v1335_v20, %v1332_v10  ;;  %v410_v43 = vshll.u32 %v3682_v17, 16  ;;  %v3705_v54 = vld [vmem:[%s3502_s7 + $0x3c] sm:$0xf] }
  0x36   : > { %3162 = vmatprep.mubr.msk.bf16.mxu0 %vm528_vm3, %v2903_v12  ;;  %v400_v34 = vrot.slane %v399_v19, 4  ;;  %v1345_v44 = vrot.slane %v1343_v25, 4  ;;  %v1351_v45 = vrot.slane %v1349_v26, 5  ;;  %v416_v48 = vshll.u32 %v3688_v22, 16 }
  0x37   : > { %v409_v46 = vrot.slane %v407_v29, 4  ;;  %v1337_v51 = vrot.slane %v1336_v39, 4  ;;  %v412_v36 = vrot.slane %v410_v43, 5  ;;  %v420_v56 = vshrl.u32 %v3688_v22, 16  ;;  %v3724_v29 = vld [vmem:[%s3502_s7 + $0x44] sm:$0x1] }
  0x38   : > { %v405_v49 = vsel %vm3549_vm4, %v400_v34, %v404_v9  ;;  %v1346_v58 = vor.u32 %v1345_v44, %v1341_v24  ;;  %v418_v61 = vrot.slane %v416_v48, 5  ;;  %v426_v63 = vshll.u32 %v3697_v41, 16 }
  0x39   : > { %v2829_v57 = vcombine.low %v395_v33, %v405_v49  ;;  %v1342_v50 = vsel %vm3549_vm4, %v1337_v51, %v1341_v24  ;;  %v413_v10 = vor.u32 %v412_v36, %v409_v46  ;;  %v422_v11 = vrot.slane %v420_v56, 4 }
  0x3a   : > { %v2917_v12 = vrot.slane %v3524_v13, 9  ;;  %v1347_v14 = vrot.slane %v1346_v58, 4  ;;  %v428_v19 = vrot.slane %v426_v63, 5  ;;  %v1625_v20 = vrot.slane %v3528_v15, 5 }
  0x3b   : > { %3091 = vmatmul.mubr.msk.bf16.gmra.mrb[4].mxu1 %vm528_vm3, %v2829_v57  ;;  %v431_v25 = vshrl.u32 %v3705_v54, 16  ;;  %v414_v26 = vrot.slane %v413_v10, 4  ;;  %v423_v24 = vor.u32 %v422_v11, %v418_v61  ;;  %v434_v33 = vshll.u32 %v3705_v54, 16  ;;  %v3741_v57 = vld [vmem:[%s3502_s7 + $0x48] sm:$0xf] }
  0x3c   : > { %v440_v34 = vshll.u32 %v3709_v4, 16  ;;  %v1352_v13 = vsel %vm3549_vm4, %v1347_v14, %v1351_v45  ;;  %v1626_v39 = vsel %vm3715_vm7, %v2917_v12, %v1625_v20  ;;  %v1627_v43 = vrot.slane %v1625_v20, 4  ;;  %v3758_v20 = vld [vmem:[%s3502_s7 + $0x50] sm:$0x1] }
  0x3d   : > { %v433_v15 = vrot.slane %v431_v25, 4  ;;  %v2904_v44 = vcombine.low %v1342_v50, %v1352_v13  ;;  %v419_v46 = vsel %vm3549_vm4, %v414_v26, %v418_v61  ;;  %v424_v48 = vrot.slane %v423_v24, 4  ;;  %v3748_v50 = vld [vmem:[%s3502_s7 + $0x4c] sm:$0xf] }
  0x3e   : > { %v436_v49 = vrot.slane %v434_v33, 5  ;;  %v1629_v51 = vsel %vm3715_vm7, %v1627_v43, %v1628_v62  ;;  %v442_v36 = vrot.slane %v440_v34, 5  ;;  %v444_v45 = vshrl.u32 %v3709_v4, 16  ;;  %v3772_v43 = vld [vmem:[%s3502_s7 + $0x54] sm:$0xf] }
  0x3f   : > { %v450_v56 = vshll.u32 %v3724_v29, 16  ;;  %3163 = vmatmul.mubr.msk.bf16.gmra.mrb[4].mxu0 %vm528_vm3, %v2904_v44  ;;  %v429_v58 = vsel %vm3549_vm4, %v424_v48, %v428_v19  ;;  %v2926_v61 = vcombine.low %v1626_v39, %v1629_v51  ;;  %v2918_v16 = vrot.slane %v3573_v55, 9 }
  0x40   : > { %v437_v63 = vor.u32 %v436_v49, %v433_v15  ;;  %v2830_v62 = vcombine.low %v419_v46, %v429_v58  ;;  %v446_v10 = vrot.slane %v444_v45, 4  ;;  %v1634_v12 = vrot.slane %v1632_v27, 4  ;;  %v3779_v45 = vld [vmem:[%s3502_s7 + $0x58] sm:$0xf] }
  0x41   : > { %v452_v11 = vrot.slane %v450_v56, 5  ;;  %3176 = vmatprep.mubr.msk.bf16.mxu0 %vm528_vm3, %v2926_v61  ;;  %v1633_v19 = vsel %vm3715_vm7, %v2918_v16, %v1632_v27  ;;  %v455_v55 = vshrl.u32 %v3741_v57, 16  ;;  %v458_v25 = vshll.u32 %v3741_v57, 16  ;;  %v3784_v61 = vld [vmem:[%s3502_s7 + $0x5c] sm:$0x1] }
  0x42   : > { %v438_v14 = vrot.slane %v437_v63, 4  ;;  %3094 = vmatprep.mubr.msk.bf16.mxu1 %vm528_vm3, %v2830_v62  ;;  %v447_v26 = vor.u32 %v446_v10, %v442_v36  ;;  %v1636_v24 = vsel %vm3715_vm7, %v1634_v12, %v1635_v35  ;;  %v464_v60 = vshll.u32 %v3748_v50, 16  ;;  %v3790_v16 = vld [vmem:[%s4515_s3 + $0xe] sm:$0x3] }
  0x43   : > { %v468_v33 = vshrl.u32 %v3748_v50, 16  ;;  %v2927_v34 = vcombine.low %v1633_v19, %v1636_v24  ;;  %v457_v13 = vrot.slane %v455_v55, 4  ;;  %v460_v39 = vrot.slane %v458_v25, 5 }
  0x44   : > { %v443_v27 = vsel %vm3549_vm4, %v438_v14, %v442_v36  ;;  %v448_v15 = vrot.slane %v447_v26, 4  ;;  %v466_v44 = vrot.slane %v464_v60, 5  ;;  %v474_v46 = vshll.u32 %v3758_v20, 16  ;;  %v3806_v26 = vld [vmem:[%s3508_s10 + $0x30] sm:$0xf] }
  0x45   : > { %v470_v0 = vrot.slane %v468_v33, 4  ;;  %v461_v35 = vor.u32 %v460_v39, %v457_v13  ;;  %v2919_v48 = vrot.slane %v3614_v37, 9  ;;  %v1639_v49 = vrot.slane %v3628_v52, 5  ;;  %v3816_v13 = vld [vmem:[%s3508_s10 + $0x38] sm:$0x1] }
  0x46   : > { %v1642_v51 = vrot.slane %v3633_v59, 5  ;;  %v453_v36 = vsel %vm3549_vm4, %v448_v15, %v452_v11  ;;  %v476_v58 = vrot.slane %v474_v46, 5  ;;  %v479_v63 = vshrl.u32 %v3772_v43, 16  ;;  %4549 = vst [vmem:[#allocation5_spill] sm:$0xff] %v3816_v13 }
  0x47   : > { %v471_v56 = vor.u32 %v470_v0, %v466_v44  ;;  %v2831_v37 = vcombine.low %v443_v27, %v453_v36  ;;  %3177 = vmatmul.mubr.msk.bf16.vlgmr.msra.gmra.mrb[0].mxu0 %vm528_vm3, %v2927_v34  ;;  %v462_v52 = vrot.slane %v461_v35, 4  ;;  %v1640_v59 = vsel %vm3715_vm7, %v2919_v48, %v1639_v49  ;;  %v3813_v34 = vld [vmem:[%s3508_s10 + $0x34] sm:$0xf] }
  0x48   : > { %v1641_v62 = vrot.slane %v1639_v49, 4  ;;  %3193 = vmatpush3.bf16.msra.mxu0 %v3588_v1  ;;  %v481_v11 = vrot.slane %v479_v63, 4  ;;  %v482_v12 = vshll.u32 %v3772_v43, 16  ;;  %v488_v14 = vshll.u32 %v3779_v45, 16  ;;  %4548 = vst [vmem:[#allocation4_spill] sm:$0xff] %v3813_v34 }
  0x49   : > { %v472_v10 = vrot.slane %v471_v56, 4  ;;  %3095 = vmatmul.mubr.msk.bf16.gmra.mrb[8].mxu1 %vm528_vm3, %v2831_v37  ;;  %v467_v19 = vsel %vm3549_vm4, %v462_v52, %v466_v44  ;;  %v492_v25 = vshrl.u32 %v3779_v45, 16  ;;  %v498_v1 = vshll.u32 %v3784_v61, 16  ;;  %3384 = vmatprep.subr.msk.bf16.mxu0 %vm553_vm0, %v3790_v16 }
  0x4a   : > { %v1643_v55 = vsel %vm3715_vm7, %v1641_v62, %v1642_v51  ;;  %v484_v33 = vrot.slane %v482_v12, 5  ;;  %v490_v27 = vrot.slane %v488_v14, 5  ;;  %v2920_v44 = vrot.slane %v3660_v40, 9  ;;  %v3841_v12 = vld [vmem:[%s3508_s10 + $0x44] sm:$0x1] }
  0x4b   : > { %v477_v24 = vsel %vm3549_vm4, %v472_v10, %v476_v58  ;;  %v2928_v60 = vcombine.low %v1640_v59, %v1643_v55  ;;  %v494_v15 = vrot.slane %v492_v25, 4  ;;  %v1646_v46 = vrot.slane %v3668_v53, 5  ;;  %v3835_v10 = vld [vmem:[%s3508_s10 + $0x3c] sm:$0xf] }
  0x4c   : > { %v2832_v39 = vcombine.low %v467_v19, %v477_v24  ;;  %v485_v0 = vor.u32 %v484_v33, %v481_v11  ;;  %v1649_v35 = vrot.slane %v3678_v2, 5  ;;  %v2921_v48 = vrot.slane %v3806_v26, 9  ;;  %v3838_v11 = vld [vmem:[%s3508_s10 + $0x40] sm:$0xf]  ;;  %v3853_v24 = vld [vmem:[%s3508_s10 + $0x4c] sm:$0xf] }
  0x4d   : > { %3180 = vmatprep.mubr.msk.bf16.mxu0 %vm528_vm3, %v2928_v60  ;;  %v495_v49 = vor.u32 %v494_v15, %v490_v27  ;;  %v500_v51 = vrot.slane %v498_v1, 5  ;;  %v1653_v36 = vrot.slane %v3813_v34, 5  ;;  %v1656_v40 = vrot.slane %v3816_v13, 5  ;;  %v3850_v1 = vld [vmem:[%s3508_s10 + $0x48] sm:$0xf]  ;;  %4551 = vst [vmem:[#allocation7_spill] sm:$0xff] %v3853_v24 }
  0x4e   : > { %3098 = vmatprep.mubr.msk.bf16.mxu1 %vm528_vm3, %v2832_v39  ;;  %v486_v56 = vrot.slane %v485_v0, 4  ;;  %v1647_v58 = vsel %vm3715_vm7, %v2920_v44, %v1646_v46  ;;  %v1648_v63 = vrot.slane %v1646_v46, 4  ;;  %v2842_v55 = vcombine.low %v3511_v6, %v3514_v7  ;;  %4550 = vst [vmem:[#allocation6_spill] sm:$0xff] %v3850_v1 }
  0x4f   : > { %v496_v2 = vrot.slane %v495_v49, 4  ;;  %v1654_v37 = vsel %vm3715_vm7, %v2921_v48, %v1653_v36  ;;  %v1655_v52 = vrot.slane %v1653_v36, 4  ;;  %v2922_v39 = vrot.slane %v3835_v10, 9  ;;  %v3874_v36 = vld [vmem:[%s3508_s10 + $0x54] sm:$0xf] }
  0x50   : > { %v491_v59 = vsel %vm3549_vm4, %v486_v56, %v490_v27  ;;  %v1650_v62 = vsel %vm3715_vm7, %v1648_v63, %v1649_v35  ;;  %v3856_v27 = vld [vmem:[%s3508_s10 + $0x50] sm:$0x1]  ;;  %v1660_v15 = vrot.slane %v3838_v11, 5  ;;  %v1663_v44 = vrot.slane %v3841_v12, 5  ;;  %v3867_v35 = vld [vmem:[%s3508_s10 + $0x58] sm:$0xf] }
  0x51   : > { %v501_v14 = vsel %vm3549_vm4, %v496_v2, %v500_v51  ;;  %v2929_v19 = vcombine.low %v1647_v58, %v1650_v62  ;;  %v1657_v25 = vsel %vm3715_vm7, %v1655_v52, %v1656_v40  ;;  %4552 = vst [vmem:[#allocation8_spill] sm:$0xff] %v3856_v27  ;;  %v2923_v0 = vrot.slane %v3850_v1, 9  ;;  %4553 = vst [vmem:[#allocation9_spill] sm:$0xff] %v3867_v35  ;;  %v3877_v40 = vld [vmem:[%s3508_s10 + $0x5c] sm:$0x1] }
  0x52   : > { %v2833_v60 = vcombine.low %v491_v59, %v501_v14  ;;  %v2930_v33 = vcombine.low %v1654_v37, %v1657_v25  ;;  %v1667_v46 = vrot.slane %v3853_v24, 5  ;;  %v1661_v48 = vsel %vm3715_vm7, %v2922_v39, %v1660_v15  ;;  %4554 = vst [vmem:[#allocation10_spill] sm:$0xff] %v3874_v36  ;;  %4555 = vst [vmem:[#allocation11_spill] sm:$0xff] %v3877_v40  ;;  %v4081_v24 = vld [vmem:[%s3898_s21 + $0x40] sm:$0xf] }
  0x53   : > { %3181 = vmatmul.mubr.msk.bf16.gmra.mrb[4].mxu0 %vm528_vm3, %v2929_v19  ;;  %v1662_v49 = vrot.slane %v1660_v15, 4  ;;  %v1670_v51 = vrot.slane %v3856_v27, 5  ;;  %v2843_v63 = vcombine.low %v3542_v30, %v3545_v31  ;;  %v1674_v37 = vrot.slane %v3867_v35, 5  ;;  %4562 = vst [vmem:[#allocation17_spill] sm:$0xff] %v4081_v24 }
  0x54   : > { %3099 = vmatmul.mubr.msk.bf16.gmra.mrb[12].mxu1 %vm528_vm3, %v2833_v60  ;;  %3184 = vmatprep.mubr.msk.bf16.mxu0 %vm528_vm3, %v2930_v33  ;;  %v1668_v56 = vsel %vm3715_vm7, %v2923_v0, %v1667_v46  ;;  %v1669_v58 = vrot.slane %v1667_v46, 4  ;;  %v2924_v62 = vrot.slane %v3874_v36, 9  ;;  %v1677_v14 = vrot.slane %v3877_v40, 5  ;;  %v2883_v33 = vld [vmem:[%s4515_s3 + $0x6] sm:$0x3] }
  0x55   : > { %3104 = vmatprep.mubr.msk.bf16.mxu1 %vm528_vm3, %v2842_v55  ;;  %v1664_v2 = vsel %vm3715_vm7, %v1662_v49, %v1663_v44  ;;  %v2844_v19 = vcombine.low %v3596_v18, %v3601_v23  ;;  %v1676_v25 = vrot.slane %v1674_v37, 4  ;;  %v936_v60 = vsel %vm553_vm0, %v3624_v47, 0  ;;  %v3913_v44 = vld [vmem:[%s3898_s21] sm:$0xf]  ;;  %v3916_v0 = vld [vmem:[%s3898_s21 + $0x4] sm:$0xf] }
  0x56   : > { %v2931_v52 = vcombine.low %v1661_v48, %v1664_v2  ;;  %v1671_v59 = vsel %vm3715_vm7, %v1669_v58, %v1670_v51  ;;  %v838_v39 = vrot.slane %v3545_v31, 5  ;;  %v1675_v47 = vsel %vm3715_vm7, %v2924_v62, %v1674_v37  ;;  %v3934_v37 = vld [vmem:[%s3898_s21 + $0xc] sm:$0xf]  ;;  %v3948_v62 = vld [vmem:[%s3898_s21 + $0x10] sm:$0xf] }
  0x57   : > { %v2932_v55 = vcombine.low %v1668_v56, %v1671_v59  ;;  %v1678_v15 = vsel %vm3715_vm7, %v1676_v25, %v1677_v14  ;;  %v841_v31 = vrot.slane %v3557_v42, 5  ;;  %v2845_v48 = vcombine.low %v3639_v5, %v3649_v21  ;;  %4556 = vst [vmem:[#allocation12_spill] sm:$0xff] %v3934_v37  ;;  %v4074_v36 = vld [vmem:[%s3898_s21 + $0x3c] sm:$0xf] }
  0x58   : > { %v2933_v46 = vcombine.low %v1675_v47, %v1678_v15  ;;  %v2943_v49 = vcombine.low %v3913_v44, %v3916_v0  ;;  %v2859_v51 = vrot.slane %v3542_v30, 9  ;;  %v840_v56 = vrot.slane %v838_v39, 4  ;;  %4561 = vst [vmem:[#allocation16_spill] sm:$0xff] %v4074_v36 }
  0x59   : > { %v2846_v58 = vcombine.low %v3682_v17, %v3688_v22  ;;  %v3930_v42 = vsel %vm553_vm0, %v2883_v33, 0  ;;  %v2860_v59 = vrot.slane %v3596_v18, 9  ;;  %v2055_v18 = vshll.u32 %v3913_v44, 16 }
  0x5a   : > { %v3942_v30 = vsel %vm3715_vm7, %v840_v56, %v841_v31  ;;  %v2065_v25 = vshrl.u32 %v3916_v0, 16  ;;  %v2861_v47 = vrot.slane %v3639_v5, 9  ;;  %v852_v15 = vrot.slane %v3649_v21, 5 }
  0x5b   : > { %3185 = vmatmul.mubr.msk.bf16.gmra.mrb[8].mxu0 %vm528_vm3, %v2931_v52  ;;  %v3938_v52 = vsel %vm3715_vm7, %v2859_v51, %v838_v39  ;;  %v3963_v39 = vld [vmem:[%s3898_s21 + $0x18] sm:$0xf]  ;;  %v2944_v31 = vcombine.low %v3934_v37, %v3948_v62  ;;  %v2848_v51 = vcombine.low %v3741_v57, %v3748_v50  ;;  %v869_v2 = vrot.slane %v3724_v29, 5 }
  0x5c   : > { %3105 = vmatmul.mubr.msk.bf16.vlgmr.msra.gmra.mrb[0].mxu1 %vm528_vm3, %v2843_v63  ;;  %3188 = vmatprep.mubr.msk.bf16.mxu0 %vm528_vm3, %v2932_v55  ;;  %v2294_v63 = vsel %vm553_vm0, %v3790_v16, 0  ;;  %v2052_v16 = vshrl.u32 %v3913_v44, 16  ;;  %v848_v55 = vrot.slane %v3608_v28, 5  ;;  %4557 = vst [vmem:[#allocation13_spill] sm:$0xff] %v3963_v39  ;;  %v3987_v5 = vsel %vm3715_vm7, %v2861_v47, %v852_v15 }
  0x5d   : > { %3121 = vmatpush3.bf16.msra.mxu1 %v936_v60  ;;  %3108 = vmatprep.mubr.msk.bf16.mxu1 %vm528_vm3, %v2844_v19  ;;  %v845_v19 = vrot.slane %v3601_v23, 5  ;;  %v2847_v60 = vcombine.low %v3705_v54, %v3709_v4  ;;  %v854_v21 = vrot.slane %v852_v15, 4  ;;  %v2089_v15 = vshrl.u32 %v3948_v62, 16 }
  0x5e   : > { %3379 = vmatprep.subr.msk.bf16.mxu1 %vm553_vm0, %v2883_v33  ;;  %v831_v33 = vrot.slane %v3514_v7, 5  ;;  %v2061_v7 = vshll.u32 %v3916_v0, 16  ;;  %v2864_v40 = vrot.slane %v3741_v57, 9  ;;  %v876_v1 = vrot.slane %v3758_v20, 5  ;;  %v4087_v57 = vld [vmem:[%s3898_s21 + $0x48] sm:$0xf] }
  0x5f   : > { %v3967_v23 = vsel %vm3715_vm7, %v2860_v59, %v845_v19  ;;  %v847_v28 = vrot.slane %v845_v19, 4  ;;  %v2862_v59 = vrot.slane %v3682_v17, 9  ;;  %v859_v19 = vrot.slane %v3688_v22, 5  ;;  %4563 = vst [vmem:[#allocation18_spill] sm:$0xff] %v4087_v57 }
  0x60   : > { %v4062_v29 = vrot.slane %v2061_v7, 5  ;;  %v873_v7 = vrot.slane %v3748_v50, 5  ;;  %v4566_v20 = vshll.u32 %v3934_v37, 16  ;;  %v2640_v9 = vlaneseq }
  0x61   : > { %v3983_v56 = vsel %vm3715_vm7, %v847_v28, %v848_v55  ;;  %v2858_v55 = vrot.slane %v3511_v6, 9  ;;  %v833_v28 = vrot.slane %v831_v33, 4  ;;  %v4006_v22 = vsel %vm3715_vm7, %v2862_v59, %v859_v19  ;;  %v4022_v59 = vld [vmem:[%s3898_s21 + $0x24] sm:$0xf] }
  0x62   : > { %v2100_v6 = vshrl.u32 %v3963_v39, 16  ;;  %4558 = vst [vmem:[#allocation14_spill] sm:$0xff] %v4022_v59  ;;  %v4097_v35 = vsel %vm3715_vm7, %v2864_v40, %v873_v7 }
  0x63   : > { %3189 = vmatmul.mubr.msk.bf16.gmra.mrb[12].mxu0 %vm528_vm3, %v2933_v46  ;;  %v866_v46 = vrot.slane %v3709_v4, 5  ;;  %v4046_v4 = vld [vmem:[%s3898_s21 + $0x34] sm:$0xf] }
  0x64   : > { %3109 = vmatmul.mubr.msk.bf16.gmra.mrb[4].mxu1 %vm528_vm3, %v2845_v48  ;;  %3194 = vmatprep.mubr.msk.bf16.mxu0 %vm528_vm3, %v2943_v49  ;;  %v3976_v48 = vld [vmem:[%s3898_s21 + $0x1c] sm:$0xf]  ;;  %v855_v49 = vrot.slane %v3656_v38, 5  ;;  %v862_v38 = vrot.slane %v3697_v41, 5  ;;  %v861_v41 = vrot.slane %v859_v19, 4 }
  0x65   : > { %3112 = vmatprep.mubr.msk.bf16.mxu1 %vm528_vm3, %v2846_v58  ;;  %v2945_v14 = vcombine.low %v3963_v39, %v3976_v48  ;;  %v2103_v58 = vshll.u32 %v3963_v39, 16  ;;  %v4025_v19 = vld [vmem:[%s3898_s21 + $0x28] sm:$0xf] }
  0x66   : > { %v3999_v47 = vsel %vm3715_vm7, %v854_v21, %v855_v49  ;;  %v4015_v49 = vld [vmem:[%s4515_s3 + $0x10] sm:$0x3]  ;;  %v2863_v21 = vrot.slane %v3705_v54, 9  ;;  %v4029_v17 = vsel %vm3715_vm7, %v861_v41, %v862_v38  ;;  %v2113_v54 = vshrl.u32 %v3976_v48, 16 }
  0x67   : > { %v4043_v41 = vld [vmem:[%s3898_s21 + $0x30] sm:$0xf] }
  0x68   : > { %4560 = vst [vmem:[#allocation15_spill] sm:$0xff] %v4043_v41 }
  0x6b   : > { %3195 = vmatmul.mubr.msk.bf16.vlgmr.msra.gmra.mrb[0].mxu0 %vm528_vm3, %v2944_v31  ;;  %v2849_v31 = vcombine.low %v3772_v43, %v3779_v45 }
  0x6c   : > { %3113 = vmatmul.mubr.msk.bf16.gmra.mrb[8].mxu1 %vm528_vm3, %v2847_v60  ;;  %3211 = vmatpush3.bf16.msra.mxu0 %v2294_v63  ;;  %v832_v63 = vsel %vm3715_vm7, %v2858_v55, %v831_v33  ;;  %v4559_v60 = vrot.slane %v3517_v8, 5  ;;  %v4054_v33 = vsel %vm3715_vm7, %v2863_v21, %v866_v46  ;;  %v868_v8 = vrot.slane %v866_v46, 4 }
  0x6d   : > { %3116 = vmatprep.mubr.msk.bf16.mxu1 %vm528_vm3, %v2848_v51  ;;  %3198 = vmatprep.mubr.msk.bf16.mxu0 %vm528_vm3, %v2945_v14  ;;  %v2054_v51 = vrot.slane %v2052_v16, 4  ;;  %v2057_v14 = vrot.slane %v2055_v18, 5  ;;  %v2946_v55 = vcombine.low %v4022_v59, %v4025_v19  ;;  %v2067_v16 = vrot.slane %v2065_v25, 4 }
  0x6e   : > { %v835_v38 = vsel %vm3715_vm7, %v833_v28, %v4559_v60  ;;  %3385 = vmatprep.subr.msk.bf16.mxu0 %vm553_vm0, %v4015_v49  ;;  %v4060_v60 = vld [vmem:[%s3898_s21 + $0x8] sm:$0x1]  ;;  %v2947_v18 = vcombine.low %v4043_v41, %v4046_v4  ;;  %v4068_v21 = vsel %vm3715_vm7, %v868_v8, %v869_v2  ;;  %v2085_v46 = vshll.u32 %v3948_v62, 16 }
  0x6f   : > { %v2867_v27 = vcombine.low %v832_v63, %v835_v38  ;;  %v2058_v2 = vor.u32 %v2057_v14, %v2054_v51  ;;  %v2071_v8 = vshll.u32 %v4060_v60, 16  ;;  %v4090_v63 = vld [vmem:[%s3898_s21 + $0x4c] sm:$0xf]  ;;  %v2068_v38 = vor.u32 %v2067_v16, %v4062_v29 }
  0x70   : > { %4564 = vst [vmem:[#allocation19_spill] sm:$0xff] %v4090_v63  ;;  %v4565_v25 = vshrl.u32 %v3934_v37, 16  ;;  %v875_v51 = vrot.slane %v873_v7, 4  ;;  %v2081_v14 = vrot.slane %v4566_v20, 5  ;;  %v2091_v16 = vrot.slane %v2089_v15, 4 }
  0x71   : > { %v2109_v28 = vshll.u32 %v3976_v48, 16  ;;  %v2105_v7 = vrot.slane %v2103_v58, 5  ;;  %v2949_v15 = vcombine.low %v4087_v57, %v4090_v63  ;;  %v883_v20 = vrot.slane %v3784_v61, 5 }
  0x72   : > { %v2078_v50 = vrot.slane %v4565_v25, 4  ;;  %v4109_v40 = vsel %vm3715_vm7, %v875_v51, %v876_v1  ;;  %v2102_v25 = vrot.slane %v2100_v6, 4  ;;  %v880_v1 = vrot.slane %v3779_v45, 5  ;;  %v4123_v6 = vld [vmem:[%s3898_s21 + $0x20] sm:$0x1] }
  0x73   : > { %3199 = vmatmul.mubr.msk.bf16.gmra.mrb[4].mxu0 %vm528_vm3, %v2946_v55  ;;  %v4103_v55 = vrot.slane %v2085_v46, 5  ;;  %v4117_v46 = vld [vmem:[%s3898_s21 + $0x14] sm:$0x1]  ;;  %v2059_v51 = vrot.slane %v2058_v2, 4  ;;  %v4125_v58 = vrot.slane %v2109_v28, 5  ;;  %v2069_v13 = vrot.slane %v2068_v38, 4 }
  0x74   : > { %3117 = vmatmul.mubr.msk.bf16.gmra.mrb[12].mxu1 %vm528_vm3, %v2849_v31  ;;  %3202 = vmatprep.mubr.msk.bf16.mxu0 %vm528_vm3, %v2947_v18  ;;  %v2865_v31 = vrot.slane %v3772_v43, 9  ;;  %v2948_v18 = vcombine.low %v4074_v36, %v4081_v24  ;;  %v2115_v43 = vrot.slane %v2113_v54, 4  ;;  %v2073_v39 = vrot.slane %v2071_v8, 5 }
  0x75   : > { %3122 = vmatprep.mubr.msk.bf16.mxu1 %vm528_vm3, %v2867_v27  ;;  %v882_v53 = vrot.slane %v880_v1, 4  ;;  %v4136_v27 = vld [vmem:[%s3898_s21 + $0x58] sm:$0xf]  ;;  %v2082_v45 = vor.u32 %v2081_v14, %v2078_v50  ;;  %v2092_v2 = vor.u32 %v2091_v16, %v4103_v55  ;;  %v2095_v28 = vshll.u32 %v4117_v46, 16 }
  0x76   : > { %v4130_v37 = vsel %vm3715_vm7, %v2865_v31, %v880_v1  ;;  %v2106_v34 = vor.u32 %v2105_v7, %v2102_v25  ;;  %v2148_v54 = vshrl.u32 %v4043_v41, 16  ;;  %v2151_v61 = vshll.u32 %v4043_v41, 16 }
  0x77   : > { %v2119_v8 = vshll.u32 %v4123_v6, 16  ;;  %v4145_v38 = vsel %vm3715_vm7, %v882_v53, %v883_v20  ;;  %v2161_v31 = vshrl.u32 %v4046_v4, 16  ;;  %v2116_v50 = vor.u32 %v2115_v43, %v4125_v58 }
  0x78   : > { %v2133_v16 = vshll.u32 %v4025_v19, 16  ;;  %v4568_v25 = vcombine.low %v3938_v52, %v3942_v30  ;;  %v2950_v53 = vcombine.low %v4133_v3, %v4136_v27  ;;  %v2064_v7 = vsel %vm3549_vm4, %v2059_v51, %v4062_v29 }
  0x79   : > { %v2157_v1 = vshll.u32 %v4046_v4, 16  ;;  %v4569_v52 = vcombine.low %v3967_v23, %v3983_v56  ;;  %v2083_v30 = vrot.slane %v2082_v45, 4  ;;  %v2097_v43 = vrot.slane %v2095_v28, 5  ;;  %v4182_v56 = vld [vmem:[%s3898_s21 + $0x2c] sm:$0x1] }
  0x7a   : > { %v2107_v20 = vrot.slane %v2106_v34, 4  ;;  %v4570_v29 = vshrl.u32 %v4022_v59, 16  ;;  %v4571_v14 = vshll.u32 %v4022_v59, 16  ;;  %v2117_v23 = vrot.slane %v2116_v50, 4  ;;  %v4195_v59 = vld [vmem:[%s3898_s21 + $0x38] sm:$0x1] }
  0x7b   : > { %3203 = vmatmul.mubr.msk.bf16.gmra.mrb[8].mxu0 %vm528_vm3, %v2948_v18  ;;  %v2074_v18 = vsel %vm3549_vm4, %v2069_v13, %v2073_v39  ;;  %v4572_v39 = vshrl.u32 %v4025_v19, 16  ;;  %v4184_v34 = vrot.slane %v2133_v16, 5  ;;  %v2150_v45 = vrot.slane %v2148_v54, 4 }
  0x7c   : > { %3123 = vmatmul.mubr.msk.bf16.vlgmr.msra.gmra.mrb[0].mxu1 %vm528_vm3, %v4568_v25  ;;  %3206 = vmatprep.mubr.msk.bf16.mxu0 %vm528_vm3, %v2949_v15  ;;  %v2093_v15 = vrot.slane %v2092_v2, 4  ;;  %v2121_v25 = vrot.slane %v2119_v8, 5  ;;  %v2126_v51 = vrot.slane %v4570_v29, 4  ;;  %v2129_v13 = vrot.slane %v4571_v14, 5 }
  0x7d   : > { %3139 = vmatpush3.bf16.msra.mxu1 %v3930_v42  ;;  %3126 = vmatprep.mubr.msk.bf16.mxu1 %vm528_vm3, %v4569_v52  ;;  %v2139_v41 = vrot.slane %v4572_v39, 4  ;;  %v3419_v42 = vld [vmem:[%s4515_s3 + $0x8] sm:$0x3]  ;;  %v2153_v2 = vrot.slane %v2151_v61, 5  ;;  %v2960_v28 = vcombine.low %v2064_v7, %v2074_v18  ;;  %v2524_v8 = vsel %vm553_vm0, %v4015_v49, 0 }
  0x7e   : > { %3381 = vmatprep.subr.msk.bf16.mxu1 %vm553_vm0, %v3419_v42  ;;  %v4188_v14 = vrot.slane %v2157_v1, 5  ;;  %v2163_v52 = vrot.slane %v2161_v31, 4  ;;  %v2172_v29 = vshrl.u32 %v4074_v36, 16  ;;  %v2175_v39 = vshll.u32 %v4074_v36, 16  ;;  %v4228_v36 = vld [vmem:[%s3898_s21 + $0x44] sm:$0x1] }
  0x7f   : > { %v2185_v42 = vshrl.u32 %v4081_v24, 16  ;;  %v2196_v50 = vshrl.u32 %v4087_v57, 16  ;;  %v2088_v54 = vsel %vm3549_vm4, %v2083_v30, %v4103_v55  ;;  %v2098_v49 = vsel %vm3549_vm4, %v2093_v15, %v2097_v43 }
  0x80   : > { %v2130_v61 = vor.u32 %v2129_v13, %v2126_v51  ;;  %v2143_v31 = vshll.u32 %v4182_v56, 16  ;;  %v2112_v16 = vsel %vm3549_vm4, %v2107_v20, %v4125_v58  ;;  %v2122_v7 = vsel %vm3549_vm4, %v2117_v23, %v2121_v25 }
  0x81   : > { %v2140_v18 = vor.u32 %v2139_v41, %v4184_v34  ;;  %v2154_v1 = vor.u32 %v2153_v2, %v2150_v45  ;;  %v2199_v55 = vshll.u32 %v4087_v57, 16  ;;  %v4573_v30 = vcombine.low %v3987_v5, %v3999_v47 }
  0x82   : > { %v2167_v15 = vshll.u32 %v4195_v59, 16  ;;  %v2181_v58 = vshll.u32 %v4081_v24, 16  ;;  %v2209_v43 = vshrl.u32 %v4090_v63, 16  ;;  %v2220_v41 = vshrl.u32 %v4133_v3, 16 }
  0x83   : > { %3207 = vmatmul.mubr.msk.bf16.gmra.mrb[12].mxu0 %vm528_vm3, %v2950_v53  ;;  %v2164_v53 = vor.u32 %v2163_v52, %v4188_v14  ;;  %v2223_v20 = vshll.u32 %v4133_v3, 16  ;;  %v4574_v5 = vcombine.low %v4006_v22, %v4029_v17  ;;  %v2205_v47 = vshll.u32 %v4090_v63, 16  ;;  %v4233_v22 = vld [vmem:[%s3898_s21 + $0x50] sm:$0x1] }
  0x84   : > { %3127 = vmatmul.mubr.msk.bf16.gmra.mrb[4].mxu1 %vm528_vm3, %v4573_v30  ;;  %3212 = vmatprep.mubr.msk.bf16.mxu0 %vm528_vm3, %v2960_v28  ;;  %v2961_v25 = vcombine.low %v2088_v54, %v2098_v49  ;;  %v2962_v51 = vcombine.low %v2112_v16, %v2122_v7  ;;  %v2131_v13 = vrot.slane %v2130_v61, 4  ;;  %v2145_v23 = vrot.slane %v2143_v31, 5 }
  0x85   : > { %3130 = vmatprep.mubr.msk.bf16.mxu1 %vm528_vm3, %v4574_v5  ;;  %v2141_v45 = vrot.slane %v2140_v18, 4  ;;  %v2155_v2 = vrot.slane %v2154_v1, 4  ;;  %v2174_v28 = vrot.slane %v2172_v29, 4  ;;  %v2177_v52 = vrot.slane %v2175_v39, 5 }
  0x86   : > { %v2165_v30 = vrot.slane %v2164_v53, 4  ;;  %v2169_v57 = vrot.slane %v2167_v15, 5  ;;  %v4230_v3 = vrot.slane %v2181_v58, 5  ;;  %v2187_v17 = vrot.slane %v2185_v42, 4 }
  0x87   : > { %v2198_v5 = vrot.slane %v2196_v50, 4  ;;  %v2201_v24 = vrot.slane %v2199_v55, 5  ;;  %v4235_v63 = vrot.slane %v2205_v47, 5  ;;  %v2211_v54 = vrot.slane %v2209_v43, 4  ;;  %v3420_v47 = vld [vmem:[%s3508_s10] sm:$0xf] }
  0x88   : > { %v2233_v49 = vshrl.u32 %v4136_v27, 16  ;;  %v2136_v29 = vsel %vm3549_vm4, %v2131_v13, %v4184_v34  ;;  %v2229_v39 = vshll.u32 %v4136_v27, 16  ;;  %v2146_v42 = vsel %vm3549_vm4, %v2141_v45, %v2145_v23 }
  0x89   : > { %v2160_v50 = vsel %vm3549_vm4, %v2155_v2, %v4188_v14  ;;  %v2178_v61 = vor.u32 %v2177_v52, %v2174_v28  ;;  %v2191_v31 = vshll.u32 %v4228_v36, 16  ;;  %v4575_v16 = vcombine.low %v4054_v33, %v4068_v21 }
  0x8a   : > { %v2170_v34 = vsel %vm3549_vm4, %v2165_v30, %v2169_v57  ;;  %v2188_v7 = vor.u32 %v2187_v17, %v4230_v3  ;;  %v2215_v18 = vshll.u32 %v4233_v22, 16  ;;  %v2889_v14 = vcombine.low %v3835_v10, %v3838_v11 }
  0x8b   : > { %3213 = vmatmul.mubr.msk.bf16.vlgmr.msra.gmra.mrb[0].mxu0 %vm528_vm3, %v2961_v25  ;;  %v4576_v1 = vcombine.low %v4097_v35, %v4109_v40  ;;  %v2202_v33 = vor.u32 %v2201_v24, %v2198_v5  ;;  %v2212_v21 = vor.u32 %v2211_v54, %v4235_v63  ;;  %v2222_v57 = vrot.slane %v2220_v41, 4  ;;  %v3421_v25 = vld [vmem:[%s3508_s10 + $0x4] sm:$0xf]  ;;  %v4274_v24 = vld [vmem:[%s3898_s21 + $0x5c] sm:$0x1] }
  0x8c   : > { %3131 = vmatmul.mubr.msk.bf16.gmra.mrb[8].mxu1 %vm528_vm3, %v4575_v16  ;;  %3229 = vmatpush3.bf16.msra.mxu0 %v2524_v8  ;;  %v2225_v8 = vrot.slane %v2223_v20, 5  ;;  %v1378_v55 = vshrl.u32 %v3835_v10, 16  ;;  %v1381_v53 = vshll.u32 %v3835_v10, 16  ;;  %v4267_v15 = vrot.slane %v2229_v39, 5 }
  0x8d   : > { %3134 = vmatprep.mubr.msk.bf16.mxu1 %vm528_vm3, %v4576_v1  ;;  %3216 = vmatprep.mubr.msk.bf16.mxu0 %vm528_vm3, %v2962_v51  ;;  %v2235_v58 = vrot.slane %v2233_v49, 4  ;;  %v1387_v43 = vshll.u32 %v3838_v11, 16  ;;  %v1391_v35 = vshrl.u32 %v3838_v11, 16  ;;  %v2963_v40 = vcombine.low %v2136_v29, %v2146_v42  ;;  %v3422_v1 = vld [vmem:[%s3508_s10 + $0xc] sm:$0xf] }
  0x8e   : > { %v2884_v51 = vcombine.low %v3420_v47, %v3421_v25  ;;  %v2964_v13 = vcombine.low %v2160_v50, %v2170_v34  ;;  %v2179_v41 = vrot.slane %v2178_v61, 4  ;;  %v2189_v20 = vrot.slane %v2188_v7, 4 }
  0x8f   : > { %v2193_v23 = vrot.slane %v2191_v31, 5  ;;  %v2203_v45 = vrot.slane %v2202_v33, 4  ;;  %v2213_v2 = vrot.slane %v2212_v21, 4  ;;  %v2217_v28 = vrot.slane %v2215_v18, 5  ;;  %v3423_v33 = vld [vmem:[%s3508_s10 + $0x10] sm:$0xf] }
  0x90   : > { %v2226_v52 = vor.u32 %v2225_v8, %v2222_v57  ;;  %v2236_v30 = vor.u32 %v2235_v58, %v4267_v15  ;;  %v2239_v17 = vshll.u32 %v4274_v24, 16  ;;  %v1380_v5 = vrot.slane %v1378_v55, 4 }
  0x91   : > { %v1383_v54 = vrot.slane %v1381_v53, 5  ;;  %v2419_v49 = vrot.slane %v3916_v0, 5  ;;  %v1389_v29 = vrot.slane %v1387_v43, 5  ;;  %v1397_v39 = vshll.u32 %v3841_v12, 16  ;;  %v3425_v53 = vld [vmem:[%s3508_s10 + $0x1c] sm:$0xf] }
  0x92   : > { %v4577_v42 = vcombine.low %v4130_v37, %v4145_v38  ;;  %v2184_v50 = vsel %vm3549_vm4, %v2179_v41, %v4230_v3  ;;  %v2194_v61 = vsel %vm3549_vm4, %v2189_v20, %v2193_v23  ;;  %v1393_v0 = vrot.slane %v1391_v35, 4  ;;  %v4578_v20 = vld [vmem:[#allocation4_spill] sm:$0xff] }
  0x93   : > { %3217 = vmatmul.mubr.msk.bf16.gmra.mrb[4].mxu0 %vm528_vm3, %v2963_v40  ;;  %v2208_v12 = vsel %vm3549_vm4, %v2203_v45, %v4235_v63  ;;  %v2218_v37 = vsel %vm3549_vm4, %v2213_v2, %v2217_v28  ;;  %v2227_v38 = vrot.slane %v2226_v52, 4  ;;  %v2237_v31 = vrot.slane %v2236_v30, 4  ;;  %v3424_v63 = vld [vmem:[%s3508_s10 + $0x18] sm:$0xf]  ;;  %v4579_v2 = vld [vmem:[#allocation2_spill] sm:$0xff]  ;;  %v4580_v28 = vld [vmem:[#allocation3_spill] sm:$0xff] }
  0x94   : > { %3135 = vmatmul.mubr.msk.bf16.gmra.mrb[12].mxu1 %vm528_vm3, %v4577_v42  ;;  %3220 = vmatprep.mubr.msk.bf16.mxu0 %vm528_vm3, %v2964_v13  ;;  %v2241_v16 = vrot.slane %v2239_v17, 5  ;;  %v2976_v3 = vrot.slane %v3913_v44, 9  ;;  %v2965_v34 = vcombine.low %v2184_v50, %v2194_v61  ;;  %v2421_v7 = vrot.slane %v2419_v49, 4  ;;  %v4581_v30 = vld [vmem:[#allocation12_spill] sm:$0xff] }
  0x95   : > { %3140 = vmatprep.mubr.msk.bf16.mxu1 %vm528_vm3, %v2884_v51  ;;  %v2422_v18 = vrot.slane %v4060_v60, 5  ;;  %v2885_v21 = vcombine.low %v3422_v1, %v3423_v33  ;;  %v2966_v57 = vcombine.low %v2208_v12, %v2218_v37  ;;  %v1384_v8 = vor.u32 %v1383_v54, %v1380_v5 }
  0x96   : > { %v1399_v55 = vrot.slane %v1397_v39, 5  ;;  %v2886_v58 = vcombine.low %v3424_v63, %v3425_v53  ;;  %v2232_v43 = vsel %vm3549_vm4, %v2227_v38, %v4267_v15  ;;  %v1394_v35 = vor.u32 %v1393_v0, %v1389_v29  ;;  %v4582_v39 = vld [vmem:[#allocation13_spill] sm:$0xff]  ;;  %v4585_v53 = vld [vmem:[#allocation6_spill] sm:$0xff] }
  0x97   : > { %v2242_v44 = vsel %vm3549_vm4, %v2237_v31, %v2241_v16  ;;  %v2420_v60 = vsel %vm3715_vm7, %v2976_v3, %v2419_v49  ;;  %v2426_v40 = vrot.slane %v3948_v62, 5  ;;  %v1385_v47 = vrot.slane %v1384_v8, 4 }
  0x98   : > { %v2423_v25 = vsel %vm3715_vm7, %v2421_v7, %v2422_v18  ;;  %v2433_v51 = vrot.slane %v3976_v48, 5  ;;  %v1354_v15 = vshrl.u32 %v3806_v26, 16  ;;  %v1395_v13 = vrot.slane %v1394_v35, 4  ;;  %v3426_v48 = vld [vmem:[%s3508_s10 + $0x24] sm:$0xf]  ;;  %v4583_v18 = vld [vmem:[#allocation5_spill] sm:$0xff] }
  0x99   : > { %v1357_v41 = vshll.u32 %v3806_v26, 16  ;;  %v1363_v23 = vshll.u32 %v4578_v20, 16  ;;  %v1367_v62 = vshrl.u32 %v4578_v20, 16  ;;  %v1390_v45 = vsel %vm3549_vm4, %v1385_v47, %v1389_v29  ;;  %v4586_v35 = vld [vmem:[#allocation7_spill] sm:$0xff] }
  0x9a   : > { %v2887_v52 = vcombine.low %v3426_v48, %v4580_v28  ;;  %v2977_v17 = vrot.slane %v4581_v30, 9  ;;  %v1400_v5 = vsel %vm3549_vm4, %v1395_v13, %v1399_v55  ;;  %v2428_v54 = vrot.slane %v2426_v40, 4  ;;  %v4584_v55 = vld [vmem:[#allocation14_spill] sm:$0xff] }
  0x9b   : > { %3221 = vmatmul.mubr.msk.bf16.gmra.mrb[8].mxu0 %vm528_vm3, %v2965_v34  ;;  %v2429_v49 = vrot.slane %v4117_v46, 5  ;;  %v2978_v42 = vrot.slane %v4582_v39, 9  ;;  %v4332_v50 = vcombine.low %v1390_v45, %v1400_v5  ;;  %v2967_v29 = vcombine.low %v2232_v43, %v2242_v44  ;;  %v4590_v5 = vld [vmem:[#allocation17_spill] sm:$0xff] }
  0x9c   : > { %3141 = vmatmul.mubr.msk.bf16.vlgmr.msra.gmra.mrb[0].mxu1 %vm528_vm3, %v2885_v21  ;;  %3224 = vmatprep.mubr.msk.bf16.mxu0 %vm528_vm3, %v2966_v57  ;;  %v2985_v61 = vcombine.low %v2420_v60, %v2423_v25  ;;  %v2435_v0 = vrot.slane %v2433_v51, 4  ;;  %v2436_v12 = vrot.slane %v4123_v6, 5  ;;  %v1356_v37 = vrot.slane %v1354_v15, 4 }
  0x9d   : > { %3247 = vmatpush3.bf16.msra.mxu1 %v4579_v2  ;;  %3144 = vmatprep.mubr.msk.bf16.mxu1 %vm528_vm3, %v2886_v58  ;;  %v1359_v38 = vrot.slane %v1357_v41, 5  ;;  %v1365_v31 = vrot.slane %v1363_v23, 5  ;;  %v1369_v16 = vrot.slane %v1367_v62, 4  ;;  %v2888_v3 = vcombine.low %v3806_v26, %v4578_v20  ;;  %v4588_v23 = vld [vmem:[#allocation9_spill] sm:$0xff]  ;;  %v4589_v62 = vld [vmem:[#allocation10_spill] sm:$0xff] }
  0x9e   : > { %v2427_v34 = vsel %vm3715_vm7, %v2977_v17, %v2426_v40  ;;  %v2430_v46 = vsel %vm3715_vm7, %v2428_v54, %v2429_v49  ;;  %v2434_v7 = vsel %vm3715_vm7, %v2978_v42, %v2433_v51  ;;  %v2440_v6 = vrot.slane %v4025_v19, 5  ;;  %v4587_v51 = vld [vmem:[#allocation15_spill] sm:$0xff] }
  0x9f   : > { %v1373_v1 = vshll.u32 %v4583_v18, 16  ;;  %v2437_v26 = vsel %vm3715_vm7, %v2435_v0, %v2436_v12  ;;  %v1360_v33 = vor.u32 %v1359_v38, %v1356_v37  ;;  %v1370_v21 = vor.u32 %v1369_v16, %v1365_v31 }
  0xa0   : > { %v2447_v57 = vrot.slane %v4046_v4, 5  ;;  %v2986_v8 = vcombine.low %v2427_v34, %v2430_v46  ;;  %v2979_v63 = vrot.slane %v4584_v55, 9  ;;  %v2443_v19 = vrot.slane %v4182_v56, 5  ;;  %v4593_v34 = vld [vmem:[#allocation16_spill] sm:$0xff] }
  0xa1   : > { %v1402_v58 = vshrl.u32 %v4585_v53, 16  ;;  %v1405_v43 = vshll.u32 %v4585_v53, 16  ;;  %v1411_v44 = vshll.u32 %v4586_v35, 16  ;;  %v1415_v60 = vshrl.u32 %v4586_v35, 16 }
  0xa2   : > { %v2987_v40 = vcombine.low %v2434_v7, %v2437_v26  ;;  %v2442_v47 = vrot.slane %v2440_v6, 4  ;;  %v1375_v25 = vrot.slane %v1373_v1, 5  ;;  %v2980_v4 = vrot.slane %v4587_v51, 9  ;;  %v4594_v1 = vld [vmem:[#allocation18_spill] sm:$0xff] }
  0xa3   : > { %3225 = vmatmul.mubr.msk.bf16.gmra.mrb[12].mxu0 %vm528_vm3, %v2967_v29  ;;  %v1361_v15 = vrot.slane %v1360_v33, 4  ;;  %v1371_v13 = vrot.slane %v1370_v21, 4  ;;  %v2449_v41 = vrot.slane %v2447_v57, 4  ;;  %v2450_v20 = vrot.slane %v4195_v59, 5  ;;  %v4591_v29 = vld [vmem:[#allocation19_spill] sm:$0xff] }
  0xa4   : > { %3145 = vmatmul.mubr.msk.bf16.gmra.mrb[4].mxu1 %vm528_vm3, %v2887_v52  ;;  %3230 = vmatprep.mubr.msk.bf16.mxu0 %vm528_vm3, %v2985_v61  ;;  %v2890_v56 = vcombine.low %v4585_v53, %v4586_v35  ;;  %v2891_v45 = vcombine.low %v4589_v62, %v4588_v23  ;;  %v1404_v2 = vrot.slane %v1402_v58, 4  ;;  %v1407_v48 = vrot.slane %v1405_v43, 5 }
  0xa5   : > { %3148 = vmatprep.mubr.msk.bf16.mxu1 %vm528_vm3, %v2888_v3  ;;  %v1413_v28 = vrot.slane %v1411_v44, 5  ;;  %v1417_v52 = vrot.slane %v1415_v60, 4  ;;  %v2441_v30 = vsel %vm3715_vm7, %v2979_v63, %v2440_v6  ;;  %v2444_v17 = vsel %vm3715_vm7, %v2442_v47, %v2443_v19  ;;  %v4595_v47 = vld [vmem:[#allocation11_spill] sm:$0xff] }
  0xa6   : > { %v2448_v59 = vsel %vm3715_vm7, %v2980_v4, %v2447_v57  ;;  %v2454_v54 = vrot.slane %v4590_v5, 5  ;;  %v1366_v49 = vsel %vm3549_vm4, %v1361_v15, %v1365_v31  ;;  %v1376_v39 = vsel %vm3549_vm4, %v1371_v13, %v1375_v25  ;;  %v4592_v31 = vld [vmem:[#allocation8_spill] sm:$0xff] }
  0xa7   : > { %v2451_v42 = vsel %vm3715_vm7, %v2449_v41, %v2450_v20  ;;  %v2461_v61 = vrot.slane %v4591_v29, 5  ;;  %v1426_v0 = vshrl.u32 %v4589_v62, 16  ;;  %v1429_v10 = vshll.u32 %v4589_v62, 16  ;;  %v4596_v41 = vld [vmem:[#allocation20_spill] sm:$0xff] }
  0xa8   : > { %v1435_v11 = vshll.u32 %v4588_v23, 16  ;;  %v2988_v12 = vcombine.low %v2441_v30, %v2444_v17  ;;  %v1408_v37 = vor.u32 %v1407_v48, %v1404_v2  ;;  %v1418_v38 = vor.u32 %v1417_v52, %v1413_v28 }
  0xa9   : > { %v1421_v16 = vshll.u32 %v4592_v31, 16  ;;  %v2989_v3 = vcombine.low %v2448_v59, %v2451_v42  ;;  %v2981_v46 = vrot.slane %v4593_v34, 9  ;;  %v2456_v7 = vrot.slane %v2454_v54, 4 }
  0xaa   : > { %v2457_v6 = vrot.slane %v4228_v36, 5  ;;  %v2905_v18 = vcombine.low %v1366_v49, %v1376_v39  ;;  %v2982_v26 = vrot.slane %v4594_v1, 9  ;;  %v2463_v33 = vrot.slane %v2461_v61, 4 }
  0xab   : > { %3231 = vmatmul.mubr.msk.bf16.vlgmr.msra.gmra.mrb[0].mxu0 %vm528_vm3, %v2986_v8  ;;  %v2464_v21 = vrot.slane %v4233_v22, 5  ;;  %v1428_v57 = vrot.slane %v1426_v0, 4  ;;  %v1431_v8 = vrot.slane %v1429_v10, 5  ;;  %v1437_v55 = vrot.slane %v1435_v11, 5  ;;  %v2639_v0 = vld [vmem:[%s4516_s4] sm:$0x7] }
  0xac   : > { %3149 = vmatmul.mubr.msk.bf16.gmra.mrb[8].mxu1 %vm528_vm3, %v2889_v14  ;;  %3234 = vmatprep.mubr.msk.bf16.mxu0 %vm528_vm3, %v2987_v40  ;;  %v1439_v14 = vshrl.u32 %v4588_v23, 16  ;;  %v1409_v19 = vrot.slane %v1408_v37, 4  ;;  %v1419_v53 = vrot.slane %v1418_v38, 4  ;;  %v1423_v58 = vrot.slane %v1421_v16, 5 }
  0xad   : > { %3152 = vmatprep.mubr.msk.bf16.mxu1 %vm528_vm3, %v2890_v56  ;;  %v2455_v36 = vsel %vm3715_vm7, %v2981_v46, %v2454_v54  ;;  %v2458_v43 = vsel %vm3715_vm7, %v2456_v7, %v2457_v6  ;;  %v2462_v22 = vsel %vm3715_vm7, %v2982_v26, %v2461_v61  ;;  %v2468_v35 = vrot.slane %v4136_v27, 5 }
  0xae   : > { %v1441_v63 = vrot.slane %v1439_v14, 4  ;;  %v2465_v44 = vsel %vm3715_vm7, %v2463_v33, %v2464_v21  ;;  %v1432_v60 = vor.u32 %v1431_v8, %v1428_v57  ;;  %v1445_v25 = vshll.u32 %v4595_v47, 16 }
  0xaf   : > { %v1414_v51 = vsel %vm3549_vm4, %v1409_v19, %v1413_v28  ;;  %v1424_v4 = vsel %vm3549_vm4, %v1419_v53, %v1423_v58  ;;  %v2990_v15 = vcombine.low %v2455_v36, %v2458_v43  ;;  %v2991_v13 = vcombine.low %v2462_v22, %v2465_v44 }
  0xb0   : > { %v1442_v40 = vor.u32 %v1441_v63, %v1437_v55  ;;  %v2983_v20 = vrot.slane %v4596_v41, 9  ;;  %v2470_v27 = vrot.slane %v2468_v35, 4  ;;  %v2471_v56 = vrot.slane %v4274_v24, 5 }
  0xb1   : > { %v2907_v23 = vcombine.low %v1414_v51, %v1424_v4  ;;  %v1433_v62 = vrot.slane %v1432_v60, 4  ;;  %v1447_v2 = vrot.slane %v1445_v25, 5  ;;  %v2641_v49 = vshrl.u32 %v2640_v9, 7 }
  0xb2   : > { %v2469_v48 = vsel %vm3715_vm7, %v2983_v20, %v2468_v35  ;;  %v2472_v28 = vsel %vm3715_vm7, %v2470_v27, %v2471_v56 }
  0xb3   : > { %3235 = vmatmul.mubr.msk.bf16.gmra.mrb[4].mxu0 %vm528_vm3, %v2988_v12  ;;  %v1438_v24 = vsel %vm3549_vm4, %v1433_v62, %v1437_v55  ;;  %v2992_v30 = vcombine.low %v2469_v48, %v2472_v28  ;;  %v2642_v61 = vsub.s32 0, %v2641_v49  ;;  %v2662_v10 = vsub.s32 1, %v2641_v49 }
  0xb4   : > { %3153 = vmatmul.mubr.msk.bf16.gmra.mrb[12].mxu1 %vm528_vm3, %v2891_v45  ;;  %3238 = vmatprep.mubr.msk.bf16.mxu0 %vm528_vm3, %v2989_v3  ;;  %v1443_v45 = vrot.slane %v1442_v40, 4  ;;  %v2682_v14 = vsub.s32 2, %v2641_v49 }
  0xb5   : > { %3166 = vmatprep.mubr.msk.bf16.mxu1 %vm528_vm3, %v2905_v18  ;;  %v4434_v11 = vrot.slane %v2639_v0, %v2642_v61  ;;  %v4436_v38 = vrot.slane %v2639_v0, %v2662_v10 }
  0xb6   : > { %v1448_v52 = vsel %vm3549_vm4, %v1443_v45, %v1447_v2  ;;  %v4439_v46 = vrot.slane %v2639_v0, %v2682_v14 }
  0xb7   : > { %v2908_v17 = vcombine.low %v1438_v24, %v1448_v52 }
  0xbb   : > { %3239 = vmatmul.mubr.msk.bf16.gmra.mrb[8].mxu0 %vm528_vm3, %v2990_v15 }
  0xbc   : > { %3167 = vmatmul.mubr.msk.bf16.vlgmr.msra.gmra.mrb[8].mxu1 %vm528_vm3, %v4332_v50  ;;  %3242 = vmatprep.mubr.msk.bf16.mxu0 %vm528_vm3, %v2991_v13 }
  0xbd   : > { %3170 = vmatprep.mubr.msk.bf16.mxu1 %vm528_vm3, %v2907_v23 }
  0xc3   : > { %3243 = vmatmul.mubr.msk.bf16.gmra.mrb[12].mxu0 %vm528_vm3, %v2992_v30 }
  0xc4   : > { %3171 = vmatmul.mubr.msk.bf16.gmra.mrb[12].mxu1 %vm528_vm3, %v2908_v17 }
 0x16f   : > { %v3142_v50 = vpop.f32.mrb[0].mxu1 }
 0x170   : > { %v1178_v59 = vpop.f32.mrb[1].mxu1 }
 0x171   : > { %v3143_v5 = vpop.f32.mrb[2].mxu1 }
 0x172   : > { %v1181_v54 = vpop.f32.mrb[3].mxu1 }
 0x177   : > { %v3146_v39 = vpop.f32.mrb[4].mxu1 }
 0x178   : > { %v1194_v42 = vpop.f32.mrb[5].mxu1 }
 0x179   : > { %v3147_v29 = vpop.f32.mrb[6].mxu1 }
 0x17a   : > { %v1197_v32 = vpop.f32.mrb[7].mxu1 }
 0x17e   : > { %v3232_v12 = vpop.f32.mrb[0].mxu0 }
 0x17f   : > { %v3248_v37 = vadd.f32 %v3232_v12, %v3142_v50  ;;  %v2560_v31 = vpop.f32.mrb[1].mxu0 }
 0x180   : > { %v3249_v16 = vadd.f32 %v2560_v31, %v1178_v59  ;;  %v3233_v3 = vpop.f32.mrb[2].mxu0 }
 0x181   : > { %v2646_v34 = vadd.f32 %v3248_v37, %v4434_v11  ;;  %v3250_v7 = vadd.f32 %v3233_v3, %v3143_v5  ;;  %v2563_v6 = vpop.f32.mrb[3].mxu0 }
 0x182   : > { %v2644_v18 = vadd.f32 %v3249_v16, %v4434_v11  ;;  %v3251_v1 = vadd.f32 %v2563_v6, %v1181_v54 }
 0x183   : > { %v2666_v26 = vmul.f32 %v4436_v38, %v2646_v34  ;;  %v2647_v33 = vadd.f32 %v3250_v7, %v4434_v11 }
 0x184   : > { %v2664_v21 = vmul.f32 %v4436_v38, %v2644_v18  ;;  %v2645_v57 = vadd.f32 %v3251_v1, %v4434_v11 }
 0x185   : > { %v2686_v8 = vadd.f32 %v4439_v46, %v2666_v26  ;;  %v2667_v55 = vmul.f32 %v4436_v38, %v2647_v33 }
 0x186   : > { %v2684_v63 = vadd.f32 %v4439_v46, %v2664_v21  ;;  %v2665_v19 = vmul.f32 %v4436_v38, %v2645_v57  ;;  %v3236_v53 = vpop.f32.mrb[4].mxu0 }
 0x187   : > { %v2702_v58 = vmax.f32 %v2686_v8, 0.0  ;;  %v2687_v36 = vadd.f32 %v4439_v46, %v2667_v55  ;;  %v3252_v43 = vadd.f32 %v3236_v53, %v3146_v39  ;;  %v2576_v22 = vpop.f32.mrb[5].mxu0 }
 0x188   : > { %v2700_v35 = vmax.f32 %v2684_v63, 0.0  ;;  %v2685_v44 = vadd.f32 %v4439_v46, %v2665_v19  ;;  %v3253_v60 = vadd.f32 %v2576_v22, %v1194_v42  ;;  %v3237_v40 = vpop.f32.mrb[6].mxu0 }
 0x189   : > { %2718 = vst [vmem:[%s4451_s8 + $0x10] sm:$0xff] %v2702_v58  ;;  %v2703_v47 = vmax.f32 %v2687_v36, 0.0  ;;  %v2650_v25 = vadd.f32 %v3252_v43, %v4434_v11  ;;  %v3254_v51 = vadd.f32 %v3237_v40, %v3147_v29  ;;  %v2579_v4 = vpop.f32.mrb[7].mxu0 }
 0x18a   : > { %2716 = vst [vmem:[%s4451_s8] sm:$0xff] %v2700_v35  ;;  %v2701_v15 = vmax.f32 %v2685_v44, 0.0  ;;  %v2648_v13 = vadd.f32 %v3253_v60, %v4434_v11  ;;  %v3255_v41 = vadd.f32 %v2579_v4, %v1197_v32 }
 0x18b   : > { %2719 = vst [vmem:[%s4451_s8 + $0x18] sm:$0xff] %v2703_v47  ;;  %v2670_v20 = vmul.f32 %v4436_v38, %v2650_v25  ;;  %v2651_v27 = vadd.f32 %v3254_v51, %v4434_v11 }
 0x18c   : > { %2717 = vst [vmem:[%s4451_s8 + $0x8] sm:$0xff] %v2701_v15  ;;  %v2668_v56 = vmul.f32 %v4436_v38, %v2648_v13  ;;  %v2649_v23 = vadd.f32 %v3255_v41, %v4434_v11 }
 0x18d   : > { %v2690_v62 = vadd.f32 %v4439_v46, %v2670_v20  ;;  %v2671_v45 = vmul.f32 %v4436_v38, %v2651_v27 }
 0x18e   : > { %v2688_v2 = vadd.f32 %v4439_v46, %v2668_v56  ;;  %v2669_v48 = vmul.f32 %v4436_v38, %v2649_v23  ;;  %v3240_v28 = vpop.f32.mrb[8].mxu0 }
 0x18f   : > { %v2706_v24 = vmax.f32 %v2690_v62, 0.0  ;;  %v2691_v52 = vadd.f32 %v4439_v46, %v2671_v45  ;;  %v3168_v30 = vpop.f32.mrb[8].mxu1  ;;  %v2592_v17 = vpop.f32.mrb[9].mxu0 }
 0x190   : > { %v2704_v50 = vmax.f32 %v2688_v2, 0.0  ;;  %v2689_v59 = vadd.f32 %v4439_v46, %v2669_v48  ;;  %v3256_v5 = vadd.f32 %v3240_v28, %v3168_v30  ;;  %v1568_v9 = vpop.f32.mrb[9].mxu1  ;;  %v3241_v54 = vpop.f32.mrb[10].mxu0 }
 0x191   : > { %2722 = vst [vmem:[%s4451_s8 + $0x30] sm:$0xff] %v2706_v24  ;;  %v2707_v49 = vmax.f32 %v2691_v52, 0.0  ;;  %v3257_v39 = vadd.f32 %v2592_v17, %v1568_v9  ;;  %v3169_v42 = vpop.f32.mrb[10].mxu1  ;;  %v2595_v29 = vpop.f32.mrb[11].mxu0 }
 0x192   : > { %2720 = vst [vmem:[%s4451_s8 + $0x20] sm:$0xff] %v2704_v50  ;;  %v2705_v61 = vmax.f32 %v2689_v59, 0.0  ;;  %v2654_v32 = vadd.f32 %v3256_v5, %v4434_v11  ;;  %v3258_v0 = vadd.f32 %v3241_v54, %v3169_v42  ;;  %v1571_v10 = vpop.f32.mrb[11].mxu1 }
 0x193   : > { %2723 = vst [vmem:[%s4451_s8 + $0x38] sm:$0xff] %v2707_v49  ;;  %v2652_v14 = vadd.f32 %v3257_v39, %v4434_v11  ;;  %v3259_v12 = vadd.f32 %v2595_v29, %v1571_v10 }
 0x194   : > { %2721 = vst [vmem:[%s4451_s8 + $0x28] sm:$0xff] %v2705_v61  ;;  %v2674_v37 = vmul.f32 %v4436_v38, %v2654_v32  ;;  %v2655_v31 = vadd.f32 %v3258_v0, %v4434_v11 }
 0x195   : > { %v2672_v16 = vmul.f32 %v4436_v38, %v2652_v14  ;;  %v2653_v3 = vadd.f32 %v3259_v12, %v4434_v11 }
 0x196   : > { %v2694_v34 = vadd.f32 %v4439_v46, %v2674_v37  ;;  %v2675_v7 = vmul.f32 %v4436_v38, %v2655_v31  ;;  %v3244_v6 = vpop.f32.mrb[12].mxu0 }
 0x197   : > { %v2692_v18 = vadd.f32 %v4439_v46, %v2672_v16  ;;  %v2673_v1 = vmul.f32 %v4436_v38, %v2653_v3  ;;  %v3172_v26 = vpop.f32.mrb[12].mxu1  ;;  %v2608_v33 = vpop.f32.mrb[13].mxu0 }
 0x198   : > { %v2710_v21 = vmax.f32 %v2694_v34, 0.0  ;;  %v2695_v57 = vadd.f32 %v4439_v46, %v2675_v7  ;;  %v3260_v8 = vadd.f32 %v3244_v6, %v3172_v26  ;;  %v1584_v55 = vpop.f32.mrb[13].mxu1  ;;  %v3245_v63 = vpop.f32.mrb[14].mxu0 }
 0x199   : > { %v2708_v19 = vmax.f32 %v2692_v18, 0.0  ;;  %v2693_v53 = vadd.f32 %v4439_v46, %v2673_v1  ;;  %v3261_v58 = vadd.f32 %v2608_v33, %v1584_v55  ;;  %v3173_v36 = vpop.f32.mrb[14].mxu1  ;;  %v2611_v43 = vpop.f32.mrb[15].mxu0 }
 0x19a   : > { %2726 = vst [vmem:[%s4451_s8 + $0x50] sm:$0xff] %v2710_v21  ;;  %v2711_v22 = vmax.f32 %v2695_v57, 0.0  ;;  %v2658_v35 = vadd.f32 %v3260_v8, %v4434_v11  ;;  %v3262_v44 = vadd.f32 %v3245_v63, %v3173_v36  ;;  %v1587_v60 = vpop.f32.mrb[15].mxu1 }
 0x19b   : > { %2724 = vst [vmem:[%s4451_s8 + $0x40] sm:$0xff] %v2708_v19  ;;  %v2709_v40 = vmax.f32 %v2693_v53, 0.0  ;;  %v2656_v47 = vadd.f32 %v3261_v58, %v4434_v11  ;;  %v3263_v25 = vadd.f32 %v2611_v43, %v1587_v60 }
 0x19c   : > { %2727 = vst [vmem:[%s4451_s8 + $0x58] sm:$0xff] %v2711_v22  ;;  %v2678_v51 = vmul.f32 %v4436_v38, %v2658_v35  ;;  %v2659_v4 = vadd.f32 %v3262_v44, %v4434_v11 }
 0x19d   : > { %2725 = vst [vmem:[%s4451_s8 + $0x48] sm:$0xff] %v2709_v40  ;;  %v2676_v15 = vmul.f32 %v4436_v38, %v2656_v47  ;;  %v2657_v13 = vadd.f32 %v3263_v25, %v4434_v11 }
 0x19e   : > { %v2698_v41 = vadd.f32 %v4439_v46, %v2678_v51  ;;  %v2679_v20 = vmul.f32 %v4436_v38, %v2659_v4 }
 0x19f   : > { %v2696_v27 = vadd.f32 %v4439_v46, %v2676_v15  ;;  %v2677_v56 = vmul.f32 %v4436_v38, %v2657_v13 }
 0x1a0   : > { %v2714_v23 = vmax.f32 %v2698_v41, 0.0  ;;  %v2699_v62 = vadd.f32 %v4439_v46, %v2679_v20 }
 0x1a1   : > { %v2712_v45 = vmax.f32 %v2696_v27, 0.0  ;;  %v2697_v2 = vadd.f32 %v4439_v46, %v2677_v56 }
 0x1a2   : > { %2730 = vst [vmem:[%s4451_s8 + $0x70] sm:$0xff] %v2714_v23  ;;  %v2715_v48 = vmax.f32 %v2699_v62, 0.0 }
 0x1a3   : > { %2728 = vst [vmem:[%s4451_s8 + $0x60] sm:$0xff] %v2712_v45  ;;  %v2713_v28 = vmax.f32 %v2697_v2, 0.0 }
 0x1a4   : > { %2731 = vst [vmem:[%s4451_s8 + $0x78] sm:$0xff] %v2715_v48 }
 0x1a5   : > { %2729 = vst [vmem:[%s4451_s8 + $0x68] sm:$0xff] %v2713_v28 }
 0x1a6 PF: > { %s15_s18 = sadd.s32 1, %s3433_s18  }
 0x1a7   : > { %p12_p5 = scmp.ge.s32.totalorder %s15_s18, 6  }
 0x1a9   :  { %14 = sbr.rel (!%p12_p5) target bundleno = 1 (0x1), region = 84 }

// kernel: unet_encoder_block.2
= control target key start
LH: loop header
LB: loop body
LE: loop exit
PB: predicated region body
PF: predicated region fallthrough
CT: control target
= control target key end

     0   :  { %s3420_s18 = smov 0   ;;  %s4401_s0 = inlined_call_operand.vmem [shape: bf16[32,18,4], index: 0, kind: input, shape index: {}]   ;;  %s4402_s1 = inlined_call_operand.vmem [shape: bf16[32,18,4], index: 1, kind: input, shape index: {}]   ;;  %s4403_s2 = inlined_call_operand.vmem [shape: bf16[32,18,4], index: 2, kind: input, shape index: {}]   ;;  %s4404_s3 = inlined_call_operand.vmem [shape: bf16[9,4,128], index: 3, kind: input, shape index: {}]   ;;  %s4405_s4 = inlined_call_operand.vmem [shape: f32[1,128], index: 4, kind: input, shape index: {}]   ;;  %s4406_s5 = inlined_call_operand.vmem [shape: f32[2,128], index: 5, kind: output, shape index: {}]  }
   0x1 LB: > { %s2766_s19 = sadd.s32 4294967295, %s3387_s18   ;;  %p2769_p0 = scmp.ge.s32.totalorder %s3387_s18, 1  ;;  %s3387_s18 = sphi %s3420_s18, %s15_s18  }
   0x2   : > { %p208_p1 = scmp.lt.s32.totalorder %s3387_s18, 5 }
   0x4   : > { %p209_p2 = pnand %p2769_p0, %p208_p1 }
   0x6   : > { %212 = sbr.rel (%p209_p2) target bundleno = 462 (0x1ce), region = 40 }
   0xd   : > { %v2776_v0 = vld [vmem:[%s4404_s3 + $0x2] sm:$0x3]  ;;  %vm537_vm0 = vcmask 1041408   ;;  %v2851_v1 = vld [vmem:[%s4404_s3 + $0x8] sm:$0x3]  ;;  %s2770_s24 = sshll.u32 %s2766_s19, 3 }
   0xe   : > { %3329 = vmatprep.subr.msk.bf16.mxu1 %vm537_vm0, %v2776_v0  ;;  %3333 = vmatprep.subr.msk.bf16.mxu0 %vm537_vm0, %v2851_v1  ;;  %v539_v2 = vsel %vm537_vm0, %v2776_v0, 0  ;;  %v3440_v3 = vsel %vm537_vm0, %v2851_v1, 0  ;;  %p245_p3 = scmp.lt.s32.totalorder %s2770_s24, 31  ;;  %v290_v4 = vld [vmem:[%s4404_s3] sm:$0x3]  ;;  %vm512_vm3 = vcmask 31744  }
   0xf   : > { %4431 = vst [vmem:[#allocation2_spill] sm:$0xff] %v3440_v3  ;;  %3038 = vmatpush3.bf16.msra.mxu1 %v539_v2  ;;  %3110 = vmatpush3.bf16.msra.mxu0 %v3440_v3  ;;  %v2876_v5 = vld [vmem:[%s4404_s3 + $0xa] sm:$0x3]  ;;  %vm291_vm1 = vsmask.f32 3328  ;;  %v3489_v17 = vsel %vm537_vm0, %v290_v4, 0 }
  0x10   : > { %s4487_s24 = smov (!%p245_p3, %s2770_s24), 31  ;;  %3330 = vmatprep.subr.msk.bf16.mxu1 %vm537_vm0, %v290_v4  ;;  %3335 = vmatprep.subr.msk.bf16.mxu0 %vm537_vm0, %v2876_v5  ;;  %vm292_vm2 = vsmask.f32 7440  ;;  %v3509_v36 = vsel %vm537_vm0, %v2876_v5, 0  ;;  %v3525_v50 = vld [vmem:[%s4404_s3 + $0xc] sm:$0x3] }
  0x11   : > { %s3451_s29 = smul.u32 12, %s4487_s24  ;;  %vm3504_vm4 = vmor %vm291_vm1, %vm292_vm2  ;;  %v3543_v1 = vsel %vm537_vm0, %v3525_v50, 0  ;;  %vm810_vm5 = vcmask 1042432   ;;  %vm811_vm6 = vcmask 1046532   ;;  %v2952_v32 = vld [vmem:[%s4405_s4] ss:$0 sm:$0xff] }
  0x12   : > { %vm3670_vm7 = vmor %vm810_vm5, %vm811_vm6  ;;  %p2953_p4 = scmp.ne.s32.totalorder %s2766_s19, 0 }
  0x13   : > { %s3457_s7 = scalar_lea.vmem %s4401_s0, %s3451_s29  ;;  %s3463_s10 = scalar_lea.vmem %s4402_s1, %s3451_s29 }
  0x14   : > { %v3466_v6 = vld [vmem:[%s3457_s7] sm:$0xf]  ;;  %v3469_v7 = vld [vmem:[%s3457_s7 + $0x4] sm:$0xf]  ;;  %v3472_v8 = vld [vmem:[%s3457_s7 + $0x8] sm:$0x1]  ;;  %s3853_s21 = scalar_lea.vmem %s4403_s2, %s3451_s29 }
  0x15   : > { %v295_v9 = vshrl.u32 %v3466_v6, 16  ;;  %v298_v10 = vshll.u32 %v3466_v6, 16  ;;  %v304_v11 = vshll.u32 %v3469_v7, 16  ;;  %v308_v12 = vshrl.u32 %v3469_v7, 16  ;;  %v3479_v13 = vld [vmem:[%s3463_s10] sm:$0xf] }
  0x16   : > { %v314_v14 = vshll.u32 %v3472_v8, 16  ;;  %v3483_v15 = vld [vmem:[%s3463_s10 + $0x4] sm:$0xf]  ;;  %v3486_v16 = vld [vmem:[%s3463_s10 + $0x8] sm:$0x1]  ;;  %v1242_v23 = vshrl.u32 %v3479_v13, 16 }
  0x17   : > { %v297_v18 = vrot.slane %v295_v9, 4  ;;  %v300_v19 = vrot.slane %v298_v10, 5  ;;  %v306_v20 = vrot.slane %v304_v11, 5  ;;  %v310_v21 = vrot.slane %v308_v12, 4  ;;  %v3497_v30 = vld [vmem:[%s3457_s7 + $0xc] sm:$0xf] }
  0x18   : > { %v316_v22 = vrot.slane %v314_v14, 5  ;;  %v1245_v24 = vshll.u32 %v3479_v13, 16  ;;  %v1251_v25 = vshll.u32 %v3483_v15, 16  ;;  %v1255_v28 = vshrl.u32 %v3483_v15, 16  ;;  %v3500_v31 = vld [vmem:[%s3457_s7 + $0x10] sm:$0xf] }
  0x19   : > { %v301_v26 = vor.u32 %v300_v19, %v297_v18  ;;  %v311_v27 = vor.u32 %v310_v21, %v306_v20  ;;  %v1261_v29 = vshll.u32 %v3486_v16, 16  ;;  %v1244_v33 = vrot.slane %v1242_v23, 4  ;;  %v3512_v42 = vld [vmem:[%s3457_s7 + $0x14] sm:$0x1]  ;;  %v3528_v55 = vld [vmem:[%s3463_s10 + $0xc] sm:$0xf] }
  0x1a   : > { %v1247_v34 = vrot.slane %v1245_v24, 5  ;;  %v1253_v35 = vrot.slane %v1251_v25, 5  ;;  %v1257_v39 = vrot.slane %v1255_v28, 4  ;;  %v319_v43 = vshrl.u32 %v3497_v30, 16  ;;  %v3532_v60 = vld [vmem:[%s3463_s10 + $0x10] sm:$0xf] }
  0x1b   : > { %v302_v37 = vrot.slane %v301_v26, 4  ;;  %v312_v38 = vrot.slane %v311_v27, 4  ;;  %v1263_v40 = vrot.slane %v1261_v29, 5  ;;  %v322_v44 = vshll.u32 %v3497_v30, 16  ;;  %v3539_v0 = vld [vmem:[%s3463_s10 + $0x14] sm:$0x1] }
  0x1c   : > { %v1248_v41 = vor.u32 %v1247_v34, %v1244_v33  ;;  %v328_v45 = vshll.u32 %v3500_v31, 16  ;;  %v1258_v48 = vor.u32 %v1257_v39, %v1253_v35  ;;  %v332_v49 = vshrl.u32 %v3500_v31, 16  ;;  %v3551_v18 = vld [vmem:[%s3457_s7 + $0x18] sm:$0xf]  ;;  %v3556_v23 = vld [vmem:[%s3457_s7 + $0x1c] sm:$0xf] }
  0x1d   : > { %v307_v46 = vsel %vm3504_vm4, %v302_v37, %v306_v20  ;;  %v317_v47 = vsel %vm3504_vm4, %v312_v38, %v316_v22  ;;  %v321_v53 = vrot.slane %v319_v43, 4  ;;  %v324_v54 = vrot.slane %v322_v44, 5  ;;  %v3563_v28 = vld [vmem:[%s3457_s7 + $0x20] sm:$0x1]  ;;  %v3569_v37 = vld [vmem:[%s3463_s10 + $0x18] sm:$0xf] }
  0x1e   : > { %v2777_v51 = vcombine.low %v307_v46, %v317_v47  ;;  %v1249_v52 = vrot.slane %v1248_v41, 4  ;;  %v1259_v56 = vrot.slane %v1258_v48, 4  ;;  %v330_v57 = vrot.slane %v328_v45, 5  ;;  %v3579_v47 = vld [vmem:[%s4404_s3 + $0x4] sm:$0x3] }
  0x1f   : > { %v334_v58 = vrot.slane %v332_v49, 4  ;;  %v338_v59 = vshll.u32 %v3512_v42, 16  ;;  %v1612_v62 = vrot.slane %v3486_v16, 5  ;;  %v325_v63 = vor.u32 %v324_v54, %v321_v53  ;;  %v4088_v3 = vld [vmem:[%s3853_s21 + $0x54] sm:$0xf] }
  0x20   : > { %3039 = vmatprep.mubr.msk.bf16.mxu1 %vm512_vm3, %v2777_v51  ;;  %v1254_v61 = vsel %vm3504_vm4, %v1249_v52, %v1253_v35  ;;  %v1264_v2 = vsel %vm3504_vm4, %v1259_v56, %v1263_v40  ;;  %v1266_v9 = vshrl.u32 %v3528_v55, 16  ;;  %v1269_v12 = vshll.u32 %v3528_v55, 16  ;;  %v3583_v52 = vld [vmem:[%s3463_s10 + $0x1c] sm:$0xf]  ;;  %4456 = vst [vmem:[#allocation20_spill] sm:$0xff] %v4088_v3 }
  0x21   : > { %v335_v4 = vor.u32 %v334_v58, %v330_v57  ;;  %v340_v5 = vrot.slane %v338_v59, 5  ;;  %v2852_v10 = vcombine.low %v1254_v61, %v1264_v2  ;;  %v326_v11 = vrot.slane %v325_v63, 4  ;;  %v3588_v59 = vld [vmem:[%s3463_s10 + $0x20] sm:$0x1] }
  0x22   : > { %v1275_v14 = vshll.u32 %v3532_v60, 16  ;;  %v1268_v20 = vrot.slane %v1266_v9, 4  ;;  %v1279_v21 = vshrl.u32 %v3532_v60, 16  ;;  %v1285_v22 = vshll.u32 %v3539_v0, 16 }
  0x23   : > { %v336_v19 = vrot.slane %v335_v4, 4  ;;  %3111 = vmatprep.mubr.msk.bf16.mxu0 %vm512_vm3, %v2852_v10  ;;  %v331_v24 = vsel %vm3504_vm4, %v326_v11, %v330_v57  ;;  %v1271_v25 = vrot.slane %v1269_v12, 5  ;;  %v1616_v27 = vrot.slane %v3532_v60, 5 }
  0x24   : > { %v1277_v26 = vrot.slane %v1275_v14, 5  ;;  %v1281_v33 = vrot.slane %v1279_v21, 4  ;;  %v1287_v34 = vrot.slane %v1285_v22, 5  ;;  %v1619_v35 = vrot.slane %v3539_v0, 5  ;;  %v3604_v21 = vld [vmem:[%s3457_s7 + $0x28] sm:$0xf] }
  0x25   : > { %v341_v29 = vsel %vm3504_vm4, %v336_v19, %v340_v5  ;;  %v1272_v39 = vor.u32 %v1271_v25, %v1268_v20  ;;  %v343_v40 = vshrl.u32 %v3551_v18, 16  ;;  %v346_v41 = vshll.u32 %v3551_v18, 16  ;;  %v3594_v5 = vld [vmem:[%s3457_s7 + $0x24] sm:$0xf] }
  0x26   : > { %v2778_v38 = vcombine.low %v331_v24, %v341_v29  ;;  %v1282_v43 = vor.u32 %v1281_v33, %v1277_v26  ;;  %v352_v44 = vshll.u32 %v3556_v23, 16  ;;  %v356_v45 = vshrl.u32 %v3556_v23, 16 }
  0x27   : > { %v362_v46 = vshll.u32 %v3563_v28, 16  ;;  %v1273_v48 = vrot.slane %v1272_v39, 4  ;;  %v345_v49 = vrot.slane %v343_v40, 4  ;;  %v348_v51 = vrot.slane %v346_v41, 5  ;;  %v3615_v40 = vld [vmem:[%s3463_s10 + $0x24] sm:$0xf] }
  0x28   : > { %3040 = vmatmul.mubr.msk.bf16.vlgmr.msra.gmra.mrb[0].mxu1 %vm512_vm3, %v2778_v38  ;;  %v1290_v53 = vshrl.u32 %v3569_v37, 16  ;;  %v1283_v54 = vrot.slane %v1282_v43, 4  ;;  %v354_v56 = vrot.slane %v352_v44, 5  ;;  %v358_v57 = vrot.slane %v356_v45, 4  ;;  %v3611_v38 = vld [vmem:[%s3457_s7 + $0x2c] sm:$0x1] }
  0x29   : > { %3056 = vmatpush3.bf16.msra.mxu1 %v3489_v17  ;;  %v364_v58 = vrot.slane %v362_v46, 5  ;;  %v1278_v61 = vsel %vm3504_vm4, %v1273_v48, %v1277_v26  ;;  %v349_v63 = vor.u32 %v348_v51, %v345_v49  ;;  %v1293_v4 = vshll.u32 %v3569_v37, 16 }
  0x2a   : > { %v1292_v2 = vrot.slane %v1290_v53, 4  ;;  %3331 = vmatprep.subr.msk.bf16.mxu1 %vm537_vm0, %v3579_v47  ;;  %v1288_v17 = vsel %vm3504_vm4, %v1283_v54, %v1287_v34  ;;  %v359_v9 = vor.u32 %v358_v57, %v354_v56  ;;  %v1299_v10 = vshll.u32 %v3583_v52, 16  ;;  %v3623_v53 = vld [vmem:[%s3463_s10 + $0x28] sm:$0xf] }
  0x2b   : > { %v1303_v11 = vshrl.u32 %v3583_v52, 16  ;;  %v2853_v12 = vcombine.low %v1278_v61, %v1288_v17  ;;  %v350_v14 = vrot.slane %v349_v63, 4  ;;  %v1295_v19 = vrot.slane %v1293_v4, 5  ;;  %4434 = vst [vmem:[#allocation3_spill] sm:$0xff] %v3623_v53  ;;  %v3637_v17 = vld [vmem:[%s3457_s7 + $0x30] sm:$0xf] }
  0x2c   : > { %v1309_v20 = vshll.u32 %v3588_v59, 16  ;;  %v360_v22 = vrot.slane %v359_v9, 4  ;;  %v1301_v24 = vrot.slane %v1299_v10, 5  ;;  %v367_v26 = vshrl.u32 %v3594_v5, 16 }
  0x2d   : > { %v1305_v25 = vrot.slane %v1303_v11, 4  ;;  %3112 = vmatmul.mubr.msk.bf16.vlgmr.msra.gmra.mrb[0].mxu0 %vm512_vm3, %v2853_v12  ;;  %v355_v29 = vsel %vm3504_vm4, %v350_v14, %v354_v56  ;;  %v1296_v33 = vor.u32 %v1295_v19, %v1292_v2  ;;  %v370_v39 = vshll.u32 %v3594_v5, 16  ;;  %v3633_v2 = vld [vmem:[%s3463_s10 + $0x2c] sm:$0x1] }
  0x2e   : > { %v1311_v34 = vrot.slane %v1309_v20, 5  ;;  %3128 = vmatpush3.bf16.msra.mxu0 %v3509_v36  ;;  %v365_v41 = vsel %vm3504_vm4, %v360_v22, %v364_v58  ;;  %v369_v44 = vrot.slane %v367_v26, 4  ;;  %v376_v45 = vshll.u32 %v3604_v21, 16  ;;  %v3643_v22 = vld [vmem:[%s3457_s7 + $0x34] sm:$0xf] }
  0x2f   : > { %v1306_v43 = vor.u32 %v1305_v25, %v1301_v24  ;;  %v2779_v46 = vcombine.low %v355_v29, %v365_v41  ;;  %v1297_v48 = vrot.slane %v1296_v33, 4  ;;  %v372_v49 = vrot.slane %v370_v39, 5  ;;  %3336 = vmatprep.subr.msk.bf16.mxu0 %vm537_vm0, %v3525_v50  ;;  %v3652_v41 = vld [vmem:[%s3457_s7 + $0x38] sm:$0x1] }
  0x30   : > { %v380_v51 = vshrl.u32 %v3604_v21, 16  ;;  %v378_v54 = vrot.slane %v376_v45, 5  ;;  %v386_v56 = vshll.u32 %v3611_v38, 16  ;;  %v1314_v57 = vshrl.u32 %v3615_v40, 16 }
  0x31   : > { %v1307_v36 = vrot.slane %v1306_v43, 4  ;;  %3043 = vmatprep.mubr.msk.bf16.mxu1 %vm512_vm3, %v2779_v46  ;;  %v1302_v58 = vsel %vm3504_vm4, %v1297_v48, %v1301_v24  ;;  %v373_v61 = vor.u32 %v372_v49, %v369_v44  ;;  %v1317_v4 = vshll.u32 %v3615_v40, 16 }
  0x32   : > { %v382_v63 = vrot.slane %v380_v51, 4  ;;  %v388_v9 = vrot.slane %v386_v56, 5  ;;  %v1316_v10 = vrot.slane %v1314_v57, 4  ;;  %v1323_v11 = vshll.u32 %v3623_v53, 16 }
  0x33   : > { %v1312_v50 = vsel %vm3504_vm4, %v1307_v36, %v1311_v34  ;;  %v374_v14 = vrot.slane %v373_v61, 4  ;;  %v1319_v20 = vrot.slane %v1317_v4, 5  ;;  %v1327_v25 = vshrl.u32 %v3623_v53, 16  ;;  %v3664_v4 = vld [vmem:[%s3457_s7 + $0x40] sm:$0xf] }
  0x34   : > { %v2854_v12 = vcombine.low %v1302_v58, %v1312_v50  ;;  %v383_v19 = vor.u32 %v382_v63, %v378_v54  ;;  %v1325_v24 = vrot.slane %v1323_v11, 5  ;;  %v1333_v26 = vshll.u32 %v3633_v2, 16 }
  0x35   : > { %v391_v29 = vshrl.u32 %v3637_v17, 16  ;;  %v379_v33 = vsel %vm3504_vm4, %v374_v14, %v378_v54  ;;  %v1320_v39 = vor.u32 %v1319_v20, %v1316_v10  ;;  %v394_v43 = vshll.u32 %v3637_v17, 16  ;;  %v3660_v54 = vld [vmem:[%s3457_s7 + $0x3c] sm:$0xf] }
  0x36   : > { %3115 = vmatprep.mubr.msk.bf16.mxu0 %vm512_vm3, %v2854_v12  ;;  %v384_v34 = vrot.slane %v383_v19, 4  ;;  %v1329_v44 = vrot.slane %v1327_v25, 4  ;;  %v1335_v45 = vrot.slane %v1333_v26, 5  ;;  %v400_v48 = vshll.u32 %v3643_v22, 16 }
  0x37   : > { %v393_v46 = vrot.slane %v391_v29, 4  ;;  %v1321_v51 = vrot.slane %v1320_v39, 4  ;;  %v396_v36 = vrot.slane %v394_v43, 5  ;;  %v404_v56 = vshrl.u32 %v3643_v22, 16  ;;  %v3679_v29 = vld [vmem:[%s3457_s7 + $0x44] sm:$0x1] }
  0x38   : > { %v389_v49 = vsel %vm3504_vm4, %v384_v34, %v388_v9  ;;  %v1330_v58 = vor.u32 %v1329_v44, %v1325_v24  ;;  %v402_v61 = vrot.slane %v400_v48, 5  ;;  %v410_v63 = vshll.u32 %v3652_v41, 16 }
  0x39   : > { %v2780_v57 = vcombine.low %v379_v33, %v389_v49  ;;  %v1326_v50 = vsel %vm3504_vm4, %v1321_v51, %v1325_v24  ;;  %v397_v10 = vor.u32 %v396_v36, %v393_v46  ;;  %v406_v11 = vrot.slane %v404_v56, 4 }
  0x3a   : > { %v2868_v12 = vrot.slane %v3479_v13, 9  ;;  %v1331_v14 = vrot.slane %v1330_v58, 4  ;;  %v412_v19 = vrot.slane %v410_v63, 5  ;;  %v1609_v20 = vrot.slane %v3483_v15, 5 }
  0x3b   : > { %3044 = vmatmul.mubr.msk.bf16.gmra.mrb[4].mxu1 %vm512_vm3, %v2780_v57  ;;  %v415_v25 = vshrl.u32 %v3660_v54, 16  ;;  %v398_v26 = vrot.slane %v397_v10, 4  ;;  %v407_v24 = vor.u32 %v406_v11, %v402_v61  ;;  %v418_v33 = vshll.u32 %v3660_v54, 16  ;;  %v3696_v57 = vld [vmem:[%s3457_s7 + $0x48] sm:$0xf] }
  0x3c   : > { %v424_v34 = vshll.u32 %v3664_v4, 16  ;;  %v1336_v13 = vsel %vm3504_vm4, %v1331_v14, %v1335_v45  ;;  %v1610_v39 = vsel %vm3670_vm7, %v2868_v12, %v1609_v20  ;;  %v1611_v43 = vrot.slane %v1609_v20, 4  ;;  %v3713_v20 = vld [vmem:[%s3457_s7 + $0x50] sm:$0x1] }
  0x3d   : > { %v417_v15 = vrot.slane %v415_v25, 4  ;;  %v2855_v44 = vcombine.low %v1326_v50, %v1336_v13  ;;  %v403_v46 = vsel %vm3504_vm4, %v398_v26, %v402_v61  ;;  %v408_v48 = vrot.slane %v407_v24, 4  ;;  %v3703_v50 = vld [vmem:[%s3457_s7 + $0x4c] sm:$0xf] }
  0x3e   : > { %v420_v49 = vrot.slane %v418_v33, 5  ;;  %v1613_v51 = vsel %vm3670_vm7, %v1611_v43, %v1612_v62  ;;  %v426_v36 = vrot.slane %v424_v34, 5  ;;  %v428_v45 = vshrl.u32 %v3664_v4, 16  ;;  %v3727_v43 = vld [vmem:[%s3457_s7 + $0x54] sm:$0xf] }
  0x3f   : > { %v434_v56 = vshll.u32 %v3679_v29, 16  ;;  %3116 = vmatmul.mubr.msk.bf16.gmra.mrb[4].mxu0 %vm512_vm3, %v2855_v44  ;;  %v413_v58 = vsel %vm3504_vm4, %v408_v48, %v412_v19  ;;  %v2877_v61 = vcombine.low %v1610_v39, %v1613_v51  ;;  %v2869_v16 = vrot.slane %v3528_v55, 9 }
  0x40   : > { %v421_v63 = vor.u32 %v420_v49, %v417_v15  ;;  %v2781_v62 = vcombine.low %v403_v46, %v413_v58  ;;  %v430_v10 = vrot.slane %v428_v45, 4  ;;  %v1618_v12 = vrot.slane %v1616_v27, 4  ;;  %v3734_v45 = vld [vmem:[%s3457_s7 + $0x58] sm:$0xf] }
  0x41   : > { %v436_v11 = vrot.slane %v434_v56, 5  ;;  %3129 = vmatprep.mubr.msk.bf16.mxu0 %vm512_vm3, %v2877_v61  ;;  %v1617_v19 = vsel %vm3670_vm7, %v2869_v16, %v1616_v27  ;;  %v439_v55 = vshrl.u32 %v3696_v57, 16  ;;  %v442_v25 = vshll.u32 %v3696_v57, 16  ;;  %v3739_v61 = vld [vmem:[%s3457_s7 + $0x5c] sm:$0x1] }
  0x42   : > { %v422_v14 = vrot.slane %v421_v63, 4  ;;  %3047 = vmatprep.mubr.msk.bf16.mxu1 %vm512_vm3, %v2781_v62  ;;  %v431_v26 = vor.u32 %v430_v10, %v426_v36  ;;  %v1620_v24 = vsel %vm3670_vm7, %v1618_v12, %v1619_v35  ;;  %v448_v60 = vshll.u32 %v3703_v50, 16  ;;  %v3745_v16 = vld [vmem:[%s4404_s3 + $0xe] sm:$0x3] }
  0x43   : > { %v452_v33 = vshrl.u32 %v3703_v50, 16  ;;  %v2878_v34 = vcombine.low %v1617_v19, %v1620_v24  ;;  %v441_v13 = vrot.slane %v439_v55, 4  ;;  %v444_v39 = vrot.slane %v442_v25, 5 }
  0x44   : > { %v427_v27 = vsel %vm3504_vm4, %v422_v14, %v426_v36  ;;  %v432_v15 = vrot.slane %v431_v26, 4  ;;  %v450_v44 = vrot.slane %v448_v60, 5  ;;  %v458_v46 = vshll.u32 %v3713_v20, 16  ;;  %v3761_v26 = vld [vmem:[%s3463_s10 + $0x30] sm:$0xf] }
  0x45   : > { %v454_v0 = vrot.slane %v452_v33, 4  ;;  %v445_v35 = vor.u32 %v444_v39, %v441_v13  ;;  %v2870_v48 = vrot.slane %v3569_v37, 9  ;;  %v1623_v49 = vrot.slane %v3583_v52, 5  ;;  %v3771_v13 = vld [vmem:[%s3463_s10 + $0x38] sm:$0x1] }
  0x46   : > { %v1626_v51 = vrot.slane %v3588_v59, 5  ;;  %v437_v36 = vsel %vm3504_vm4, %v432_v15, %v436_v11  ;;  %v460_v58 = vrot.slane %v458_v46, 5  ;;  %v463_v63 = vshrl.u32 %v3727_v43, 16  ;;  %4438 = vst [vmem:[#allocation5_spill] sm:$0xff] %v3771_v13 }
  0x47   : > { %v455_v56 = vor.u32 %v454_v0, %v450_v44  ;;  %v2782_v37 = vcombine.low %v427_v27, %v437_v36  ;;  %3130 = vmatmul.mubr.msk.bf16.vlgmr.msra.gmra.mrb[0].mxu0 %vm512_vm3, %v2878_v34  ;;  %v446_v52 = vrot.slane %v445_v35, 4  ;;  %v1624_v59 = vsel %vm3670_vm7, %v2870_v48, %v1623_v49  ;;  %v3768_v34 = vld [vmem:[%s3463_s10 + $0x34] sm:$0xf] }
  0x48   : > { %v1625_v62 = vrot.slane %v1623_v49, 4  ;;  %3146 = vmatpush3.bf16.msra.mxu0 %v3543_v1  ;;  %v465_v11 = vrot.slane %v463_v63, 4  ;;  %v466_v12 = vshll.u32 %v3727_v43, 16  ;;  %v472_v14 = vshll.u32 %v3734_v45, 16  ;;  %4437 = vst [vmem:[#allocation4_spill] sm:$0xff] %v3768_v34 }
  0x49   : > { %v456_v10 = vrot.slane %v455_v56, 4  ;;  %3048 = vmatmul.mubr.msk.bf16.gmra.mrb[8].mxu1 %vm512_vm3, %v2782_v37  ;;  %v451_v19 = vsel %vm3504_vm4, %v446_v52, %v450_v44  ;;  %v476_v25 = vshrl.u32 %v3734_v45, 16  ;;  %v482_v1 = vshll.u32 %v3739_v61, 16  ;;  %3337 = vmatprep.subr.msk.bf16.mxu0 %vm537_vm0, %v3745_v16 }
  0x4a   : > { %v1627_v55 = vsel %vm3670_vm7, %v1625_v62, %v1626_v51  ;;  %v468_v33 = vrot.slane %v466_v12, 5  ;;  %v474_v27 = vrot.slane %v472_v14, 5  ;;  %v2871_v44 = vrot.slane %v3615_v40, 9  ;;  %v3796_v12 = vld [vmem:[%s3463_s10 + $0x44] sm:$0x1] }
  0x4b   : > { %v461_v24 = vsel %vm3504_vm4, %v456_v10, %v460_v58  ;;  %v2879_v60 = vcombine.low %v1624_v59, %v1627_v55  ;;  %v478_v15 = vrot.slane %v476_v25, 4  ;;  %v1630_v46 = vrot.slane %v3623_v53, 5  ;;  %v3790_v10 = vld [vmem:[%s3463_s10 + $0x3c] sm:$0xf] }
  0x4c   : > { %v2783_v39 = vcombine.low %v451_v19, %v461_v24  ;;  %v469_v0 = vor.u32 %v468_v33, %v465_v11  ;;  %v1633_v35 = vrot.slane %v3633_v2, 5  ;;  %v2872_v48 = vrot.slane %v3761_v26, 9  ;;  %v3793_v11 = vld [vmem:[%s3463_s10 + $0x40] sm:$0xf]  ;;  %v3808_v24 = vld [vmem:[%s3463_s10 + $0x4c] sm:$0xf] }
  0x4d   : > { %3133 = vmatprep.mubr.msk.bf16.mxu0 %vm512_vm3, %v2879_v60  ;;  %v479_v49 = vor.u32 %v478_v15, %v474_v27  ;;  %v484_v51 = vrot.slane %v482_v1, 5  ;;  %v1637_v36 = vrot.slane %v3768_v34, 5  ;;  %v1640_v40 = vrot.slane %v3771_v13, 5  ;;  %v3805_v1 = vld [vmem:[%s3463_s10 + $0x48] sm:$0xf]  ;;  %4440 = vst [vmem:[#allocation7_spill] sm:$0xff] %v3808_v24 }
  0x4e   : > { %3051 = vmatprep.mubr.msk.bf16.mxu1 %vm512_vm3, %v2783_v39  ;;  %v470_v56 = vrot.slane %v469_v0, 4  ;;  %v1631_v58 = vsel %vm3670_vm7, %v2871_v44, %v1630_v46  ;;  %v1632_v63 = vrot.slane %v1630_v46, 4  ;;  %v2793_v55 = vcombine.low %v3466_v6, %v3469_v7  ;;  %4439 = vst [vmem:[#allocation6_spill] sm:$0xff] %v3805_v1 }
  0x4f   : > { %v480_v2 = vrot.slane %v479_v49, 4  ;;  %v1638_v37 = vsel %vm3670_vm7, %v2872_v48, %v1637_v36  ;;  %v1639_v52 = vrot.slane %v1637_v36, 4  ;;  %v2873_v39 = vrot.slane %v3790_v10, 9  ;;  %v3829_v36 = vld [vmem:[%s3463_s10 + $0x54] sm:$0xf] }
  0x50   : > { %v475_v59 = vsel %vm3504_vm4, %v470_v56, %v474_v27  ;;  %v1634_v62 = vsel %vm3670_vm7, %v1632_v63, %v1633_v35  ;;  %v3811_v27 = vld [vmem:[%s3463_s10 + $0x50] sm:$0x1]  ;;  %v1644_v15 = vrot.slane %v3793_v11, 5  ;;  %v1647_v44 = vrot.slane %v3796_v12, 5  ;;  %v3822_v35 = vld [vmem:[%s3463_s10 + $0x58] sm:$0xf] }
  0x51   : > { %v485_v14 = vsel %vm3504_vm4, %v480_v2, %v484_v51  ;;  %v2880_v19 = vcombine.low %v1631_v58, %v1634_v62  ;;  %v1641_v25 = vsel %vm3670_vm7, %v1639_v52, %v1640_v40  ;;  %4441 = vst [vmem:[#allocation8_spill] sm:$0xff] %v3811_v27  ;;  %v2874_v0 = vrot.slane %v3805_v1, 9  ;;  %4442 = vst [vmem:[#allocation9_spill] sm:$0xff] %v3822_v35  ;;  %v3832_v40 = vld [vmem:[%s3463_s10 + $0x5c] sm:$0x1] }
  0x52   : > { %v2784_v60 = vcombine.low %v475_v59, %v485_v14  ;;  %v2881_v33 = vcombine.low %v1638_v37, %v1641_v25  ;;  %v1651_v46 = vrot.slane %v3808_v24, 5  ;;  %v1645_v48 = vsel %vm3670_vm7, %v2873_v39, %v1644_v15  ;;  %4443 = vst [vmem:[#allocation10_spill] sm:$0xff] %v3829_v36  ;;  %4444 = vst [vmem:[#allocation11_spill] sm:$0xff] %v3832_v40  ;;  %v4036_v24 = vld [vmem:[%s3853_s21 + $0x40] sm:$0xf] }
  0x53   : > { %3134 = vmatmul.mubr.msk.bf16.gmra.mrb[4].mxu0 %vm512_vm3, %v2880_v19  ;;  %v1646_v49 = vrot.slane %v1644_v15, 4  ;;  %v1654_v51 = vrot.slane %v3811_v27, 5  ;;  %v2794_v63 = vcombine.low %v3497_v30, %v3500_v31  ;;  %v1658_v37 = vrot.slane %v3822_v35, 5  ;;  %4451 = vst [vmem:[#allocation17_spill] sm:$0xff] %v4036_v24 }
  0x54   : > { %3052 = vmatmul.mubr.msk.bf16.gmra.mrb[12].mxu1 %vm512_vm3, %v2784_v60  ;;  %3137 = vmatprep.mubr.msk.bf16.mxu0 %vm512_vm3, %v2881_v33  ;;  %v1652_v56 = vsel %vm3670_vm7, %v2874_v0, %v1651_v46  ;;  %v1653_v58 = vrot.slane %v1651_v46, 4  ;;  %v2875_v62 = vrot.slane %v3829_v36, 9  ;;  %v1661_v14 = vrot.slane %v3832_v40, 5  ;;  %v2834_v33 = vld [vmem:[%s4404_s3 + $0x6] sm:$0x3] }
  0x55   : > { %3057 = vmatprep.mubr.msk.bf16.mxu1 %vm512_vm3, %v2793_v55  ;;  %v1648_v2 = vsel %vm3670_vm7, %v1646_v49, %v1647_v44  ;;  %v2795_v19 = vcombine.low %v3551_v18, %v3556_v23  ;;  %v1660_v25 = vrot.slane %v1658_v37, 4  ;;  %v920_v60 = vsel %vm537_vm0, %v3579_v47, 0  ;;  %v3868_v44 = vld [vmem:[%s3853_s21] sm:$0xf]  ;;  %v3871_v0 = vld [vmem:[%s3853_s21 + $0x4] sm:$0xf] }
  0x56   : > { %v2882_v52 = vcombine.low %v1645_v48, %v1648_v2  ;;  %v1655_v59 = vsel %vm3670_vm7, %v1653_v58, %v1654_v51  ;;  %v822_v39 = vrot.slane %v3500_v31, 5  ;;  %v1659_v47 = vsel %vm3670_vm7, %v2875_v62, %v1658_v37  ;;  %v3889_v37 = vld [vmem:[%s3853_s21 + $0xc] sm:$0xf]  ;;  %v3903_v62 = vld [vmem:[%s3853_s21 + $0x10] sm:$0xf] }
  0x57   : > { %v2883_v55 = vcombine.low %v1652_v56, %v1655_v59  ;;  %v1662_v15 = vsel %vm3670_vm7, %v1660_v25, %v1661_v14  ;;  %v825_v31 = vrot.slane %v3512_v42, 5  ;;  %v2796_v48 = vcombine.low %v3594_v5, %v3604_v21  ;;  %4445 = vst [vmem:[#allocation12_spill] sm:$0xff] %v3889_v37  ;;  %v4029_v36 = vld [vmem:[%s3853_s21 + $0x3c] sm:$0xf] }
  0x58   : > { %v2884_v46 = vcombine.low %v1659_v47, %v1662_v15  ;;  %v2894_v49 = vcombine.low %v3868_v44, %v3871_v0  ;;  %v2810_v51 = vrot.slane %v3497_v30, 9  ;;  %v824_v56 = vrot.slane %v822_v39, 4  ;;  %4450 = vst [vmem:[#allocation16_spill] sm:$0xff] %v4029_v36 }
  0x59   : > { %v2797_v58 = vcombine.low %v3637_v17, %v3643_v22  ;;  %v3885_v42 = vsel %vm537_vm0, %v2834_v33, 0  ;;  %v2811_v59 = vrot.slane %v3551_v18, 9  ;;  %v2039_v18 = vshll.u32 %v3868_v44, 16 }
  0x5a   : > { %v3897_v30 = vsel %vm3670_vm7, %v824_v56, %v825_v31  ;;  %v2049_v25 = vshrl.u32 %v3871_v0, 16  ;;  %v2812_v47 = vrot.slane %v3594_v5, 9  ;;  %v836_v15 = vrot.slane %v3604_v21, 5 }
  0x5b   : > { %3138 = vmatmul.mubr.msk.bf16.gmra.mrb[8].mxu0 %vm512_vm3, %v2882_v52  ;;  %v3893_v52 = vsel %vm3670_vm7, %v2810_v51, %v822_v39  ;;  %v3918_v39 = vld [vmem:[%s3853_s21 + $0x18] sm:$0xf]  ;;  %v2895_v31 = vcombine.low %v3889_v37, %v3903_v62  ;;  %v2799_v51 = vcombine.low %v3696_v57, %v3703_v50  ;;  %v853_v2 = vrot.slane %v3679_v29, 5 }
  0x5c   : > { %3058 = vmatmul.mubr.msk.bf16.vlgmr.msra.gmra.mrb[0].mxu1 %vm512_vm3, %v2794_v63  ;;  %3141 = vmatprep.mubr.msk.bf16.mxu0 %vm512_vm3, %v2883_v55  ;;  %v2278_v63 = vsel %vm537_vm0, %v3745_v16, 0  ;;  %v2036_v16 = vshrl.u32 %v3868_v44, 16  ;;  %v832_v55 = vrot.slane %v3563_v28, 5  ;;  %4446 = vst [vmem:[#allocation13_spill] sm:$0xff] %v3918_v39  ;;  %v3942_v5 = vsel %vm3670_vm7, %v2812_v47, %v836_v15 }
  0x5d   : > { %3074 = vmatpush3.bf16.msra.mxu1 %v920_v60  ;;  %3061 = vmatprep.mubr.msk.bf16.mxu1 %vm512_vm3, %v2795_v19  ;;  %v829_v19 = vrot.slane %v3556_v23, 5  ;;  %v2798_v60 = vcombine.low %v3660_v54, %v3664_v4  ;;  %v838_v21 = vrot.slane %v836_v15, 4  ;;  %v2073_v15 = vshrl.u32 %v3903_v62, 16 }
  0x5e   : > { %3332 = vmatprep.subr.msk.bf16.mxu1 %vm537_vm0, %v2834_v33  ;;  %v815_v33 = vrot.slane %v3469_v7, 5  ;;  %v2045_v7 = vshll.u32 %v3871_v0, 16  ;;  %v2815_v40 = vrot.slane %v3696_v57, 9  ;;  %v860_v1 = vrot.slane %v3713_v20, 5  ;;  %v4042_v57 = vld [vmem:[%s3853_s21 + $0x48] sm:$0xf] }
  0x5f   : > { %v3922_v23 = vsel %vm3670_vm7, %v2811_v59, %v829_v19  ;;  %v831_v28 = vrot.slane %v829_v19, 4  ;;  %v2813_v59 = vrot.slane %v3637_v17, 9  ;;  %v843_v19 = vrot.slane %v3643_v22, 5  ;;  %4452 = vst [vmem:[#allocation18_spill] sm:$0xff] %v4042_v57 }
  0x60   : > { %v4017_v29 = vrot.slane %v2045_v7, 5  ;;  %v857_v7 = vrot.slane %v3703_v50, 5  ;;  %v4455_v20 = vshll.u32 %v3889_v37, 16 }
  0x61   : > { %v3938_v56 = vsel %vm3670_vm7, %v831_v28, %v832_v55  ;;  %v2809_v55 = vrot.slane %v3466_v6, 9  ;;  %v817_v28 = vrot.slane %v815_v33, 4  ;;  %v3961_v22 = vsel %vm3670_vm7, %v2813_v59, %v843_v19  ;;  %v3977_v59 = vld [vmem:[%s3853_s21 + $0x24] sm:$0xf] }
  0x62   : > { %v2084_v6 = vshrl.u32 %v3918_v39, 16  ;;  %4447 = vst [vmem:[#allocation14_spill] sm:$0xff] %v3977_v59  ;;  %v4052_v35 = vsel %vm3670_vm7, %v2815_v40, %v857_v7 }
  0x63   : > { %3142 = vmatmul.mubr.msk.bf16.gmra.mrb[12].mxu0 %vm512_vm3, %v2884_v46  ;;  %v850_v46 = vrot.slane %v3664_v4, 5  ;;  %v4001_v4 = vld [vmem:[%s3853_s21 + $0x34] sm:$0xf] }
  0x64   : > { %3062 = vmatmul.mubr.msk.bf16.gmra.mrb[4].mxu1 %vm512_vm3, %v2796_v48  ;;  %3147 = vmatprep.mubr.msk.bf16.mxu0 %vm512_vm3, %v2894_v49  ;;  %v3931_v48 = vld [vmem:[%s3853_s21 + $0x1c] sm:$0xf]  ;;  %v839_v49 = vrot.slane %v3611_v38, 5  ;;  %v846_v38 = vrot.slane %v3652_v41, 5  ;;  %v845_v41 = vrot.slane %v843_v19, 4 }
  0x65   : > { %3065 = vmatprep.mubr.msk.bf16.mxu1 %vm512_vm3, %v2797_v58  ;;  %v2896_v14 = vcombine.low %v3918_v39, %v3931_v48  ;;  %v2087_v58 = vshll.u32 %v3918_v39, 16  ;;  %v3980_v19 = vld [vmem:[%s3853_s21 + $0x28] sm:$0xf] }
  0x66   : > { %v3954_v47 = vsel %vm3670_vm7, %v838_v21, %v839_v49  ;;  %v3970_v49 = vld [vmem:[%s4404_s3 + $0x10] sm:$0x3]  ;;  %v2814_v21 = vrot.slane %v3660_v54, 9  ;;  %v3984_v17 = vsel %vm3670_vm7, %v845_v41, %v846_v38  ;;  %v2097_v54 = vshrl.u32 %v3931_v48, 16 }
  0x67   : > { %v3998_v41 = vld [vmem:[%s3853_s21 + $0x30] sm:$0xf] }
  0x68   : > { %4449 = vst [vmem:[#allocation15_spill] sm:$0xff] %v3998_v41 }
  0x6b   : > { %3148 = vmatmul.mubr.msk.bf16.vlgmr.msra.gmra.mrb[0].mxu0 %vm512_vm3, %v2895_v31  ;;  %v2800_v31 = vcombine.low %v3727_v43, %v3734_v45 }
  0x6c   : > { %3066 = vmatmul.mubr.msk.bf16.gmra.mrb[8].mxu1 %vm512_vm3, %v2798_v60  ;;  %3164 = vmatpush3.bf16.msra.mxu0 %v2278_v63  ;;  %v816_v63 = vsel %vm3670_vm7, %v2809_v55, %v815_v33  ;;  %v4448_v60 = vrot.slane %v3472_v8, 5  ;;  %v4009_v33 = vsel %vm3670_vm7, %v2814_v21, %v850_v46  ;;  %v852_v8 = vrot.slane %v850_v46, 4 }
  0x6d   : > { %3069 = vmatprep.mubr.msk.bf16.mxu1 %vm512_vm3, %v2799_v51  ;;  %3151 = vmatprep.mubr.msk.bf16.mxu0 %vm512_vm3, %v2896_v14  ;;  %v2038_v51 = vrot.slane %v2036_v16, 4  ;;  %v2041_v14 = vrot.slane %v2039_v18, 5  ;;  %v2897_v55 = vcombine.low %v3977_v59, %v3980_v19  ;;  %v2051_v16 = vrot.slane %v2049_v25, 4 }
  0x6e   : > { %v819_v38 = vsel %vm3670_vm7, %v817_v28, %v4448_v60  ;;  %3338 = vmatprep.subr.msk.bf16.mxu0 %vm537_vm0, %v3970_v49  ;;  %v4015_v60 = vld [vmem:[%s3853_s21 + $0x8] sm:$0x1]  ;;  %v2898_v18 = vcombine.low %v3998_v41, %v4001_v4  ;;  %v4023_v21 = vsel %vm3670_vm7, %v852_v8, %v853_v2  ;;  %v2069_v46 = vshll.u32 %v3903_v62, 16 }
  0x6f   : > { %v2818_v27 = vcombine.low %v816_v63, %v819_v38  ;;  %v2042_v2 = vor.u32 %v2041_v14, %v2038_v51  ;;  %v2055_v8 = vshll.u32 %v4015_v60, 16  ;;  %v4045_v63 = vld [vmem:[%s3853_s21 + $0x4c] sm:$0xf]  ;;  %v2052_v38 = vor.u32 %v2051_v16, %v4017_v29 }
  0x70   : > { %4453 = vst [vmem:[#allocation19_spill] sm:$0xff] %v4045_v63  ;;  %v4454_v25 = vshrl.u32 %v3889_v37, 16  ;;  %v859_v51 = vrot.slane %v857_v7, 4  ;;  %v2065_v14 = vrot.slane %v4455_v20, 5  ;;  %v2075_v16 = vrot.slane %v2073_v15, 4 }
  0x71   : > { %v2093_v28 = vshll.u32 %v3931_v48, 16  ;;  %v2089_v7 = vrot.slane %v2087_v58, 5  ;;  %v2900_v15 = vcombine.low %v4042_v57, %v4045_v63  ;;  %v867_v20 = vrot.slane %v3739_v61, 5 }
  0x72   : > { %v2062_v50 = vrot.slane %v4454_v25, 4  ;;  %v4064_v40 = vsel %vm3670_vm7, %v859_v51, %v860_v1  ;;  %v2086_v25 = vrot.slane %v2084_v6, 4  ;;  %v864_v1 = vrot.slane %v3734_v45, 5  ;;  %v4078_v6 = vld [vmem:[%s3853_s21 + $0x20] sm:$0x1] }
  0x73   : > { %3152 = vmatmul.mubr.msk.bf16.gmra.mrb[4].mxu0 %vm512_vm3, %v2897_v55  ;;  %v4058_v55 = vrot.slane %v2069_v46, 5  ;;  %v4072_v46 = vld [vmem:[%s3853_s21 + $0x14] sm:$0x1]  ;;  %v2043_v51 = vrot.slane %v2042_v2, 4  ;;  %v4080_v58 = vrot.slane %v2093_v28, 5  ;;  %v2053_v13 = vrot.slane %v2052_v38, 4 }
  0x74   : > { %3070 = vmatmul.mubr.msk.bf16.gmra.mrb[12].mxu1 %vm512_vm3, %v2800_v31  ;;  %3155 = vmatprep.mubr.msk.bf16.mxu0 %vm512_vm3, %v2898_v18  ;;  %v2816_v31 = vrot.slane %v3727_v43, 9  ;;  %v2899_v18 = vcombine.low %v4029_v36, %v4036_v24  ;;  %v2099_v43 = vrot.slane %v2097_v54, 4  ;;  %v2057_v39 = vrot.slane %v2055_v8, 5 }
  0x75   : > { %3075 = vmatprep.mubr.msk.bf16.mxu1 %vm512_vm3, %v2818_v27  ;;  %v866_v53 = vrot.slane %v864_v1, 4  ;;  %v4091_v27 = vld [vmem:[%s3853_s21 + $0x58] sm:$0xf]  ;;  %v2066_v45 = vor.u32 %v2065_v14, %v2062_v50  ;;  %v2076_v2 = vor.u32 %v2075_v16, %v4058_v55  ;;  %v2079_v28 = vshll.u32 %v4072_v46, 16 }
  0x76   : > { %v4085_v37 = vsel %vm3670_vm7, %v2816_v31, %v864_v1  ;;  %v2090_v34 = vor.u32 %v2089_v7, %v2086_v25  ;;  %v2132_v54 = vshrl.u32 %v3998_v41, 16  ;;  %v2135_v61 = vshll.u32 %v3998_v41, 16 }
  0x77   : > { %v2103_v8 = vshll.u32 %v4078_v6, 16  ;;  %v4100_v38 = vsel %vm3670_vm7, %v866_v53, %v867_v20  ;;  %v2145_v31 = vshrl.u32 %v4001_v4, 16  ;;  %v2100_v50 = vor.u32 %v2099_v43, %v4080_v58 }
  0x78   : > { %v2117_v16 = vshll.u32 %v3980_v19, 16  ;;  %v4457_v25 = vcombine.low %v3893_v52, %v3897_v30  ;;  %v2901_v53 = vcombine.low %v4088_v3, %v4091_v27  ;;  %v2048_v7 = vsel %vm3504_vm4, %v2043_v51, %v4017_v29 }
  0x79   : > { %v2141_v1 = vshll.u32 %v4001_v4, 16  ;;  %v4458_v52 = vcombine.low %v3922_v23, %v3938_v56  ;;  %v2067_v30 = vrot.slane %v2066_v45, 4  ;;  %v2081_v43 = vrot.slane %v2079_v28, 5  ;;  %v4137_v56 = vld [vmem:[%s3853_s21 + $0x2c] sm:$0x1] }
  0x7a   : > { %v2091_v20 = vrot.slane %v2090_v34, 4  ;;  %v4459_v29 = vshrl.u32 %v3977_v59, 16  ;;  %v4460_v14 = vshll.u32 %v3977_v59, 16  ;;  %v2101_v23 = vrot.slane %v2100_v50, 4  ;;  %v4150_v59 = vld [vmem:[%s3853_s21 + $0x38] sm:$0x1] }
  0x7b   : > { %3156 = vmatmul.mubr.msk.bf16.gmra.mrb[8].mxu0 %vm512_vm3, %v2899_v18  ;;  %v2058_v18 = vsel %vm3504_vm4, %v2053_v13, %v2057_v39  ;;  %v4461_v39 = vshrl.u32 %v3980_v19, 16  ;;  %v4139_v34 = vrot.slane %v2117_v16, 5  ;;  %v2134_v45 = vrot.slane %v2132_v54, 4 }
  0x7c   : > { %3076 = vmatmul.mubr.msk.bf16.vlgmr.msra.gmra.mrb[0].mxu1 %vm512_vm3, %v4457_v25  ;;  %3159 = vmatprep.mubr.msk.bf16.mxu0 %vm512_vm3, %v2900_v15  ;;  %v2077_v15 = vrot.slane %v2076_v2, 4  ;;  %v2105_v25 = vrot.slane %v2103_v8, 5  ;;  %v2110_v51 = vrot.slane %v4459_v29, 4  ;;  %v2113_v13 = vrot.slane %v4460_v14, 5 }
  0x7d   : > { %3092 = vmatpush3.bf16.msra.mxu1 %v3885_v42  ;;  %3079 = vmatprep.mubr.msk.bf16.mxu1 %vm512_vm3, %v4458_v52  ;;  %v2123_v41 = vrot.slane %v4461_v39, 4  ;;  %v3373_v42 = vld [vmem:[%s4404_s3 + $0x8] sm:$0x3]  ;;  %v2137_v2 = vrot.slane %v2135_v61, 5  ;;  %v2911_v28 = vcombine.low %v2048_v7, %v2058_v18  ;;  %v2508_v8 = vsel %vm537_vm0, %v3970_v49, 0 }
  0x7e   : > { %3334 = vmatprep.subr.msk.bf16.mxu1 %vm537_vm0, %v3373_v42  ;;  %v4143_v14 = vrot.slane %v2141_v1, 5  ;;  %v2147_v52 = vrot.slane %v2145_v31, 4  ;;  %v2156_v29 = vshrl.u32 %v4029_v36, 16  ;;  %v2159_v39 = vshll.u32 %v4029_v36, 16  ;;  %v4183_v36 = vld [vmem:[%s3853_s21 + $0x44] sm:$0x1] }
  0x7f   : > { %v2169_v42 = vshrl.u32 %v4036_v24, 16  ;;  %v2180_v50 = vshrl.u32 %v4042_v57, 16  ;;  %v2072_v54 = vsel %vm3504_vm4, %v2067_v30, %v4058_v55  ;;  %v2082_v49 = vsel %vm3504_vm4, %v2077_v15, %v2081_v43 }
  0x80   : > { %v2114_v61 = vor.u32 %v2113_v13, %v2110_v51  ;;  %v2127_v31 = vshll.u32 %v4137_v56, 16  ;;  %v2096_v16 = vsel %vm3504_vm4, %v2091_v20, %v4080_v58  ;;  %v2106_v7 = vsel %vm3504_vm4, %v2101_v23, %v2105_v25 }
  0x81   : > { %v2124_v18 = vor.u32 %v2123_v41, %v4139_v34  ;;  %v2138_v1 = vor.u32 %v2137_v2, %v2134_v45  ;;  %v2183_v55 = vshll.u32 %v4042_v57, 16  ;;  %v4462_v30 = vcombine.low %v3942_v5, %v3954_v47 }
  0x82   : > { %v2151_v15 = vshll.u32 %v4150_v59, 16  ;;  %v2165_v58 = vshll.u32 %v4036_v24, 16  ;;  %v2193_v43 = vshrl.u32 %v4045_v63, 16  ;;  %v2204_v41 = vshrl.u32 %v4088_v3, 16 }
  0x83   : > { %3160 = vmatmul.mubr.msk.bf16.gmra.mrb[12].mxu0 %vm512_vm3, %v2901_v53  ;;  %v2148_v53 = vor.u32 %v2147_v52, %v4143_v14  ;;  %v2207_v20 = vshll.u32 %v4088_v3, 16  ;;  %v4463_v5 = vcombine.low %v3961_v22, %v3984_v17  ;;  %v2189_v47 = vshll.u32 %v4045_v63, 16  ;;  %v4188_v22 = vld [vmem:[%s3853_s21 + $0x50] sm:$0x1] }
  0x84   : > { %3080 = vmatmul.mubr.msk.bf16.gmra.mrb[4].mxu1 %vm512_vm3, %v4462_v30  ;;  %3165 = vmatprep.mubr.msk.bf16.mxu0 %vm512_vm3, %v2911_v28  ;;  %v2912_v25 = vcombine.low %v2072_v54, %v2082_v49  ;;  %v2913_v51 = vcombine.low %v2096_v16, %v2106_v7  ;;  %v2115_v13 = vrot.slane %v2114_v61, 4  ;;  %v2129_v23 = vrot.slane %v2127_v31, 5 }
  0x85   : > { %3083 = vmatprep.mubr.msk.bf16.mxu1 %vm512_vm3, %v4463_v5  ;;  %v2125_v45 = vrot.slane %v2124_v18, 4  ;;  %v2139_v2 = vrot.slane %v2138_v1, 4  ;;  %v2158_v28 = vrot.slane %v2156_v29, 4  ;;  %v2161_v52 = vrot.slane %v2159_v39, 5 }
  0x86   : > { %v2149_v30 = vrot.slane %v2148_v53, 4  ;;  %v2153_v57 = vrot.slane %v2151_v15, 5  ;;  %v4185_v3 = vrot.slane %v2165_v58, 5  ;;  %v2171_v17 = vrot.slane %v2169_v42, 4 }
  0x87   : > { %v2182_v5 = vrot.slane %v2180_v50, 4  ;;  %v2185_v24 = vrot.slane %v2183_v55, 5  ;;  %v4190_v63 = vrot.slane %v2189_v47, 5  ;;  %v2195_v54 = vrot.slane %v2193_v43, 4  ;;  %v3374_v47 = vld [vmem:[%s3463_s10] sm:$0xf] }
  0x88   : > { %v2217_v49 = vshrl.u32 %v4091_v27, 16  ;;  %v2120_v29 = vsel %vm3504_vm4, %v2115_v13, %v4139_v34  ;;  %v2213_v39 = vshll.u32 %v4091_v27, 16  ;;  %v2130_v42 = vsel %vm3504_vm4, %v2125_v45, %v2129_v23 }
  0x89   : > { %v2144_v50 = vsel %vm3504_vm4, %v2139_v2, %v4143_v14  ;;  %v2162_v61 = vor.u32 %v2161_v52, %v2158_v28  ;;  %v2175_v31 = vshll.u32 %v4183_v36, 16  ;;  %v4464_v16 = vcombine.low %v4009_v33, %v4023_v21 }
  0x8a   : > { %v2154_v34 = vsel %vm3504_vm4, %v2149_v30, %v2153_v57  ;;  %v2172_v7 = vor.u32 %v2171_v17, %v4185_v3  ;;  %v2199_v18 = vshll.u32 %v4188_v22, 16  ;;  %v2840_v14 = vcombine.low %v3790_v10, %v3793_v11 }
  0x8b   : > { %3166 = vmatmul.mubr.msk.bf16.vlgmr.msra.gmra.mrb[0].mxu0 %vm512_vm3, %v2912_v25  ;;  %v4465_v1 = vcombine.low %v4052_v35, %v4064_v40  ;;  %v2186_v33 = vor.u32 %v2185_v24, %v2182_v5  ;;  %v2196_v21 = vor.u32 %v2195_v54, %v4190_v63  ;;  %v2206_v57 = vrot.slane %v2204_v41, 4  ;;  %v3375_v25 = vld [vmem:[%s3463_s10 + $0x4] sm:$0xf]  ;;  %v4229_v24 = vld [vmem:[%s3853_s21 + $0x5c] sm:$0x1] }
  0x8c   : > { %3084 = vmatmul.mubr.msk.bf16.gmra.mrb[8].mxu1 %vm512_vm3, %v4464_v16  ;;  %3182 = vmatpush3.bf16.msra.mxu0 %v2508_v8  ;;  %v2209_v8 = vrot.slane %v2207_v20, 5  ;;  %v1362_v55 = vshrl.u32 %v3790_v10, 16  ;;  %v1365_v53 = vshll.u32 %v3790_v10, 16  ;;  %v4222_v15 = vrot.slane %v2213_v39, 5 }
  0x8d   : > { %3087 = vmatprep.mubr.msk.bf16.mxu1 %vm512_vm3, %v4465_v1  ;;  %3169 = vmatprep.mubr.msk.bf16.mxu0 %vm512_vm3, %v2913_v51  ;;  %v2219_v58 = vrot.slane %v2217_v49, 4  ;;  %v1371_v43 = vshll.u32 %v3793_v11, 16  ;;  %v1375_v35 = vshrl.u32 %v3793_v11, 16  ;;  %v2914_v40 = vcombine.low %v2120_v29, %v2130_v42  ;;  %v3376_v1 = vld [vmem:[%s3463_s10 + $0xc] sm:$0xf] }
  0x8e   : > { %v2835_v51 = vcombine.low %v3374_v47, %v3375_v25  ;;  %v2915_v13 = vcombine.low %v2144_v50, %v2154_v34  ;;  %v2163_v41 = vrot.slane %v2162_v61, 4  ;;  %v2173_v20 = vrot.slane %v2172_v7, 4 }
  0x8f   : > { %v2177_v23 = vrot.slane %v2175_v31, 5  ;;  %v2187_v45 = vrot.slane %v2186_v33, 4  ;;  %v2197_v2 = vrot.slane %v2196_v21, 4  ;;  %v2201_v28 = vrot.slane %v2199_v18, 5  ;;  %v3377_v33 = vld [vmem:[%s3463_s10 + $0x10] sm:$0xf] }
  0x90   : > { %v2210_v52 = vor.u32 %v2209_v8, %v2206_v57  ;;  %v2220_v30 = vor.u32 %v2219_v58, %v4222_v15  ;;  %v2223_v17 = vshll.u32 %v4229_v24, 16  ;;  %v1364_v5 = vrot.slane %v1362_v55, 4 }
  0x91   : > { %v1367_v54 = vrot.slane %v1365_v53, 5  ;;  %v2403_v49 = vrot.slane %v3871_v0, 5  ;;  %v1373_v29 = vrot.slane %v1371_v43, 5  ;;  %v1381_v39 = vshll.u32 %v3796_v12, 16  ;;  %v3379_v53 = vld [vmem:[%s3463_s10 + $0x1c] sm:$0xf] }
  0x92   : > { %v4466_v42 = vcombine.low %v4085_v37, %v4100_v38  ;;  %v2168_v50 = vsel %vm3504_vm4, %v2163_v41, %v4185_v3  ;;  %v2178_v61 = vsel %vm3504_vm4, %v2173_v20, %v2177_v23  ;;  %v1377_v0 = vrot.slane %v1375_v35, 4  ;;  %v4467_v20 = vld [vmem:[#allocation4_spill] sm:$0xff] }
  0x93   : > { %3170 = vmatmul.mubr.msk.bf16.gmra.mrb[4].mxu0 %vm512_vm3, %v2914_v40  ;;  %v2192_v12 = vsel %vm3504_vm4, %v2187_v45, %v4190_v63  ;;  %v2202_v37 = vsel %vm3504_vm4, %v2197_v2, %v2201_v28  ;;  %v2211_v38 = vrot.slane %v2210_v52, 4  ;;  %v2221_v31 = vrot.slane %v2220_v30, 4  ;;  %v3378_v63 = vld [vmem:[%s3463_s10 + $0x18] sm:$0xf]  ;;  %v4468_v2 = vld [vmem:[#allocation2_spill] sm:$0xff]  ;;  %v4469_v28 = vld [vmem:[#allocation3_spill] sm:$0xff] }
  0x94   : > { %3088 = vmatmul.mubr.msk.bf16.gmra.mrb[12].mxu1 %vm512_vm3, %v4466_v42  ;;  %3173 = vmatprep.mubr.msk.bf16.mxu0 %vm512_vm3, %v2915_v13  ;;  %v2225_v16 = vrot.slane %v2223_v17, 5  ;;  %v2927_v3 = vrot.slane %v3868_v44, 9  ;;  %v2916_v34 = vcombine.low %v2168_v50, %v2178_v61  ;;  %v2405_v7 = vrot.slane %v2403_v49, 4  ;;  %v4470_v30 = vld [vmem:[#allocation12_spill] sm:$0xff] }
  0x95   : > { %3093 = vmatprep.mubr.msk.bf16.mxu1 %vm512_vm3, %v2835_v51  ;;  %v2406_v18 = vrot.slane %v4015_v60, 5  ;;  %v2836_v21 = vcombine.low %v3376_v1, %v3377_v33  ;;  %v2917_v57 = vcombine.low %v2192_v12, %v2202_v37  ;;  %v1368_v8 = vor.u32 %v1367_v54, %v1364_v5 }
  0x96   : > { %v1383_v55 = vrot.slane %v1381_v39, 5  ;;  %v2837_v58 = vcombine.low %v3378_v63, %v3379_v53  ;;  %v2216_v43 = vsel %vm3504_vm4, %v2211_v38, %v4222_v15  ;;  %v1378_v35 = vor.u32 %v1377_v0, %v1373_v29  ;;  %v4471_v39 = vld [vmem:[#allocation13_spill] sm:$0xff]  ;;  %v4474_v53 = vld [vmem:[#allocation6_spill] sm:$0xff] }
  0x97   : > { %v2226_v44 = vsel %vm3504_vm4, %v2221_v31, %v2225_v16  ;;  %v2404_v60 = vsel %vm3670_vm7, %v2927_v3, %v2403_v49  ;;  %v2410_v40 = vrot.slane %v3903_v62, 5  ;;  %v1369_v47 = vrot.slane %v1368_v8, 4 }
  0x98   : > { %v2407_v25 = vsel %vm3670_vm7, %v2405_v7, %v2406_v18  ;;  %v2417_v51 = vrot.slane %v3931_v48, 5  ;;  %v1338_v15 = vshrl.u32 %v3761_v26, 16  ;;  %v1379_v13 = vrot.slane %v1378_v35, 4  ;;  %v3380_v48 = vld [vmem:[%s3463_s10 + $0x24] sm:$0xf]  ;;  %v4472_v18 = vld [vmem:[#allocation5_spill] sm:$0xff] }
  0x99   : > { %v1341_v41 = vshll.u32 %v3761_v26, 16  ;;  %v1347_v23 = vshll.u32 %v4467_v20, 16  ;;  %v1351_v62 = vshrl.u32 %v4467_v20, 16  ;;  %v1374_v45 = vsel %vm3504_vm4, %v1369_v47, %v1373_v29  ;;  %v4475_v35 = vld [vmem:[#allocation7_spill] sm:$0xff] }
  0x9a   : > { %v2838_v52 = vcombine.low %v3380_v48, %v4469_v28  ;;  %v2928_v17 = vrot.slane %v4470_v30, 9  ;;  %v1384_v5 = vsel %vm3504_vm4, %v1379_v13, %v1383_v55  ;;  %v2412_v54 = vrot.slane %v2410_v40, 4  ;;  %v4473_v55 = vld [vmem:[#allocation14_spill] sm:$0xff] }
  0x9b   : > { %3174 = vmatmul.mubr.msk.bf16.gmra.mrb[8].mxu0 %vm512_vm3, %v2916_v34  ;;  %v2413_v49 = vrot.slane %v4072_v46, 5  ;;  %v2929_v42 = vrot.slane %v4471_v39, 9  ;;  %v4287_v50 = vcombine.low %v1374_v45, %v1384_v5  ;;  %v2918_v29 = vcombine.low %v2216_v43, %v2226_v44  ;;  %v4479_v5 = vld [vmem:[#allocation17_spill] sm:$0xff] }
  0x9c   : > { %3094 = vmatmul.mubr.msk.bf16.vlgmr.msra.gmra.mrb[0].mxu1 %vm512_vm3, %v2836_v21  ;;  %3177 = vmatprep.mubr.msk.bf16.mxu0 %vm512_vm3, %v2917_v57  ;;  %v2936_v61 = vcombine.low %v2404_v60, %v2407_v25  ;;  %v2419_v0 = vrot.slane %v2417_v51, 4  ;;  %v2420_v12 = vrot.slane %v4078_v6, 5  ;;  %v1340_v37 = vrot.slane %v1338_v15, 4 }
  0x9d   : > { %3200 = vmatpush3.bf16.msra.mxu1 %v4468_v2  ;;  %3097 = vmatprep.mubr.msk.bf16.mxu1 %vm512_vm3, %v2837_v58  ;;  %v1343_v38 = vrot.slane %v1341_v41, 5  ;;  %v1349_v31 = vrot.slane %v1347_v23, 5  ;;  %v1353_v16 = vrot.slane %v1351_v62, 4  ;;  %v2839_v3 = vcombine.low %v3761_v26, %v4467_v20  ;;  %v4477_v23 = vld [vmem:[#allocation9_spill] sm:$0xff]  ;;  %v4478_v62 = vld [vmem:[#allocation10_spill] sm:$0xff] }
  0x9e   : > { %v2411_v34 = vsel %vm3670_vm7, %v2928_v17, %v2410_v40  ;;  %v2414_v46 = vsel %vm3670_vm7, %v2412_v54, %v2413_v49  ;;  %v2418_v7 = vsel %vm3670_vm7, %v2929_v42, %v2417_v51  ;;  %v2424_v6 = vrot.slane %v3980_v19, 5  ;;  %v4476_v51 = vld [vmem:[#allocation15_spill] sm:$0xff] }
  0x9f   : > { %v1357_v1 = vshll.u32 %v4472_v18, 16  ;;  %v2421_v26 = vsel %vm3670_vm7, %v2419_v0, %v2420_v12  ;;  %v1344_v33 = vor.u32 %v1343_v38, %v1340_v37  ;;  %v1354_v21 = vor.u32 %v1353_v16, %v1349_v31 }
  0xa0   : > { %v2431_v57 = vrot.slane %v4001_v4, 5  ;;  %v2937_v8 = vcombine.low %v2411_v34, %v2414_v46  ;;  %v2930_v63 = vrot.slane %v4473_v55, 9  ;;  %v2427_v19 = vrot.slane %v4137_v56, 5  ;;  %v4482_v34 = vld [vmem:[#allocation16_spill] sm:$0xff] }
  0xa1   : > { %v1386_v58 = vshrl.u32 %v4474_v53, 16  ;;  %v1389_v43 = vshll.u32 %v4474_v53, 16  ;;  %v1395_v44 = vshll.u32 %v4475_v35, 16  ;;  %v1399_v60 = vshrl.u32 %v4475_v35, 16 }
  0xa2   : > { %v2938_v40 = vcombine.low %v2418_v7, %v2421_v26  ;;  %v2426_v47 = vrot.slane %v2424_v6, 4  ;;  %v1359_v25 = vrot.slane %v1357_v1, 5  ;;  %v2931_v4 = vrot.slane %v4476_v51, 9  ;;  %v4483_v1 = vld [vmem:[#allocation18_spill] sm:$0xff] }
  0xa3   : > { %3178 = vmatmul.mubr.msk.bf16.gmra.mrb[12].mxu0 %vm512_vm3, %v2918_v29  ;;  %v1345_v15 = vrot.slane %v1344_v33, 4  ;;  %v1355_v13 = vrot.slane %v1354_v21, 4  ;;  %v2433_v41 = vrot.slane %v2431_v57, 4  ;;  %v2434_v20 = vrot.slane %v4150_v59, 5  ;;  %v4480_v29 = vld [vmem:[#allocation19_spill] sm:$0xff] }
  0xa4   : > { %3098 = vmatmul.mubr.msk.bf16.gmra.mrb[4].mxu1 %vm512_vm3, %v2838_v52  ;;  %3183 = vmatprep.mubr.msk.bf16.mxu0 %vm512_vm3, %v2936_v61  ;;  %v2841_v56 = vcombine.low %v4474_v53, %v4475_v35  ;;  %v2842_v45 = vcombine.low %v4478_v62, %v4477_v23  ;;  %v1388_v2 = vrot.slane %v1386_v58, 4  ;;  %v1391_v48 = vrot.slane %v1389_v43, 5 }
  0xa5   : > { %3101 = vmatprep.mubr.msk.bf16.mxu1 %vm512_vm3, %v2839_v3  ;;  %v1397_v28 = vrot.slane %v1395_v44, 5  ;;  %v1401_v52 = vrot.slane %v1399_v60, 4  ;;  %v2425_v30 = vsel %vm3670_vm7, %v2930_v63, %v2424_v6  ;;  %v2428_v17 = vsel %vm3670_vm7, %v2426_v47, %v2427_v19  ;;  %v4484_v47 = vld [vmem:[#allocation11_spill] sm:$0xff] }
  0xa6   : > { %v2432_v59 = vsel %vm3670_vm7, %v2931_v4, %v2431_v57  ;;  %v2438_v54 = vrot.slane %v4479_v5, 5  ;;  %v1350_v49 = vsel %vm3504_vm4, %v1345_v15, %v1349_v31  ;;  %v1360_v39 = vsel %vm3504_vm4, %v1355_v13, %v1359_v25  ;;  %v4481_v31 = vld [vmem:[#allocation8_spill] sm:$0xff] }
  0xa7   : > { %v2435_v42 = vsel %vm3670_vm7, %v2433_v41, %v2434_v20  ;;  %v2445_v61 = vrot.slane %v4480_v29, 5  ;;  %v1410_v0 = vshrl.u32 %v4478_v62, 16  ;;  %v1413_v10 = vshll.u32 %v4478_v62, 16  ;;  %v4485_v41 = vld [vmem:[#allocation20_spill] sm:$0xff] }
  0xa8   : > { %v1419_v11 = vshll.u32 %v4477_v23, 16  ;;  %v2939_v12 = vcombine.low %v2425_v30, %v2428_v17  ;;  %v1392_v37 = vor.u32 %v1391_v48, %v1388_v2  ;;  %v1402_v38 = vor.u32 %v1401_v52, %v1397_v28 }
  0xa9   : > { %v1405_v16 = vshll.u32 %v4481_v31, 16  ;;  %v2940_v3 = vcombine.low %v2432_v59, %v2435_v42  ;;  %v2932_v46 = vrot.slane %v4482_v34, 9  ;;  %v2440_v7 = vrot.slane %v2438_v54, 4 }
  0xaa   : > { %v2441_v6 = vrot.slane %v4183_v36, 5  ;;  %v2856_v18 = vcombine.low %v1350_v49, %v1360_v39  ;;  %v2933_v26 = vrot.slane %v4483_v1, 9  ;;  %v2447_v33 = vrot.slane %v2445_v61, 4 }
  0xab   : > { %3184 = vmatmul.mubr.msk.bf16.vlgmr.msra.gmra.mrb[0].mxu0 %vm512_vm3, %v2937_v8  ;;  %v2448_v21 = vrot.slane %v4188_v22, 5  ;;  %v1412_v57 = vrot.slane %v1410_v0, 4  ;;  %v1415_v8 = vrot.slane %v1413_v10, 5  ;;  %v1421_v55 = vrot.slane %v1419_v11, 5 }
  0xac   : > { %3102 = vmatmul.mubr.msk.bf16.gmra.mrb[8].mxu1 %vm512_vm3, %v2840_v14  ;;  %3187 = vmatprep.mubr.msk.bf16.mxu0 %vm512_vm3, %v2938_v40  ;;  %v1423_v14 = vshrl.u32 %v4477_v23, 16  ;;  %v1393_v19 = vrot.slane %v1392_v37, 4  ;;  %v1403_v53 = vrot.slane %v1402_v38, 4  ;;  %v1407_v58 = vrot.slane %v1405_v16, 5 }
  0xad   : > { %3105 = vmatprep.mubr.msk.bf16.mxu1 %vm512_vm3, %v2841_v56  ;;  %v2439_v36 = vsel %vm3670_vm7, %v2932_v46, %v2438_v54  ;;  %v2442_v43 = vsel %vm3670_vm7, %v2440_v7, %v2441_v6  ;;  %v2446_v22 = vsel %vm3670_vm7, %v2933_v26, %v2445_v61  ;;  %v2452_v35 = vrot.slane %v4091_v27, 5 }
  0xae   : > { %v1425_v63 = vrot.slane %v1423_v14, 4  ;;  %v2449_v44 = vsel %vm3670_vm7, %v2447_v33, %v2448_v21  ;;  %v1416_v60 = vor.u32 %v1415_v8, %v1412_v57  ;;  %v1429_v25 = vshll.u32 %v4484_v47, 16 }
  0xaf   : > { %v1398_v51 = vsel %vm3504_vm4, %v1393_v19, %v1397_v28  ;;  %v1408_v4 = vsel %vm3504_vm4, %v1403_v53, %v1407_v58  ;;  %v2941_v15 = vcombine.low %v2439_v36, %v2442_v43  ;;  %v2942_v13 = vcombine.low %v2446_v22, %v2449_v44 }
  0xb0   : > { %v1426_v40 = vor.u32 %v1425_v63, %v1421_v55  ;;  %v2934_v20 = vrot.slane %v4485_v41, 9  ;;  %v2454_v27 = vrot.slane %v2452_v35, 4  ;;  %v2455_v56 = vrot.slane %v4229_v24, 5 }
  0xb1   : > { %v2858_v23 = vcombine.low %v1398_v51, %v1408_v4  ;;  %v1417_v62 = vrot.slane %v1416_v60, 4  ;;  %v1431_v2 = vrot.slane %v1429_v25, 5 }
  0xb2   : > { %v2453_v48 = vsel %vm3670_vm7, %v2934_v20, %v2452_v35  ;;  %v2456_v28 = vsel %vm3670_vm7, %v2454_v27, %v2455_v56 }
  0xb3   : > { %3188 = vmatmul.mubr.msk.bf16.gmra.mrb[4].mxu0 %vm512_vm3, %v2939_v12  ;;  %v1422_v24 = vsel %vm3504_vm4, %v1417_v62, %v1421_v55  ;;  %v2943_v30 = vcombine.low %v2453_v48, %v2456_v28 }
  0xb4   : > { %3106 = vmatmul.mubr.msk.bf16.gmra.mrb[12].mxu1 %vm512_vm3, %v2842_v45  ;;  %3191 = vmatprep.mubr.msk.bf16.mxu0 %vm512_vm3, %v2940_v3  ;;  %v1427_v45 = vrot.slane %v1426_v40, 4 }
  0xb5   : > { %3119 = vmatprep.mubr.msk.bf16.mxu1 %vm512_vm3, %v2856_v18 }
  0xb6   : > { %v1432_v52 = vsel %vm3504_vm4, %v1427_v45, %v1431_v2 }
  0xb7   : > { %v2859_v17 = vcombine.low %v1422_v24, %v1432_v52 }
  0xbb   : > { %3192 = vmatmul.mubr.msk.bf16.gmra.mrb[8].mxu0 %vm512_vm3, %v2941_v15 }
  0xbc   : > { %3120 = vmatmul.mubr.msk.bf16.vlgmr.msra.gmra.mrb[8].mxu1 %vm512_vm3, %v4287_v50  ;;  %3195 = vmatprep.mubr.msk.bf16.mxu0 %vm512_vm3, %v2942_v13 }
  0xbd   : > { %3123 = vmatprep.mubr.msk.bf16.mxu1 %vm512_vm3, %v2858_v23 }
  0xc3   : > { %3196 = vmatmul.mubr.msk.bf16.gmra.mrb[12].mxu0 %vm512_vm3, %v2943_v30 }
  0xc4   : > { %3124 = vmatmul.mubr.msk.bf16.gmra.mrb[12].mxu1 %vm512_vm3, %v2859_v17 }
 0x16f   : > { %v3095_v50 = vpop.f32.mrb[0].mxu1 }
 0x170   : > { %v1162_v59 = vpop.f32.mrb[1].mxu1 }
 0x171   : > { %v3096_v5 = vpop.f32.mrb[2].mxu1 }
 0x172   : > { %v1165_v54 = vpop.f32.mrb[3].mxu1 }
 0x177   : > { %v3099_v9 = vpop.f32.mrb[4].mxu1 }
 0x178   : > { %v1178_v49 = vpop.f32.mrb[5].mxu1 }
 0x179   : > { %v3100_v39 = vpop.f32.mrb[6].mxu1 }
 0x17a   : > { %v1181_v42 = vpop.f32.mrb[7].mxu1 }
 0x17e   : > { %v3185_v29 = vpop.f32.mrb[0].mxu0 }
 0x17f   : > { %v3201_v61 = vadd.f32 %v3185_v29, %v3095_v50  ;;  %v2544_v0 = vpop.f32.mrb[1].mxu0 }
 0x180   : > { %v3202_v10 = vadd.f32 %v2544_v0, %v1162_v59  ;;  %v3186_v11 = vpop.f32.mrb[2].mxu0  ;;  %v3389_v59 = vmov (!%p2953_p4), 0.0  }
 0x181   : > { %v2632_v14 = vadd.f32 %v3201_v61, %v2952_v32  ;;  %v3203_v12 = vadd.f32 %v3186_v11, %v3096_v5  ;;  %v2547_v37 = vpop.f32.mrb[3].mxu0  ;;  %2650 = vst [vmem:[%s4406_s5] sm:$0x3] (!%p2953_p4), %v3389_v59 }
 0x182   : > { %v2630_v38 = vadd.f32 %v3202_v10, %v2952_v32  ;;  %v3204_v31 = vadd.f32 %v2547_v37, %v1165_v54 }
 0x183   : > { %v2633_v16 = vadd.f32 %v3203_v12, %v2952_v32 }
 0x184   : > { %v2631_v3 = vadd.f32 %v3204_v31, %v2952_v32 }
 0x186   : > { %v3189_v34 = vpop.f32.mrb[4].mxu0 }
 0x187   : > { %v3205_v46 = vadd.f32 %v3189_v34, %v3099_v9  ;;  %v2560_v7 = vpop.f32.mrb[5].mxu0 }
 0x188   : > { %v3206_v6 = vadd.f32 %v2560_v7, %v1178_v49  ;;  %v3190_v18 = vpop.f32.mrb[6].mxu0 }
 0x189   : > { %v2636_v1 = vadd.f32 %v3205_v46, %v2952_v32  ;;  %v3207_v26 = vadd.f32 %v3190_v18, %v3100_v39  ;;  %v2563_v33 = vpop.f32.mrb[7].mxu0 }
 0x18a   : > { %v2634_v21 = vadd.f32 %v3206_v6, %v2952_v32  ;;  %v3208_v57 = vadd.f32 %v2563_v33, %v1181_v42 }
 0x18b   : > { %v2637_v8 = vadd.f32 %v3207_v26, %v2952_v32 }
 0x18c   : > { %v2635_v55 = vadd.f32 %v3208_v57, %v2952_v32 }
 0x18e   : > { %v3193_v63 = vpop.f32.mrb[8].mxu0 }
 0x18f   : > { %v3121_v19 = vpop.f32.mrb[8].mxu1  ;;  %v2576_v53 = vpop.f32.mrb[9].mxu0 }
 0x190   : > { %v3209_v58 = vadd.f32 %v3193_v63, %v3121_v19  ;;  %v1552_v36 = vpop.f32.mrb[9].mxu1  ;;  %v3194_v43 = vpop.f32.mrb[10].mxu0 }
 0x191   : > { %v3210_v22 = vadd.f32 %v2576_v53, %v1552_v36  ;;  %v3122_v35 = vpop.f32.mrb[10].mxu1  ;;  %v2579_v44 = vpop.f32.mrb[11].mxu0 }
 0x192   : > { %v2640_v60 = vadd.f32 %v3209_v58, %v2952_v32  ;;  %v3211_v40 = vadd.f32 %v3194_v43, %v3122_v35  ;;  %v1555_v47 = vpop.f32.mrb[11].mxu1 }
 0x193   : > { %v2638_v25 = vadd.f32 %v3210_v22, %v2952_v32  ;;  %v3212_v51 = vadd.f32 %v2579_v44, %v1555_v47 }
 0x194   : > { %v2641_v4 = vadd.f32 %v3211_v40, %v2952_v32 }
 0x195   : > { %v2639_v15 = vadd.f32 %v3212_v51, %v2952_v32 }
 0x196   : > { %v3197_v13 = vpop.f32.mrb[12].mxu0 }
 0x197   : > { %v3125_v41 = vpop.f32.mrb[12].mxu1  ;;  %v2592_v20 = vpop.f32.mrb[13].mxu0  ;;  %2649 = sbr.rel (%p2953_p4) target bundleno = 414 (0x19e), region = 44 }
 0x198   : > { %v3213_v27 = vadd.f32 %v3197_v13, %v3125_v41  ;;  %v1568_v56 = vpop.f32.mrb[13].mxu1  ;;  %v3198_v23 = vpop.f32.mrb[14].mxu0 }
 0x199   : > { %v3214_v62 = vadd.f32 %v2592_v20, %v1568_v56  ;;  %v3126_v45 = vpop.f32.mrb[14].mxu1  ;;  %v2595_v2 = vpop.f32.mrb[15].mxu0 }
 0x19a   : > { %v2644_v48 = vadd.f32 %v3213_v27, %v2952_v32  ;;  %v3215_v28 = vadd.f32 %v3198_v23, %v3126_v45  ;;  %v1571_v24 = vpop.f32.mrb[15].mxu1 }
 0x19b   : > { %v2642_v52 = vadd.f32 %v3214_v62, %v2952_v32  ;;  %v3216_v30 = vadd.f32 %v2595_v2, %v1571_v24 }
 0x19c   : > { %v2645_v17 = vadd.f32 %v3215_v28, %v2952_v32 }
 0x19d   : > { %v2643_v50 = vadd.f32 %v3216_v30, %v2952_v32 }
 0x19e PF: > { %v2651_v5 = vadd.f32 %v2631_v3, %v2630_v38  ;;  %v2672_v54 = vmul.f32 %v2630_v38, %v2630_v38  ;;  %v2673_v9 = vmul.f32 %v2631_v3, %v2631_v3  ;;  %v2674_v39 = vmul.f32 %v2632_v14, %v2632_v14 }
 0x19f   : > { %v2675_v29 = vmul.f32 %v2633_v16, %v2633_v16  ;;  %v2676_v32 = vmul.f32 %v2634_v21, %v2634_v21  ;;  %v2677_v12 = vmul.f32 %v2635_v55, %v2635_v55  ;;  %v2678_v34 = vmul.f32 %v2636_v1, %v2636_v1 }
 0x1a0   : > { %v2652_v49 = vadd.f32 %v2651_v5, %v2632_v14  ;;  %v2688_v61 = vadd.f32 %v2673_v9, %v2672_v54  ;;  %v2679_v6 = vmul.f32 %v2637_v8, %v2637_v8  ;;  %v2680_v38 = vmul.f32 %v2638_v25, %v2638_v25 }
 0x1a1   : > { %v2681_v14 = vmul.f32 %v2639_v15, %v2639_v15  ;;  %v2682_v63 = vmul.f32 %v2640_v60, %v2640_v60  ;;  %v2683_v53 = vmul.f32 %v2641_v4, %v2641_v4  ;;  %v2684_v36 = vmul.f32 %v2642_v52, %v2642_v52 }
 0x1a2   : > { %v2653_v42 = vadd.f32 %v2652_v49, %v2633_v16  ;;  %v2689_v10 = vadd.f32 %v2688_v61, %v2674_v39  ;;  %v2685_v22 = vmul.f32 %v2643_v50, %v2643_v50  ;;  %v2686_v44 = vmul.f32 %v2644_v48, %v2644_v48 }
 0x1a3   : > { %vm2710_vm8 = vcmask 1040384  }
 0x1a4   : > { %v2654_v0 = vadd.f32 %v2653_v42, %v2634_v21  ;;  %v2690_v37 = vadd.f32 %v2689_v10, %v2675_v29 }
 0x1a6   : > { %v2655_v11 = vadd.f32 %v2654_v0, %v2635_v55  ;;  %v2691_v46 = vadd.f32 %v2690_v37, %v2676_v32 }
 0x1a8   : > { %v2656_v31 = vadd.f32 %v2655_v11, %v2636_v1  ;;  %v2692_v18 = vadd.f32 %v2691_v46, %v2677_v12 }
 0x1aa   : > { %v2657_v7 = vadd.f32 %v2656_v31, %v2637_v8  ;;  %v2693_v3 = vadd.f32 %v2692_v18, %v2678_v34 }
 0x1ac   : > { %v2658_v26 = vadd.f32 %v2657_v7, %v2638_v25  ;;  %v2694_v57 = vadd.f32 %v2693_v3, %v2679_v6  ;;  %v2687_v25 = vmul.f32 %v2645_v17, %v2645_v17 }
 0x1ae   : > { %v2659_v33 = vadd.f32 %v2658_v26, %v2639_v15  ;;  %v2695_v19 = vadd.f32 %v2694_v57, %v2680_v38 }
 0x1b0   : > { %v2660_v16 = vadd.f32 %v2659_v33, %v2640_v60  ;;  %v2696_v58 = vadd.f32 %v2695_v19, %v2681_v14 }
 0x1b2   : > { %v2661_v21 = vadd.f32 %v2660_v16, %v2641_v4  ;;  %v2697_v43 = vadd.f32 %v2696_v58, %v2682_v63 }
 0x1b4   : > { %v2662_v55 = vadd.f32 %v2661_v21, %v2642_v52  ;;  %v2698_v35 = vadd.f32 %v2697_v43, %v2683_v53 }
 0x1b6   : > { %v2663_v1 = vadd.f32 %v2662_v55, %v2643_v50  ;;  %v2699_v40 = vadd.f32 %v2698_v35, %v2684_v36 }
 0x1b8   : > { %v2664_v8 = vadd.f32 %v2663_v1, %v2644_v48  ;;  %v2700_v51 = vadd.f32 %v2699_v40, %v2685_v22  ;;  %v2709_v48 = vld [vmem:[%s4406_s5] sm:$0x3] }
 0x1ba   : > { %v2665_v47 = vadd.f32 %v2664_v8, %v2645_v17  ;;  %v2701_v13 = vadd.f32 %v2700_v51, %v2686_v44 }
 0x1bc   : > { %v2666_v15 = vrot.slane %v2665_v47, 4  ;;  %v2702_v60 = vadd.f32 %v2701_v13, %v2687_v25 }
 0x1be   : > { %v2667_v41 = vadd.f32 %v2666_v15, %v2665_v47  ;;  %v2703_v27 = vrot.slane %v2702_v60, 4 }
 0x1c0   : > { %v2668_v20 = vrot.slane %v2667_v41, 2  ;;  %v2704_v56 = vadd.f32 %v2703_v27, %v2702_v60 }
 0x1c2   : > { %v2669_v4 = vadd.f32 %v2668_v20, %v2667_v41  ;;  %v2705_v62 = vrot.slane %v2704_v56, 2 }
 0x1c4   : > { %v2670_v23 = vrot.slane %v2669_v4, 1  ;;  %v2706_v45 = vadd.f32 %v2705_v62, %v2704_v56 }
 0x1c6   : > { %v2671_v2 = vadd.f32 %v2670_v23, %v2669_v4  ;;  %v2707_v28 = vrot.slane %v2706_v45, 1 }
 0x1c8   : > { %v2708_v24 = vadd.f32 %v2707_v28, %v2706_v45 }
 0x1ca   : > { %v2711_v52 = vsel %vm2710_vm8, %v2671_v2, %v2708_v24 }
 0x1cb   : > { %v2712_v30 = vadd.f32 %v2711_v52, %v2709_v48 }
 0x1cd   : > { %2713 = vst [vmem:[%s4406_s5] sm:$0x3] %v2712_v30 }
 0x1ce PF: > { %s15_s18 = sadd.s32 1, %s3387_s18  }
 0x1cf   : > { %p12_p5 = scmp.ge.s32.totalorder %s15_s18, 6  }
 0x1d1   :  { %14 = sbr.rel (!%p12_p5) target bundleno = 1 (0x1), region = 84 }

</bundles_post_ra>
